<compile_context>
chip_gen: v7x
topology: tpu7x:2x2x1
jax: 0.10.0
libtpu: 0.0.40
codegen_flags: <defaults>
</compile_context>

<pallas_src>
import functools
import numpy as np

import jax
import jax.numpy as jnp
from jax import lax
from jax.experimental import pallas as pl
from jax.experimental.pallas import tpu as pltpu

_LANES = 128


# --------------------------------------------------------------------------
# Pallas kernel: fused 3x3 conv + bias + LeakyReLU(0.1) + channel concat
# --------------------------------------------------------------------------
def _one_conv_kernel(x_ref, xup_ref, xdn_ref, w_ref, b_ref, o_ref,
                     xp_ref, cols_ref, act_ref, *, TH, W, C, Cp):
    """Per grid step: one batch index, one tile of TH output rows.

    x_ref   : (1, TH, W, C)     f32   interior rows of this tile
    xup_ref : (1, 1, W, C)      f32   row above the tile (clamped at border)
    xdn_ref : (1, 1, W, C)      f32   row below the tile (clamped at border)
    w_ref   : (9*Cp, G)         bf16  conv taps, tap-major, channel-padded
    b_ref   : (1, G)            f32   bias
    o_ref   : (1, TH, W, C+G)   f32   fused [x, lrelu(conv(x))] output tile
    xp_ref  : (TH+2, W+2, Cp)   bf16  zero-padded halo tile (VMEM scratch)
    cols_ref: (TH*W, 9*Cp)      bf16  im2col (deep-K matmul operand)
    act_ref : (TH, W, G)        f32   activated conv result
    """
    r = pl.program_id(1)
    R = pl.num_programs(1)
    bf = xp_ref.dtype

    def pad_c(v):  # (..., C) -> (..., Cp) with zero pad lanes C:Cp
        if Cp == C:
            return v
        z = jnp.zeros(v.shape[:-1] + (Cp - C,), v.dtype)
        return jnp.concatenate([v, z], axis=-1)

    # ---- build the zero-padded bf16 halo tile ------------------------------
    # Every write covers the full Cp lane width, so pad lanes are always zero.
    # The two zero halo columns are rewritten every step on purpose: scratch is
    # per-TensorCore and with both grid axes "parallel" there is no single
    # "first iteration" per core to hoist them to (cost: 2*(TH+2) tiny stores).
    zc = jnp.zeros((TH + 2, 1, Cp), bf)
    xp_ref[:, 0:1, :] = zc
    xp_ref[:, W + 1:W + 2, :] = zc

    zrow = jnp.zeros((1, W, Cp), bf)

    @pl.when(r == 0)
    def _():
        xp_ref[0:1, 1:W + 1, :] = zrow

    @pl.when(r > 0)
    def _():
        xp_ref[0:1, 1:W + 1, :] = pad_c(xup_ref[0].astype(bf))

    @pl.when(r == R - 1)
    def _():
        xp_ref[TH + 1:TH + 2, 1:W + 1, :] = zrow

    @pl.when(r < R - 1)
    def _():
        xp_ref[TH + 1:TH + 2, 1:W + 1, :] = pad_c(xdn_ref[0].astype(bf))

    xp_ref[1:TH + 1, 1:W + 1, :] = pad_c(x_ref[0].astype(bf))

    # ---- explicit lane-aligned im2col: 9 shifted (TH*W, Cp) copies ----------
    for ky in range(3):
        for kx in range(3):
            t = ky * 3 + kx
            cols_ref[:, t * Cp:(t + 1) * Cp] = (
                xp_ref[ky:ky + TH, kx:kx + W, :].reshape(TH * W, Cp))

    # ---- one deep-K MXU matmul, then bias + LeakyReLU(0.1) in f32 -----------
    acc = jnp.dot(cols_ref[...], w_ref[...], preferred_element_type=jnp.float32)
    acc = acc + b_ref[...]
    acc = jnp.where(acc >= 0, acc, 0.1 * acc)
    act_ref[...] = acc.reshape(TH, W, acc.shape[-1])

    # ---- fused torch.cat((x, act), channel): chunked lane-dense stores ------
    CH = 8 if TH % 8 == 0 else TH

    def emit(c, carry):
        r0 = pl.multiple_of(c * CH, CH)
        xa = x_ref[0, pl.ds(r0, CH), :, :]            # (CH, W, C) f32 passthrough
        aa = act_ref[pl.ds(r0, CH), :, :]             # (CH, W, G) f32 conv result
        o_ref[0, pl.ds(r0, CH), :, :] = jnp.concatenate(
            [xa, aa], axis=-1).astype(o_ref.dtype)
        return carry

    lax.fori_loop(0, TH // CH, emit, 0, unroll=True)


# --------------------------------------------------------------------------
# Wrappers
# --------------------------------------------------------------------------
def _pick_row_tile(H, W, Cp=_LANES):
    """Largest row tile (<= 64) dividing H whose im2col scratch stays <=~12 MiB."""
    budget = 12 * 1024 * 1024
    best = 1
    for t in range(1, min(H, 64) + 1):
        if H % t == 0 and t * W * 9 * Cp * 2 <= budget:
            best = t
    return best


def _vmem_limit_bytes():
    try:
        cap = int(pltpu.get_tpu_info().vmem_capacity_bytes)
    except Exception:
        cap = 64 * 1024 * 1024          # conservative fallback (v7x-sized)
    return (cap * 3) // 4               # ~96 MiB on v5e/v6e, ~48 MiB on v7x


@functools.partial(jax.jit, static_argnames=("row_tile",))
def one_conv_forward_nhwc(x, weight, bias, *, row_tile=None):
    """NHWC-native one_conv: x (B,H,W,C) -> (B,H,W,C+G).

    Call this directly from an NHWC network to avoid the NCHW<->NHWC HBM
    round trips of the PyTorch-layout wrapper below.
    """
    B, H, W, C = x.shape
    G = weight.shape[0]
    assert weight.shape == (G, C, 3, 3) and bias.shape == (G,)

    Cp = ((C + _LANES - 1) // _LANES) * _LANES   # conv channels padded to lanes
    if row_tile is None:
        row_tile = _pick_row_tile(H, W, Cp)
    TH = row_tile
    # TODO(synk): no tail-tile handling; H must be divisible by row_tile.
    assert H % TH == 0, "row_tile must divide H"
    R = H // TH

    x = x.astype(jnp.float32)
    # Conv taps -> (9*Cp, G) bf16, tap-major, channel dim zero-padded to Cp.
    w_t = jnp.transpose(weight, (2, 3, 1, 0)).reshape(9, C, G)
    w_t = jnp.pad(w_t, ((0, 0), (0, Cp - C), (0, 0)))
    w9 = w_t.reshape(9 * Cp, G).astype(jnp.bfloat16)
    b2 = bias.reshape(1, G).astype(jnp.float32)

    kernel = functools.partial(_one_conv_kernel, TH=TH, W=W, C=C, Cp=Cp)

    return pl.pallas_call(
        kernel,
        out_shape=jax.ShapeDtypeStruct((B, H, W, C + G), jnp.float32),
        grid=(B, R),
        in_specs=[
            # Row-blocked main tile (VMEM use scales with TH, not H).
            pl.BlockSpec((1, TH, W, C), lambda b, r: (b, r, 0, 0)),
            # One halo row above / below the tile. Indices are clamped at the
            # image border; border rows are zeroed in-kernel so the clamped
            # fetch is never read.
            pl.BlockSpec((1, 1, W, C),
                         lambda b, r: (b, jnp.maximum(r * TH - 1, 0), 0, 0)),
            pl.BlockSpec((1, 1, W, C),
                         lambda b, r: (b, jnp.minimum(r * TH + TH, H - 1), 0, 0)),
            pl.BlockSpec((9 * Cp, G), lambda b, r: (0, 0)),
            pl.BlockSpec((1, G), lambda b, r: (0, 0)),
        ],
        out_specs=pl.BlockSpec((1, TH, W, C + G), lambda b, r: (b, r, 0, 0)),
        scratch_shapes=[
            pltpu.VMEM((TH + 2, W + 2, Cp), jnp.bfloat16),   # padded halo tile
            pltpu.VMEM((TH * W, 9 * Cp), jnp.bfloat16),      # im2col (deep-K)
            pltpu.VMEM((TH, W, G), jnp.float32),             # activated conv
        ],
        compiler_params=pltpu.CompilerParams(
            # No cross-step carry -> both axes parallel (keeps both v7x TCs busy).
            dimension_semantics=("parallel", "parallel"),
            vmem_limit_bytes=_vmem_limit_bytes()),
    )(x, x, x, w9, b2)


@functools.partial(jax.jit, static_argnames=("row_tile",))
def one_conv_forward(x_nchw, weight, bias, *, row_tile=None):
    """PyTorch-layout one_conv.forward: x (B, G0, H, W) -> (B, G0+G, H, W)."""
    # NOTE(review): these two transposes are extra HBM passes; keep the network
    # NHWC and call one_conv_forward_nhwc directly to eliminate them.
    x = jnp.transpose(x_nchw, (0, 2, 3, 1))
    out = one_conv_forward_nhwc(x, weight, bias, row_tile=row_tile)
    return jnp.transpose(out, (0, 3, 1, 2))


# --------------------------------------------------------------------------
if __name__ == "__main__":
    # one_conv(G0=96, G=32): concat output channels = 128 (lane-dense slab).
    B, G0, G, H, W = 2, 96, 32, 16, 16

    key = jax.random.PRNGKey(0)
    kx, kw, kb = jax.random.split(key, 3)
    x = jax.random.uniform(kx, (B, G0, H, W), jnp.float32)
    weight = jax.random.normal(kw, (G, G0, 3, 3), jnp.float32) / np.sqrt(9 * G0)
    bias = jax.random.normal(kb, (G,), jnp.float32) * 0.01

    # Reference: exact f32 conv on the same bf16-rounded operands the MXU sees.
    xb = x.astype(jnp.bfloat16).astype(jnp.float32)
    wb = weight.astype(jnp.bfloat16).astype(jnp.float32)
    ref_conv = lax.conv_general_dilated(
        xb, wb, window_strides=(1, 1), padding=((1, 1), (1, 1)),
        dimension_numbers=("NCHW", "OIHW", "NCHW"),
        precision=lax.Precision.HIGHEST) + bias.reshape(1, G, 1, 1)
    ref = jnp.concatenate(
        [x, jnp.where(ref_conv >= 0, ref_conv, 0.1 * ref_conv)], axis=1)

    # row_tile=8 exercises the interior-halo path (R=2); default picks TH=16.
    for rt in (8, None):
        out = jax.block_until_ready(one_conv_forward(x, weight, bias, row_tile=rt))
        assert out.shape == (B, G0 + G, H, W)
        assert bool(jnp.all(jnp.isfinite(out)))
        # Concat passthrough must be bit-exact f32.
        assert bool(jnp.array_equal(out[:, :G0], x)), "input passthrough mismatch"
        max_err = float(jnp.max(jnp.abs(out - ref)))
        assert max_err < 1e-3, f"max abs error {max_err} (row_tile={rt})"

    print("KERNEL_OK")
</pallas_src>

<mosaic_0001>
module attributes {stable_mosaic.version = 11 : i64} {
  func.func @_one_conv_kernel(%arg0: i32, %arg1: i32, %arg2: memref<1x8x16x96xf32, #tpu.memory_space<vmem>>, %arg3: memref<1x1x16x96xf32, #tpu.memory_space<vmem>>, %arg4: memref<1x1x16x96xf32, #tpu.memory_space<vmem>>, %arg5: memref<1152x32xbf16, #tpu.memory_space<vmem>>, %arg6: memref<1x32xf32, #tpu.memory_space<vmem>>, %arg7: memref<1x8x16x128xf32, #tpu.memory_space<vmem>>, %arg8: memref<10x18x128xbf16, #tpu.memory_space<vmem>>, %arg9: memref<128x1152xbf16, #tpu.memory_space<vmem>>, %arg10: memref<8x16x32xf32, #tpu.memory_space<vmem>>) attributes {dimension_semantics = [#tpu.dimension_semantics<parallel>, #tpu.dimension_semantics<parallel>], iteration_bounds = array<i64: 2, 2>, scalar_prefetch = 0 : i64, scratch_operands = 3 : i64, tpu.core_type = #tpu.core_type<tc>, window_params = [{transform_indices = @transform_0, window_bounds = array<i64: 1, 8, 16, 96>}, {transform_indices = @transform_1, window_bounds = array<i64: 1, 1, 16, 96>}, {transform_indices = @transform_2, window_bounds = array<i64: 1, 1, 16, 96>}, {pipeline_mode = #tpu.pipeline_mode<synchronous>, transform_indices = @transform_3, window_bounds = array<i64: 1152, 32>}, {pipeline_mode = #tpu.pipeline_mode<synchronous>, transform_indices = @transform_4, window_bounds = array<i64: 1, 32>}, {transform_indices = @transform_5, window_bounds = array<i64: 1, 8, 16, 128>}]} {
    %cst = arith.constant 0.000000e+00 : bf16
    %0 = vector.broadcast %cst : bf16 to vector<10x1x128xbf16>
    %c0 = arith.constant 0 : index
    %c0_0 = arith.constant 0 : index
    %c0_1 = arith.constant 0 : index
    %1 = vector.load %arg8[%c0, %c0_0, %c0_1] : memref<10x18x128xbf16, #tpu.memory_space<vmem>>, vector<10x1x128xbf16>
    tpu.vector_store %arg8[%c0, %c0_0, %c0_1], %0 {strides = array<i32>} : memref<10x18x128xbf16, #tpu.memory_space<vmem>>, vector<10x1x128xbf16>,
    %c0_2 = arith.constant 0 : index
    %c17 = arith.constant 17 : index
    %c0_3 = arith.constant 0 : index
    %2 = vector.load %arg8[%c0_2, %c17, %c0_3] : memref<10x18x128xbf16, #tpu.memory_space<vmem>>, vector<10x1x128xbf16>
    tpu.vector_store %arg8[%c0_2, %c17, %c0_3], %0 {strides = array<i32>} : memref<10x18x128xbf16, #tpu.memory_space<vmem>>, vector<10x1x128xbf16>,
    %cst_4 = arith.constant 0.000000e+00 : bf16
    %3 = vector.broadcast %cst_4 : bf16 to vector<1x16x128xbf16>
    %c0_i32 = arith.constant 0 : i32
    %4 = arith.cmpi eq, %arg1, %c0_i32 : i32
    %5 = arith.extui %4 : i1 to i32
    %c0_i32_5 = arith.constant 0 : i32
    %6 = arith.cmpi ne, %5, %c0_i32_5 : i32
    scf.if %6 {
      %c0_76 = arith.constant 0 : index
      %c1_77 = arith.constant 1 : index
      %c0_78 = arith.constant 0 : index
      %74 = vector.load %arg8[%c0_76, %c1_77, %c0_78] : memref<10x18x128xbf16, #tpu.memory_space<vmem>>, vector<1x16x128xbf16>
      tpu.vector_store %arg8[%c0_76, %c1_77, %c0_78], %3 {strides = array<i32>} : memref<10x18x128xbf16, #tpu.memory_space<vmem>>, vector<1x16x128xbf16>,
    } else {
    }
    %c0_i32_6 = arith.constant 0 : i32
    %7 = arith.cmpi sgt, %arg1, %c0_i32_6 : i32
    %8 = arith.extui %7 : i1 to i32
    %c0_i32_7 = arith.constant 0 : i32
    %9 = arith.cmpi ne, %8, %c0_i32_7 : i32
    scf.if %9 {
      %c0_76 = arith.constant 0 : index
      %c0_77 = arith.constant 0 : index
      %c0_78 = arith.constant 0 : index
      %c0_79 = arith.constant 0 : index
      %74 = vector.load %arg3[%c0_76, %c0_77, %c0_78, %c0_79] : memref<1x1x16x96xf32, #tpu.memory_space<vmem>>, vector<1x1x16x96xf32>
      %75 = vector.shape_cast %74 : vector<1x1x16x96xf32> to vector<1x16x96xf32>
      %76 = arith.truncf %75 : vector<1x16x96xf32> to vector<1x16x96xbf16>
      %cst_80 = arith.constant 0.000000e+00 : bf16
      %77 = vector.broadcast %cst_80 : bf16 to vector<1x16x32xbf16>
      %78 = tpu.concatenate %76, %77 in 2 : vector<1x16x96xbf16>, vector<1x16x32xbf16> -> vector<1x16x128xbf16>
      %c0_81 = arith.constant 0 : index
      %c1_82 = arith.constant 1 : index
      %c0_83 = arith.constant 0 : index
      %79 = vector.load %arg8[%c0_81, %c1_82, %c0_83] : memref<10x18x128xbf16, #tpu.memory_space<vmem>>, vector<1x16x128xbf16>
      tpu.vector_store %arg8[%c0_81, %c1_82, %c0_83], %78 {strides = array<i32>} : memref<10x18x128xbf16, #tpu.memory_space<vmem>>, vector<1x16x128xbf16>,
    } else {
    }
    %c1_i32 = arith.constant 1 : i32
    %10 = arith.cmpi eq, %arg1, %c1_i32 : i32
    %11 = arith.extui %10 : i1 to i32
    %c0_i32_8 = arith.constant 0 : i32
    %12 = arith.cmpi ne, %11, %c0_i32_8 : i32
    scf.if %12 {
      %c9 = arith.constant 9 : index
      %c1_76 = arith.constant 1 : index
      %c0_77 = arith.constant 0 : index
      %74 = vector.load %arg8[%c9, %c1_76, %c0_77] : memref<10x18x128xbf16, #tpu.memory_space<vmem>>, vector<1x16x128xbf16>
      tpu.vector_store %arg8[%c9, %c1_76, %c0_77], %3 {strides = array<i32>} : memref<10x18x128xbf16, #tpu.memory_space<vmem>>, vector<1x16x128xbf16>,
    } else {
    }
    %c1_i32_9 = arith.constant 1 : i32
    %13 = arith.cmpi slt, %arg1, %c1_i32_9 : i32
    %14 = arith.extui %13 : i1 to i32
    %c0_i32_10 = arith.constant 0 : i32
    %15 = arith.cmpi ne, %14, %c0_i32_10 : i32
    scf.if %15 {
      %c0_76 = arith.constant 0 : index
      %c0_77 = arith.constant 0 : index
      %c0_78 = arith.constant 0 : index
      %c0_79 = arith.constant 0 : index
      %74 = vector.load %arg4[%c0_76, %c0_77, %c0_78, %c0_79] : memref<1x1x16x96xf32, #tpu.memory_space<vmem>>, vector<1x1x16x96xf32>
      %75 = vector.shape_cast %74 : vector<1x1x16x96xf32> to vector<1x16x96xf32>
      %76 = arith.truncf %75 : vector<1x16x96xf32> to vector<1x16x96xbf16>
      %cst_80 = arith.constant 0.000000e+00 : bf16
      %77 = vector.broadcast %cst_80 : bf16 to vector<1x16x32xbf16>
      %78 = tpu.concatenate %76, %77 in 2 : vector<1x16x96xbf16>, vector<1x16x32xbf16> -> vector<1x16x128xbf16>
      %c9 = arith.constant 9 : index
      %c1_81 = arith.constant 1 : index
      %c0_82 = arith.constant 0 : index
      %79 = vector.load %arg8[%c9, %c1_81, %c0_82] : memref<10x18x128xbf16, #tpu.memory_space<vmem>>, vector<1x16x128xbf16>
      tpu.vector_store %arg8[%c9, %c1_81, %c0_82], %78 {strides = array<i32>} : memref<10x18x128xbf16, #tpu.memory_space<vmem>>, vector<1x16x128xbf16>,
    } else {
    }
    %c0_11 = arith.constant 0 : index
    %c0_12 = arith.constant 0 : index
    %c0_13 = arith.constant 0 : index
    %c0_14 = arith.constant 0 : index
    %16 = vector.load %arg2[%c0_11, %c0_12, %c0_13, %c0_14] : memref<1x8x16x96xf32, #tpu.memory_space<vmem>>, vector<1x8x16x96xf32>
    %17 = vector.shape_cast %16 : vector<1x8x16x96xf32> to vector<8x16x96xf32>
    %18 = arith.truncf %17 : vector<8x16x96xf32> to vector<8x16x96xbf16>
    %cst_15 = arith.constant 0.000000e+00 : bf16
    %19 = vector.broadcast %cst_15 : bf16 to vector<8x16x32xbf16>
    %20 = tpu.concatenate %18, %19 in 2 : vector<8x16x96xbf16>, vector<8x16x32xbf16> -> vector<8x16x128xbf16>
    %c1 = arith.constant 1 : index
    %c1_16 = arith.constant 1 : index
    %c0_17 = arith.constant 0 : index
    %21 = vector.load %arg8[%c1, %c1_16, %c0_17] : memref<10x18x128xbf16, #tpu.memory_space<vmem>>, vector<8x16x128xbf16>
    tpu.vector_store %arg8[%c1, %c1_16, %c0_17], %20 {strides = array<i32>} : memref<10x18x128xbf16, #tpu.memory_space<vmem>>, vector<8x16x128xbf16>,
    %c0_18 = arith.constant 0 : index
    %c0_19 = arith.constant 0 : index
    %c0_20 = arith.constant 0 : index
    %22 = vector.load %arg8[%c0_18, %c0_19, %c0_20] : memref<10x18x128xbf16, #tpu.memory_space<vmem>>, vector<8x16x128xbf16>
    %23 = vector.shape_cast %22 : vector<8x16x128xbf16> to vector<128x128xbf16>
    %c0_21 = arith.constant 0 : index
    %c0_22 = arith.constant 0 : index
    %24 = vector.load %arg9[%c0_21, %c0_22] : memref<128x1152xbf16, #tpu.memory_space<vmem>>, vector<128x128xbf16>
    tpu.vector_store %arg9[%c0_21, %c0_22], %23 {strides = array<i32>} : memref<128x1152xbf16, #tpu.memory_space<vmem>>, vector<128x128xbf16>,
    %c0_23 = arith.constant 0 : index
    %c1_24 = arith.constant 1 : index
    %c0_25 = arith.constant 0 : index
    %25 = vector.load %arg8[%c0_23, %c1_24, %c0_25] : memref<10x18x128xbf16, #tpu.memory_space<vmem>>, vector<8x16x128xbf16>
    %26 = vector.shape_cast %25 : vector<8x16x128xbf16> to vector<128x128xbf16>
    %c0_26 = arith.constant 0 : index
    %c128 = arith.constant 128 : index
    %27 = vector.load %arg9[%c0_26, %c128] : memref<128x1152xbf16, #tpu.memory_space<vmem>>, vector<128x128xbf16>
    tpu.vector_store %arg9[%c0_26, %c128], %26 {strides = array<i32>} : memref<128x1152xbf16, #tpu.memory_space<vmem>>, vector<128x128xbf16>,
    %c0_27 = arith.constant 0 : index
    %c2 = arith.constant 2 : index
    %c0_28 = arith.constant 0 : index
    %28 = vector.load %arg8[%c0_27, %c2, %c0_28] : memref<10x18x128xbf16, #tpu.memory_space<vmem>>, vector<8x16x128xbf16>
    %29 = vector.shape_cast %28 : vector<8x16x128xbf16> to vector<128x128xbf16>
    %c0_29 = arith.constant 0 : index
    %c256 = arith.constant 256 : index
    %30 = vector.load %arg9[%c0_29, %c256] : memref<128x1152xbf16, #tpu.memory_space<vmem>>, vector<128x128xbf16>
    tpu.vector_store %arg9[%c0_29, %c256], %29 {strides = array<i32>} : memref<128x1152xbf16, #tpu.memory_space<vmem>>, vector<128x128xbf16>,
    %c1_30 = arith.constant 1 : index
    %c0_31 = arith.constant 0 : index
    %c0_32 = arith.constant 0 : index
    %31 = vector.load %arg8[%c1_30, %c0_31, %c0_32] : memref<10x18x128xbf16, #tpu.memory_space<vmem>>, vector<8x16x128xbf16>
    %32 = vector.shape_cast %31 : vector<8x16x128xbf16> to vector<128x128xbf16>
    %c0_33 = arith.constant 0 : index
    %c384 = arith.constant 384 : index
    %33 = vector.load %arg9[%c0_33, %c384] : memref<128x1152xbf16, #tpu.memory_space<vmem>>, vector<128x128xbf16>
    tpu.vector_store %arg9[%c0_33, %c384], %32 {strides = array<i32>} : memref<128x1152xbf16, #tpu.memory_space<vmem>>, vector<128x128xbf16>,
    %c1_34 = arith.constant 1 : index
    %c1_35 = arith.constant 1 : index
    %c0_36 = arith.constant 0 : index
    %34 = vector.load %arg8[%c1_34, %c1_35, %c0_36] : memref<10x18x128xbf16, #tpu.memory_space<vmem>>, vector<8x16x128xbf16>
    %35 = vector.shape_cast %34 : vector<8x16x128xbf16> to vector<128x128xbf16>
    %c0_37 = arith.constant 0 : index
    %c512 = arith.constant 512 : index
    %36 = vector.load %arg9[%c0_37, %c512] : memref<128x1152xbf16, #tpu.memory_space<vmem>>, vector<128x128xbf16>
    tpu.vector_store %arg9[%c0_37, %c512], %35 {strides = array<i32>} : memref<128x1152xbf16, #tpu.memory_space<vmem>>, vector<128x128xbf16>,
    %c1_38 = arith.constant 1 : index
    %c2_39 = arith.constant 2 : index
    %c0_40 = arith.constant 0 : index
    %37 = vector.load %arg8[%c1_38, %c2_39, %c0_40] : memref<10x18x128xbf16, #tpu.memory_space<vmem>>, vector<8x16x128xbf16>
    %38 = vector.shape_cast %37 : vector<8x16x128xbf16> to vector<128x128xbf16>
    %c0_41 = arith.constant 0 : index
    %c640 = arith.constant 640 : index
    %39 = vector.load %arg9[%c0_41, %c640] : memref<128x1152xbf16, #tpu.memory_space<vmem>>, vector<128x128xbf16>
    tpu.vector_store %arg9[%c0_41, %c640], %38 {strides = array<i32>} : memref<128x1152xbf16, #tpu.memory_space<vmem>>, vector<128x128xbf16>,
    %c2_42 = arith.constant 2 : index
    %c0_43 = arith.constant 0 : index
    %c0_44 = arith.constant 0 : index
    %40 = vector.load %arg8[%c2_42, %c0_43, %c0_44] : memref<10x18x128xbf16, #tpu.memory_space<vmem>>, vector<8x16x128xbf16>
    %41 = vector.shape_cast %40 : vector<8x16x128xbf16> to vector<128x128xbf16>
    %c0_45 = arith.constant 0 : index
    %c768 = arith.constant 768 : index
    %42 = vector.load %arg9[%c0_45, %c768] : memref<128x1152xbf16, #tpu.memory_space<vmem>>, vector<128x128xbf16>
    tpu.vector_store %arg9[%c0_45, %c768], %41 {strides = array<i32>} : memref<128x1152xbf16, #tpu.memory_space<vmem>>, vector<128x128xbf16>,
    %c2_46 = arith.constant 2 : index
    %c1_47 = arith.constant 1 : index
    %c0_48 = arith.constant 0 : index
    %43 = vector.load %arg8[%c2_46, %c1_47, %c0_48] : memref<10x18x128xbf16, #tpu.memory_space<vmem>>, vector<8x16x128xbf16>
    %44 = vector.shape_cast %43 : vector<8x16x128xbf16> to vector<128x128xbf16>
    %c0_49 = arith.constant 0 : index
    %c896 = arith.constant 896 : index
    %45 = vector.load %arg9[%c0_49, %c896] : memref<128x1152xbf16, #tpu.memory_space<vmem>>, vector<128x128xbf16>
    tpu.vector_store %arg9[%c0_49, %c896], %44 {strides = array<i32>} : memref<128x1152xbf16, #tpu.memory_space<vmem>>, vector<128x128xbf16>,
    %c2_50 = arith.constant 2 : index
    %c2_51 = arith.constant 2 : index
    %c0_52 = arith.constant 0 : index
    %46 = vector.load %arg8[%c2_50, %c2_51, %c0_52] : memref<10x18x128xbf16, #tpu.memory_space<vmem>>, vector<8x16x128xbf16>
    %47 = vector.shape_cast %46 : vector<8x16x128xbf16> to vector<128x128xbf16>
    %c0_53 = arith.constant 0 : index
    %c1024 = arith.constant 1024 : index
    %48 = vector.load %arg9[%c0_53, %c1024] : memref<128x1152xbf16, #tpu.memory_space<vmem>>, vector<128x128xbf16>
    tpu.vector_store %arg9[%c0_53, %c1024], %47 {strides = array<i32>} : memref<128x1152xbf16, #tpu.memory_space<vmem>>, vector<128x128xbf16>,
    %c0_54 = arith.constant 0 : index
    %c0_55 = arith.constant 0 : index
    %49 = vector.load %arg9[%c0_54, %c0_55] : memref<128x1152xbf16, #tpu.memory_space<vmem>>, vector<128x1152xbf16>
    %c0_56 = arith.constant 0 : index
    %c0_57 = arith.constant 0 : index
    %50 = vector.load %arg5[%c0_56, %c0_57] : memref<1152x32xbf16, #tpu.memory_space<vmem>>, vector<1152x32xbf16>
    %cst_58 = arith.constant dense<0.000000e+00> : vector<128x32xf32>
    %51 = tpu.matmul %49, %50, %cst_58 {dimension_numbers = #tpu.dot_dimension_numbers<[1], [0], [0], [1], [0, 0, 1, 1], [], []>} : vector<128x1152xbf16>, vector<1152x32xbf16>, vector<128x32xf32> -> vector<128x32xf32>
    %c0_59 = arith.constant 0 : index
    %c0_60 = arith.constant 0 : index
    %52 = vector.load %arg6[%c0_59, %c0_60] : memref<1x32xf32, #tpu.memory_space<vmem>>, vector<1x32xf32>
    %53 = vector.broadcast %52 : vector<1x32xf32> to vector<128x32xf32>
    %54 = arith.addf %51, %53 : vector<128x32xf32>
    %cst_61 = arith.constant 0.000000e+00 : f32
    %55 = vector.broadcast %cst_61 : f32 to vector<128x32xf32>
    %56 = arith.cmpf oge, %54, %55 : vector<128x32xf32>
    %cst_62 = arith.constant 1.000000e-01 : f32
    %57 = vector.broadcast %cst_62 : f32 to vector<128x32xf32>
    %58 = arith.mulf %57, %54 : vector<128x32xf32>
    %59 = arith.select %56, %54, %58 : vector<128x32xi1>, vector<128x32xf32>
    %60 = vector.shape_cast %59 : vector<128x32xf32> to vector<8x16x32xf32>
    %c0_63 = arith.constant 0 : index
    %c0_64 = arith.constant 0 : index
    %c0_65 = arith.constant 0 : index
    %61 = vector.load %arg10[%c0_63, %c0_64, %c0_65] : memref<8x16x32xf32, #tpu.memory_space<vmem>>, vector<8x16x32xf32>
    tpu.vector_store %arg10[%c0_63, %c0_64, %c0_65], %60 {strides = array<i32>} : memref<8x16x32xf32, #tpu.memory_space<vmem>>, vector<8x16x32xf32>,
    %c0_i32_66 = arith.constant 0 : i32
    %c8_i32 = arith.constant 8 : i32
    %62 = arith.muli %c0_i32_66, %c8_i32 : i32
    %63 = tpu.assume_multiple %62, 8 : i32
    %c0_67 = arith.constant 0 : index
    %64 = arith.index_cast %63 : i32 to index
    %c0_68 = arith.constant 0 : index
    %c0_69 = arith.constant 0 : index
    %65 = vector.load %arg2[%c0_67, %64, %c0_68, %c0_69] : memref<1x8x16x96xf32, #tpu.memory_space<vmem>>, vector<1x8x16x96xf32>
    %66 = vector.shape_cast %65 : vector<1x8x16x96xf32> to vector<8x16x96xf32>
    %67 = arith.index_cast %63 : i32 to index
    %c0_70 = arith.constant 0 : index
    %c0_71 = arith.constant 0 : index
    %68 = vector.load %arg10[%67, %c0_70, %c0_71] : memref<8x16x32xf32, #tpu.memory_space<vmem>>, vector<8x16x32xf32>
    %69 = tpu.concatenate %66, %68 in 2 : vector<8x16x96xf32>, vector<8x16x32xf32> -> vector<8x16x128xf32>
    %c0_72 = arith.constant 0 : index
    %70 = arith.index_cast %63 : i32 to index
    %c0_73 = arith.constant 0 : index
    %c0_74 = arith.constant 0 : index
    %71 = vector.load %arg7[%c0_72, %70, %c0_73, %c0_74] : memref<1x8x16x128xf32, #tpu.memory_space<vmem>>, vector<1x8x16x128xf32>
    %72 = vector.shape_cast %71 : vector<1x8x16x128xf32> to vector<8x16x128xf32>
    %73 = vector.shape_cast %69 : vector<8x16x128xf32> to vector<1x8x16x128xf32>
    tpu.vector_store %arg7[%c0_72, %70, %c0_73, %c0_74], %73 {strides = array<i32>} : memref<1x8x16x128xf32, #tpu.memory_space<vmem>>, vector<1x8x16x128xf32>,
    %c1_i32_75 = arith.constant 1 : i32
    return
  }
  func.func @transform_0(%arg0: i32, %arg1: i32) -> (i32, i32, i32, i32) {
    %c0_i32 = arith.constant 0 : i32
    %c0_i32_0 = arith.constant 0 : i32
    %c0_i32_1 = arith.constant 0 : i32
    return %arg0, %arg1, %c0_i32, %c0_i32_0 : i32, i32, i32, i32
  }
  func.func @transform_1(%arg0: i32, %arg1: i32) -> (i32, i32, i32, i32) {
    %c8_i32 = arith.constant 8 : i32
    %0 = arith.muli %arg1, %c8_i32 : i32
    %c1_i32 = arith.constant 1 : i32
    %1 = arith.subi %0, %c1_i32 : i32
    %c0_i32 = arith.constant 0 : i32
    %2 = arith.maxsi %1, %c0_i32 : i32
    %c0_i32_0 = arith.constant 0 : i32
    %c0_i32_1 = arith.constant 0 : i32
    %c0_i32_2 = arith.constant 0 : i32
    return %arg0, %2, %c0_i32_0, %c0_i32_1 : i32, i32, i32, i32
  }
  func.func @transform_2(%arg0: i32, %arg1: i32) -> (i32, i32, i32, i32) {
    %c8_i32 = arith.constant 8 : i32
    %0 = arith.muli %arg1, %c8_i32 : i32
    %c8_i32_0 = arith.constant 8 : i32
    %1 = arith.addi %0, %c8_i32_0 : i32
    %c15_i32 = arith.constant 15 : i32
    %2 = arith.minsi %1, %c15_i32 : i32
    %c0_i32 = arith.constant 0 : i32
    %c0_i32_1 = arith.constant 0 : i32
    %c0_i32_2 = arith.constant 0 : i32
    return %arg0, %2, %c0_i32, %c0_i32_1 : i32, i32, i32, i32
  }
  func.func @transform_3(%arg0: i32, %arg1: i32) -> (i32, i32) {
    %c0_i32 = arith.constant 0 : i32
    %c0_i32_0 = arith.constant 0 : i32
    %c0_i32_1 = arith.constant 0 : i32
    return %c0_i32, %c0_i32_0 : i32, i32
  }
  func.func @transform_4(%arg0: i32, %arg1: i32) -> (i32, i32) {
    %c0_i32 = arith.constant 0 : i32
    %c0_i32_0 = arith.constant 0 : i32
    %c0_i32_1 = arith.constant 0 : i32
    return %c0_i32, %c0_i32_0 : i32, i32
  }
  func.func @transform_5(%arg0: i32, %arg1: i32) -> (i32, i32, i32, i32) {
    %c0_i32 = arith.constant 0 : i32
    %c0_i32_0 = arith.constant 0 : i32
    %c0_i32_1 = arith.constant 0 : i32
    return %arg0, %arg1, %c0_i32, %c0_i32_0 : i32, i32, i32, i32
  }
}

</mosaic_0001>

<bundles_post_ra>
// kernel: one_conv_forward_nhwc.1
= control target key start
LH: loop header
LB: loop body
LE: loop exit
PB: predicated region body
PF: predicated region fallthrough
CT: control target
= control target key end

     0   :  { %s5604_s0 = inlined_call_operand.vmem [shape: f32[2,16,16,96], index: 0, kind: input, shape index: {}, may-alias: {0,1,2}]   ;;  %s5605_s1 = inlined_call_operand.vmem [shape: f32[2,16,16,96], index: 1, kind: input, shape index: {}, may-alias: {0,1,2}]   ;;  %s5606_s2 = inlined_call_operand.vmem [shape: f32[2,16,16,96], index: 2, kind: input, shape index: {}, may-alias: {0,1,2}]   ;;  %s5607_s3 = inlined_call_operand.vmem [shape: bf16[1152,32], index: 3, kind: input, shape index: {}]   ;;  %s5608_s4 = inlined_call_operand.vmem [shape: f32[1,32], index: 4, kind: input, shape index: {}]   ;;  %s5609_s5 = inlined_call_operand.hbm [shape: f32[2,16,16,128], index: 5, kind: output, shape index: {}]  }
   0x1   :  { %5613 = sst [smem:[#allocation10_spill]] %s5604_s0 }
   0x2   :  { %10 = vsyncpa [#allocation6], 0 }
   0x3   :  { %12 = vsyncpa [#allocation6 + $0x1], 0  ;;  %s4636_s18 = smov 0   ;;  %s4638_s19 = smov 0  }
   0x4   :  { %s4640_s20 = smov 0   ;;  %s4642_s21 = smov 0  }
   0x5   :  { %s4644_s22 = smov 0   ;;  %s4646_s23 = smov 0  }
   0x6   :  { %s4648_s24 = smov 0   ;;  %s4650_s25 = smov 0  }
   0x7 LB: > { %s3776_s26 = sadd.s32 4294967295, %s4598_s25   ;;  %s3777_s27 = sadd.s32 4294967294, %s4598_s25   ;;  %s4598_s25 = sphi %s4650_s25, %s18_s25   ;;  %s4594_s24 = sphi %s4648_s24, %s5641_s24   ;;  %s4590_s23 = sphi %s4646_s23, %s5640_s23   ;;  %s4586_s22 = sphi %s4644_s22, %s5639_s22   ;;  %s4582_s21 = sphi %s4642_s21, %s5638_s21   ;;  %s4578_s20 = sphi %s4640_s20, %s5637_s20   ;;  %s4574_s19 = sphi %s4638_s19, %s5636_s19   ;;  %s4570_s18 = sphi %s4636_s18, %s5635_s18  }
   0x8   : > { %s27_s28 = sadd.s32 1, %s4590_s23  ;;  %s30_s29 = sadd.s32 1, %s4594_s24 }
   0x9   : > { %p28_p0 = scmp.ge.s32.totalorder %s27_s28, 2  ;;  %p191_p1 = scmp.ne.s32.totalorder %s4578_s20, %s4574_s19 }
   0xa   : > { %p192_p2 = scmp.eq.s32.totalorder %s3776_s26, 3  ;;  %p197_p5 = scmp.ne.s32.totalorder %s4574_s19, %s4570_s18 }
   0xb   : > { %s5643_s28 = smov (%p28_p0, %s27_s28), 0  ;;  %s5645_s29 = smov (!%p28_p0, %s30_s29), %s4594_s24 }
   0xc   : > { %5614 = sst [smem:[#allocation8_spill]] %s5643_s28  ;;  %s177_s30 = ssub.s32 %s4590_s23, %s5643_s28 }
   0xd   : > { %p4687_p3 = por %p192_p2, %p191_p1  ;;  %p32_p4 = scmp.ge.s32.totalorder %s5645_s29, 2 }
   0xe   : > { %p198_p6 = scmp.eq.s32.totalorder %s3777_s27, 3  ;;  %p3786_p7 = scmp.ge.s32.totalorder %s4598_s25, 1 }
   0xf   : > { %s5647_s29 = smov (%p32_p4, %s5645_s29), 0  ;;  %p276_p9 = scmp.lt.s32.totalorder %s4598_s25, 5 }
  0x10   : > { %5616 = sst [smem:[#allocation9_spill]] %s5647_s29  ;;  %p4696_p8 = por %p198_p6, %p197_p5 }
  0x11   : > { %s176_s8 = ssub.s32 %s4594_s24, %s5647_s29  ;;  %s181_s9 = sadd.s32 1, %s4578_s20 }
  0x12   : > { %s178_s10 = sor.u32 %s177_s30, %s176_s8  ;;  %p277_p10 = pnand %p3786_p7, %p276_p9 }
  0x13   : > { %p179_p11 = scmp.eq.s32.totalorder %s178_s10, 0  ;;  %s5610_s12 = sand.u32 (!%p277_p10), 1, %s4574_s19   ;;  %vm382_vm0 = vcmask (!%p277_p10), 1040384   ;;  %vm383_vm1 = vsmask.f32 (!%p277_p10), 256 }
  0x14   : > { %280 = sbr.rel (%p277_p10) target bundleno = 678 (0x2a6), region = 40  ;;  %s4709_s13 = sshll.u32 (!%p277_p10), %s4582_s21, 3  ;;  %vm4718_vm2 = vmand (!%p277_p10), %vm382_vm0, %vm383_vm1  ;;  %v385_v1 = vld [vmem:[#allocation2] sm:$0x1] (!%p277_p10)  ;;  %v388_v2 = vld [vmem:[#allocation2 + $0xc] sm:$0x1] (!%p277_p10) }
  0x15   : > { %s4705_s11 = scalar_select %p179_p11, %s4578_s20, %s181_s9  }
  0x16   : > { %s4713_s14 = sshll.u32 (!%p277_p10), %s5610_s12, 7  ;;  %p336_p12 = scmp.lt.s32.totalorder (!%p277_p10), %s4586_s22, 1  ;;  %v386_v3 = vsel (!%p277_p10), %vm4718_vm2, 0, %v385_v1  ;;  %v389_v4 = vsel (!%p277_p10), %vm4718_vm2, 0, %v388_v2  ;;  %v391_v5 = vld [vmem:[#allocation2 + $0x18] sm:$0x1] (!%p277_p10) }
  0x17   : > { %p338_p13 = scmp.lt.s32.totalorder (!%p277_p10), %s4709_s13, 15  ;;  %387 = vst [vmem:[#allocation2] sm:$0x1] (!%p277_p10), %v386_v3  ;;  %390 = vst [vmem:[#allocation2 + $0xc] sm:$0x1] (!%p277_p10), %v389_v4  ;;  %v392_v6 = vsel (!%p277_p10), %vm4718_vm2, 0, %v391_v5 }
  0x18   : > { %v394_v7 = vld [vmem:[#allocation2 + $0x24] sm:$0x1] (!%p277_p10)  ;;  %v397_v8 = vld [vmem:[#allocation2 + $0x30] sm:$0x1] (!%p277_p10)  ;;  %393 = vst [vmem:[#allocation2 + $0x18] sm:$0x1] (!%p277_p10), %v392_v6 }
  0x19   : > { %v395_v9 = vsel (!%p277_p10), %vm4718_vm2, 0, %v394_v7  ;;  %v398_v10 = vsel (!%p277_p10), %vm4718_vm2, 0, %v397_v8  ;;  %v400_v11 = vld [vmem:[#allocation2 + $0x3c] sm:$0x1] (!%p277_p10)  ;;  %s4738_s26 = sadd.s32 (!%p277_p10), 4294967295, %s4709_s13  ;;  %s364_s9 = sadd.s32 (!%p277_p10), 8, %s4709_s13 }
  0x1a   : > { %396 = vst [vmem:[#allocation2 + $0x24] sm:$0x1] (!%p277_p10), %v395_v9  ;;  %399 = vst [vmem:[#allocation2 + $0x30] sm:$0x1] (!%p277_p10), %v398_v10  ;;  %v401_v12 = vsel (!%p277_p10), %vm4718_vm2, 0, %v400_v11  ;;  %p348_p0 = scmp.gt.s32.totalorder (!%p277_p10), %s4738_s26, 0 }
  0x1b   : > { %s337_s15 = scalar_select %p336_p12, %s4586_s22, 1  ;;  %v403_v13 = vld [vmem:[#allocation2 + $0x48] sm:$0x1]  ;;  %402 = vst [vmem:[#allocation2 + $0x3c] sm:$0x1] %v401_v12 }
  0x1c   : > { %s339_s16 = scalar_select %p338_p13, %s4709_s13, 15  ;;  %v404_v14 = vsel %vm4718_vm2, 0, %v403_v13  ;;  %v406_v15 = vld [vmem:[#allocation2 + $0x54] sm:$0x1]  ;;  %v409_v17 = vld [vmem:[#allocation2 + $0x60] sm:$0x1] }
  0x1d   : > { %s4735_s17 = sshll.u32 %s337_s15, 5  ;;  %p3794_p1 = scmp.lt.s32.totalorder %s4738_s26, 15  ;;  %405 = vst [vmem:[#allocation2 + $0x48] sm:$0x1] %v404_v14  ;;  %v407_v16 = vsel %vm4718_vm2, 0, %v406_v15  ;;  %v410_v19 = vsel %vm4718_vm2, 0, %v409_v17 }
  0x1e   : > { %s3789_s27 = sshll.u32 %s339_s16, 1  ;;  %v412_v18 = vld [vmem:[#allocation2 + $0x6c] sm:$0x1]  ;;  %408 = vst [vmem:[#allocation2 + $0x54] sm:$0x1] %v407_v16  ;;  %s5620_s0 = sld [smem:[#allocation10_spill]] }
  0x1f   : > { %s342_s30 = sadd.s32 %s4735_s17, %s3789_s27  ;;  %v413_v20 = vsel %vm4718_vm2, 0, %v412_v18  ;;  %vm415_vm3 = vsmask.f32 7938  ;;  %p4759_p2 = scmp.lt.s32.totalorder %s364_s9, 15  ;;  %411 = vst [vmem:[#allocation2 + $0x60] sm:$0x1] %v410_v19 }
  0x20   : > { %s3791_s8 = sshll.u32 %s342_s30, 3  ;;  %414 = vst [vmem:[#allocation2 + $0x6c] sm:$0x1] %v413_v20  ;;  %vm4765_vm4 = vmand %vm382_vm0, %vm415_vm3  ;;  %v417_v22 = vld [vmem:[#allocation2 + $0x8] sm:$0x1]  ;;  %s4809_s28 = scalar_lea.vmem [#allocation5], %s4713_s14 }
  0x21   : > { %v420_v23 = vld [vmem:[#allocation2 + $0x14] sm:$0x1]  ;;  %s349_s13 = scalar_select %p348_p0, %s4738_s26, 0  ;;  %v418_v24 = vsel %vm4765_vm4, 0, %v417_v22  ;;  %v423_v26 = vld [vmem:[#allocation2 + $0x20] sm:$0x1] }
  0x22   : > { %v421_v25 = vsel %vm4765_vm4, 0, %v420_v23  ;;  %s5649_s9 = smov (!%p4759_p2, %s364_s9), 15  ;;  %419 = vst [vmem:[#allocation2 + $0x8] sm:$0x1] %v418_v24  ;;  %v424_v27 = vsel %vm4765_vm4, 0, %v423_v26  ;;  %p3809_p4 = scmp.ne.s32.totalorder %s4582_s21, 0 }
  0x23   : > { %422 = vst [vmem:[#allocation2 + $0x14] sm:$0x1] %v421_v25  ;;  %v426_v28 = vld [vmem:[#allocation2 + $0x2c] sm:$0x1]  ;;  %v429_v29 = vld [vmem:[#allocation2 + $0x38] sm:$0x1] }
  0x24   : > { %s4757_s16 = scalar_lea.vmem %s5620_s0, %s3791_s8  ;;  %s5651_s13 = smov (!%p3794_p1, %s349_s13), 15  ;;  %425 = vst [vmem:[#allocation2 + $0x20] sm:$0x1] %v424_v27  ;;  %v427_v30 = vsel %vm4765_vm4, 0, %v426_v28  ;;  %v430_v31 = vsel %vm4765_vm4, 0, %v429_v29  ;;  %vm451_vm5 = vcmask (!%p3809_p4), 1043456  }
  0x25   : > { %v432_v32 = vld [vmem:[#allocation2 + $0x44] sm:$0x1]  ;;  %s5653_s9 = smov (!%p4759_p2, %s5649_s9), 15  ;;  %428 = vst [vmem:[#allocation2 + $0x2c] sm:$0x1] %v427_v30  ;;  %s3799_s26 = sshll.u32 %s5651_s13, 1  ;;  %vm452_vm6 = vmand (!%p3809_p4), %vm451_vm5, %vm415_vm3 }
  0x26   : > { %431 = vst [vmem:[#allocation2 + $0x38] sm:$0x1] %v430_v31  ;;  %v433_v33 = vsel %vm4765_vm4, 0, %v432_v32  ;;  %v435_v34 = vld [vmem:[#allocation2 + $0x50] sm:$0x1]  ;;  %s356_s30 = sadd.s32 %s3799_s26, %s4735_s17  ;;  %s3806_s8 = sshll.u32 %s5653_s9, 1 }
  0x27   : > { %v438_v35 = vld [vmem:[#allocation2 + $0x5c] sm:$0x1]  ;;  %434 = vst [vmem:[#allocation2 + $0x44] sm:$0x1] %v433_v33  ;;  %v436_v36 = vsel %vm4765_vm4, 0, %v435_v34  ;;  %s3801_s10 = sshll.u32 %s356_s30, 3  ;;  %s373_s15 = sadd.s32 %s3806_s8, %s4735_s17 }
  0x28   : > { %v439_v37 = vsel %vm4765_vm4, 0, %v438_v35  ;;  %v441_v38 = vld [vmem:[#allocation2 + $0x68] sm:$0x1]  ;;  %437 = vst [vmem:[#allocation2 + $0x50] sm:$0x1] %v436_v36  ;;  %s358_s12 = scalar_lea.vmem %s5605_s1, %s3801_s10  ;;  %s3808_s0 = sshll.u32 %s373_s15, 3 }
  0x29   : > { %440 = vst [vmem:[#allocation2 + $0x5c] sm:$0x1] %v439_v37  ;;  %v442_v39 = vsel %vm4765_vm4, 0, %v441_v38  ;;  %v444_v40 = vld [vmem:[#allocation2 + $0x74] sm:$0x1]  ;;  %s4806_s29 = scalar_lea.vmem %s5606_s2, %s3808_s0  ;;  %450 = sbr.rel (%p3809_p4) target bundleno = 48 (0x30), region = 44 }
  0x2a   : > { %443 = vst [vmem:[#allocation2 + $0x68] sm:$0x1] %v442_v39  ;;  %v445_v41 = vsel %vm4765_vm4, 0, %v444_v40  ;;  %v453_v42 = vld [vmem:[#allocation2] sm:$0xf] (!%p3809_p4)  ;;  %v4600_v44 = vmov (!%p3809_p4), 0  }
  0x2b   : > { %446 = vst [vmem:[#allocation2 + $0x74] sm:$0x1] %v445_v41  ;;  %v457_v43 = vld [vmem:[#allocation2 + $0x8] sm:$0x1] (!%p3809_p4)  ;;  %456 = vst [vmem:[#allocation2 + $0x4] sm:$0xf] (!%p3809_p4), %v4600_v44 }
  0x2c   : > { %v458_v45 = vsel (!%p3809_p4), %vm4718_vm2, 0, %v457_v43  ;;  %v454_v46 = vsel (!%p3809_p4), %vm452_vm6, 0, %v453_v42 }
  0x2d   : > { %459 = vst [vmem:[#allocation2 + $0x8] sm:$0x1] (!%p3809_p4), %v458_v45  ;;  %455 = vst [vmem:[#allocation2] sm:$0xf] (!%p3809_p4), %v454_v46 }
  0x30 PF: > { %p3810_p5 = scmp.le.s32.totalorder %s4582_s21, 0 }
  0x31   : > { %v464_v47 = vld [vmem:[%s358_s12] sm:$0xff] (!%p3810_p5)  ;;  %v465_v48 = vld [vmem:[%s358_s12 + $0x8] sm:$0xff] (!%p3810_p5)  ;;  %vm467_vm7 = vcmask (!%p3810_p5), 785408   ;;  %vm498_vm8 = vcmask (!%p3810_p5), 1043456   ;;  %vm476_vm9 = vsmask.f32 (!%p3810_p5), 4368 }
  0x32   : > { %463 = sbr.rel (%p3810_p5) target bundleno = 64 (0x40), region = 48  ;;  %v466_v49 = vpack.c.bf16 (!%p3810_p5), %v465_v48, %v464_v47  ;;  %vm499_vm10 = vmand (!%p3810_p5), %vm498_vm8, %vm415_vm3 }
  0x33   : > { %vm477_vm11 = vmor (!%p3810_p5), %vm383_vm1, %vm476_vm9 }
  0x34   : > { %v470_v50 = vsel (!%p3810_p5), %vm467_vm7, %v466_v49, 0  ;;  %v500_v59 = vld [vmem:[#allocation2] sm:$0xf] (!%p3810_p5)  ;;  %v504_v60 = vld [vmem:[#allocation2 + $0x8] sm:$0x1] (!%p3810_p5) }
  0x35   : > { %v3811_v51 = vcombine.low (!%p3810_p5), %v470_v50, %v470_v50  ;;  %v3812_v52 = vcombine.high (!%p3810_p5), %v470_v50, %v470_v50 }
  0x37   : > { %v479_v53 = vshrl.u32 (!%p3810_p5), %v3811_v51, 16  ;;  %v482_v54 = vshll.u32 (!%p3810_p5), %v3811_v51, 16  ;;  %v487_v55 = vshrl.u32 (!%p3810_p5), %v3812_v52, 16  ;;  %v490_v56 = vshll.u32 (!%p3810_p5), %v3812_v52, 16 }
  0x39   : > { %v481_v57 = vrot.slane %v479_v53, 7  ;;  %v489_v58 = vrot.slane %v487_v55, 7 }
  0x3b   : > { %v484_v61 = vor.u32 %v482_v54, %v481_v57  ;;  %v485_v62 = vrot.slane %v481_v57, 4  ;;  %v492_v63 = vor.u32 %v490_v56, %v489_v58  ;;  %v494_v1 = vrot.slane %v489_v58, 4 }
  0x3d   : > { %v501_v2 = vsel %vm499_vm10, %v484_v61, %v500_v59  ;;  %v493_v3 = vsel %vm477_vm11, %v485_v62, %v492_v63  ;;  %v505_v4 = vsel %vm4718_vm2, %v494_v1, %v504_v60 }
  0x3e   : > { %502 = vst [vmem:[#allocation2] sm:$0xf] %v501_v2  ;;  %503 = vst [vmem:[#allocation2 + $0x4] sm:$0xf] %v493_v3 }
  0x3f   : > { %506 = vst [vmem:[#allocation2 + $0x8] sm:$0x1] %v505_v4 }
  0x40 PF: > { %p3813_p6 = scmp.ne.s32.totalorder %s4582_s21, 1 }
  0x41   : > { %vm512_vm12 = vcmask (!%p3813_p6), 1043456   ;;  %v514_v5 = vld [vmem:[#allocation2 + $0x6c] sm:$0xf] (!%p3813_p6)  ;;  %v518_v6 = vld [vmem:[#allocation2 + $0x74] sm:$0x1] (!%p3813_p6)  ;;  %v4601_v7 = vmov (!%p3813_p6), 0  }
  0x42   : > { %510 = sbr.rel (%p3813_p6) target bundleno = 73 (0x49), region = 52  ;;  %vm513_vm13 = vmand (!%p3813_p6), %vm512_vm12, %vm415_vm3  ;;  %517 = vst [vmem:[#allocation2 + $0x70] sm:$0xf] (!%p3813_p6), %v4601_v7  ;;  %v519_v8 = vsel (!%p3813_p6), %vm4718_vm2, 0, %v518_v6 }
  0x43   : > { %v515_v9 = vsel (!%p3813_p6), %vm513_vm13, 0, %v514_v5  ;;  %520 = vst [vmem:[#allocation2 + $0x74] sm:$0x1] (!%p3813_p6), %v519_v8 }
  0x44   : > { %516 = vst [vmem:[#allocation2 + $0x6c] sm:$0xf] (!%p3813_p6), %v515_v9 }
  0x49 PF: > { %p3814_p7 = scmp.ge.s32.totalorder %s4582_s21, 1 }
  0x4a   : > { %v525_v10 = vld [vmem:[%s4806_s29] sm:$0xff] (!%p3814_p7)  ;;  %v526_v11 = vld [vmem:[%s4806_s29 + $0x8] sm:$0xff] (!%p3814_p7)  ;;  %vm528_vm14 = vcmask (!%p3814_p7), 785408   ;;  %vm560_vm15 = vcmask (!%p3814_p7), 1043456   ;;  %vm537_vm0 = vsmask.f32 (!%p3814_p7), 4368 }
  0x4b   : > { %524 = sbr.rel (%p3814_p7) target bundleno = 89 (0x59), region = 56  ;;  %v527_v12 = vpack.c.bf16 (!%p3814_p7), %v526_v11, %v525_v10  ;;  %vm561_vm4 = vmand (!%p3814_p7), %vm560_vm15, %vm415_vm3  ;;  %v562_v22 = vld [vmem:[#allocation2 + $0x6c] sm:$0xf] (!%p3814_p7)  ;;  %v566_v23 = vld [vmem:[#allocation2 + $0x74] sm:$0x1] (!%p3814_p7) }
  0x4c   : > { %vm538_vm5 = vmor (!%p3814_p7), %vm383_vm1, %vm537_vm0 }
  0x4d   : > { %v531_v13 = vsel (!%p3814_p7), %vm528_vm14, %v527_v12, 0 }
  0x4e   : > { %v3815_v14 = vcombine.low (!%p3814_p7), %v531_v13, %v531_v13  ;;  %v3816_v15 = vcombine.high (!%p3814_p7), %v531_v13, %v531_v13 }
  0x50   : > { %v540_v16 = vshrl.u32 (!%p3814_p7), %v3815_v14, 16  ;;  %v543_v17 = vshll.u32 (!%p3814_p7), %v3815_v14, 16  ;;  %v548_v18 = vshrl.u32 (!%p3814_p7), %v3816_v15, 16  ;;  %v551_v19 = vshll.u32 (!%p3814_p7), %v3816_v15, 16 }
  0x52   : > { %v542_v20 = vrot.slane %v540_v16, 7  ;;  %v550_v21 = vrot.slane %v548_v18, 7 }
  0x54   : > { %v545_v24 = vor.u32 %v543_v17, %v542_v20  ;;  %v546_v25 = vrot.slane %v542_v20, 4  ;;  %v553_v26 = vor.u32 %v551_v19, %v550_v21  ;;  %v555_v27 = vrot.slane %v550_v21, 4 }
  0x56   : > { %v563_v28 = vsel %vm561_vm4, %v545_v24, %v562_v22  ;;  %v554_v29 = vsel %vm538_vm5, %v546_v25, %v553_v26  ;;  %v567_v30 = vsel %vm4718_vm2, %v555_v27, %v566_v23 }
  0x57   : > { %564 = vst [vmem:[#allocation2 + $0x6c] sm:$0xf] %v563_v28  ;;  %565 = vst [vmem:[#allocation2 + $0x70] sm:$0xf] %v554_v29 }
  0x58   : > { %568 = vst [vmem:[#allocation2 + $0x74] sm:$0x1] %v567_v30 }
  0x59 PF: > { %v4408_v31 = vld [vmem:[%s5607_s3 + $0x40] sm:$0xff]   ;;  %v4412_v35 = vld [vmem:[%s5607_s3 + $0x48] sm:$0xff]   ;;  %v4416_v39 = vld [vmem:[%s5607_s3 + $0x50] sm:$0xff]   ;;  %vm968_vm6 = vsmask.f32 3328  ;;  %vm593_vm7 = vcmask 785408  }
  0x5a   : > { %v4409_v32 = vld [vmem:[%s5607_s3 + $0xc0] sm:$0xff]   ;;  %4012 = vmatprep.subr.bf16.mxu0 %v4408_v31  ;;  %v4413_v36 = vld [vmem:[%s5607_s3 + $0xc8] sm:$0xff]   ;;  %v4417_v40 = vld [vmem:[%s5607_s3 + $0xd0] sm:$0xff]   ;;  %vm969_vm8 = vsmask.f32 7440  ;;  %vm814_vm9 = vcmask 1043456  }
  0x5b   : > { %v4410_v33 = vld [vmem:[%s5607_s3] sm:$0xff]   ;;  %4076 = vmatprep.subr.bf16.mxu1 %v4409_v32  ;;  %v4414_v37 = vld [vmem:[%s5607_s3 + $0x8] sm:$0xff]   ;;  %v4418_v41 = vld [vmem:[%s5607_s3 + $0x10] sm:$0xff]   ;;  %vm1251_vm10 = vcmask 1042432   ;;  %vm651_vm11 = vsmask.f32 4368 }
  0x5c   : > { %v4411_v34 = vld [vmem:[%s5607_s3 + $0x80] sm:$0xff]   ;;  %4013 = vmatpush3.bf16.msra.mxu0 %v4410_v33  ;;  %v4415_v38 = vld [vmem:[%s5607_s3 + $0x88] sm:$0xff]   ;;  %v4419_v42 = vld [vmem:[%s5607_s3 + $0x90] sm:$0xff]   ;;  %vm1252_vm13 = vcmask 1046532   ;;  %s4602_s14 = smov 96   ;;  %s4011_s17 = sshll.u32 %s4582_s21, 4 }
  0x5d   : > { %4077 = vmatpush3.bf16.msra.mxu1 %v4411_v34  ;;  %4014 = vmatprep.subr.bf16.mxu0 %v4412_v35  ;;  %v4420_v43 = vld [vmem:[%s5607_s3 + $0x58] sm:$0xff]   ;;  %v4424_v47 = vld [vmem:[%s5607_s3 + $0x60] sm:$0xff]   ;;  %v4428_v51 = vld [vmem:[%s5607_s3 + $0x68] sm:$0xff]   ;;  %s4005_s30 = sshll.u32 %s4586_s22, 5  ;;  %s3649_s21 = sshll.u32 %s4809_s28, 4  ;;  %s5539_s21 = int_to_ptr.vmem [resolvable:$true] %s3649_s21 }
  0x5e   : > { %4078 = vmatprep.subr.bf16.mxu1 %v4413_v36  ;;  %v4421_v44 = vld [vmem:[%s5607_s3 + $0xd8] sm:$0xff]   ;;  %v4425_v48 = vld [vmem:[%s5607_s3 + $0xe0] sm:$0xff]   ;;  %v4429_v52 = vld [vmem:[%s5607_s3 + $0xe8] sm:$0xff]   ;;  %s3646_s8 = sadd.s32 %s4011_s17, %s4005_s30  ;;  %s5632_s13 = sand.u32 1, %s4574_s19  }
  0x5f   : > { %v4422_v45 = vld [vmem:[%s5607_s3 + $0x18] sm:$0xff]   ;;  %v4426_v49 = vld [vmem:[%s5607_s3 + $0x20] sm:$0xff]   ;;  %v4430_v53 = vld [vmem:[%s5607_s3 + $0x28] sm:$0xff]   ;;  %s4006_s22 = sshll.u32 %s3646_s8, 7  ;;  %s4504_s26 = scalar_lea.vmem %s5539_s21, 2048 }
  0x60   : > { %4015 = vmatpush3.bf16.msra.mxu0 %v4414_v37  ;;  %v4423_v46 = vld [vmem:[%s5607_s3 + $0x98] sm:$0xff]   ;;  %v4427_v50 = vld [vmem:[%s5607_s3 + $0xa0] sm:$0xff]   ;;  %v4431_v54 = vld [vmem:[%s5607_s3 + $0xa8] sm:$0xff]   ;;  %s5545_s27 = scalar_lea.hbm %s5609_s5, %s4006_s22  ;;  %p4505_p9 = scmp.ne.s32.totalorder %s5539_s21, %s4504_s26 }
  0x61   : > { %4079 = vmatpush3.bf16.msra.mxu1 %v4415_v38  ;;  %4016 = vmatprep.subr.bf16.mxu0 %v4416_v39  ;;  %v4432_v55 = vld [vmem:[%s5607_s3 + $0x70] sm:$0xff]   ;;  %v4436_v59 = vld [vmem:[%s5607_s3 + $0x78] sm:$0xff]   ;;  %v944_v63 = vld [vmem:[#allocation2] sm:$0xf]  ;;  %s4603_s9 = smov [#allocation5]  }
  0x62   : > { %4080 = vmatprep.subr.bf16.mxu1 %v4417_v40  ;;  %v4433_v56 = vld [vmem:[%s5607_s3 + $0xf0] sm:$0xff]   ;;  %v4437_v60 = vld [vmem:[%s5607_s3 + $0xf8] sm:$0xff]   ;;  %v945_v1 = vld [vmem:[#allocation2 + $0x4] sm:$0xf]  ;;  %v972_v3 = vshrl.u32 %v944_v63, 16  ;;  %v975_v4 = vshll.u32 %v944_v63, 16  ;;  %p4506_p10 = pnand %p4505_p9, %p4687_p3 }
  0x63   : > { %v4434_v57 = vld [vmem:[%s5607_s3 + $0x30] sm:$0xff]   ;;  %v4438_v61 = vld [vmem:[%s5607_s3 + $0x38] sm:$0xff]   ;;  %v946_v2 = vld [vmem:[#allocation2 + $0x8] sm:$0x1]  ;;  %v981_v5 = vshll.u32 %v945_v1, 16  ;;  %v985_v6 = vshrl.u32 %v945_v1, 16 }
  0x64   : > { %4017 = vmatpush3.bf16.msra.mxu0 %v4418_v41  ;;  %v4435_v58 = vld [vmem:[%s5607_s3 + $0xb0] sm:$0xff]   ;;  %v4439_v62 = vld [vmem:[%s5607_s3 + $0xb8] sm:$0xff]   ;;  %v991_v7 = vshll.u32 %v946_v2, 16  ;;  %v569_v8 = vld [vmem:[%s4757_s16] sm:$0xff]  ;;  %v974_v10 = vrot.slane %v972_v3, 4  ;;  %v977_v11 = vrot.slane %v975_v4, 5  ;;  %p4507_p11 = pneg %p4506_p10 }
  0x65   : > { %4081 = vmatpush3.bf16.msra.mxu1 %v4419_v42  ;;  %4018 = vmatprep.subr.bf16.mxu0 %v4420_v43  ;;  %v570_v9 = vld [vmem:[%s4757_s16 + $0x8] sm:$0xff]  ;;  %v983_v13 = vrot.slane %v981_v5, 5  ;;  %v987_v14 = vrot.slane %v985_v6, 4  ;;  %v4442_v17 = vld [vmem:[%s5607_s3 + $0x140] sm:$0xff]   ;;  %vm4934_vm12 = vmor %vm968_vm6, %vm969_vm8  ;;  %s4508_s0 = sshll.u32 %s4603_s9, 4  ;;  %s4509_s0 = int_to_ptr.vmem [resolvable:$false] %s4508_s0 }
  0x66   : > { %4082 = vmatprep.subr.bf16.mxu1 %v4421_v44  ;;  %v585_v12 = vpack.c.bf16 %v570_v9, %v569_v8  ;;  %v978_v15 = vor.u32 %v977_v11, %v974_v10  ;;  %v993_v20 = vrot.slane %v991_v7, 5  ;;  %v1204_v23 = vld [vmem:[#allocation2 + $0x4] sm:$0xf]  ;;  %v1203_v26 = vld [vmem:[#allocation2] sm:$0xe]  ;;  %vm4945_vm14 = vmand %vm814_vm9, %vm415_vm3  ;;  %s4510_s29 = scalar_lea.vmem %s4509_s0, 4096  ;;  %p4511_p12 = scmp.lt.s32.totalorder %s5539_s21, %s4509_s0 }
  0x67   : > { %v988_v19 = vor.u32 %v987_v14, %v983_v13  ;;  %v4443_v24 = vld [vmem:[%s5607_s3 + $0x1c0] sm:$0xff]   ;;  %v1205_v32 = vld [vmem:[#allocation2 + $0x8] sm:$0x1]  ;;  %v816_v36 = vld [vmem:[#allocation2 + $0xc] sm:$0xf]  ;;  %v1256_v37 = vrot.slane %v1204_v23, 5  ;;  %p4512_p13 = scmp.lt.s32.totalorder %s4510_s29, %s4504_s26 }
  0x68   : > { %4019 = vmatpush3.bf16.msra.mxu0 %v4422_v45  ;;  %v596_v16 = vsel %vm593_vm7, %v585_v12, 0  ;;  %v979_v25 = vrot.slane %v978_v15, 4  ;;  %v4441_v31 = vld [vmem:[#allocation2] sm:$0xff]   ;;  %vm4953_vm15 = vmor %vm383_vm1, %vm651_vm11  ;;  %v3849_v43 = vrot.slane %v1203_v26, 9  ;;  %v4450_v63 = vld [vmem:[%s5607_s3 + $0x108] sm:$0xff]  }
  0x69   : > { %4083 = vmatpush3.bf16.msra.mxu1 %v4423_v46  ;;  %4020 = vmatprep.subr.bf16.mxu0 %v4424_v47  ;;  %v3817_v21 = vcombine.low %v596_v16, %v596_v16  ;;  %v3818_v22 = vcombine.high %v596_v16, %v596_v16  ;;  %v989_v27 = vrot.slane %v988_v19, 4  ;;  %v4444_v44 = vld [vmem:[%s5607_s3 + $0x100] sm:$0xff]   ;;  %vm4964_vm1 = vmor %vm1251_vm10, %vm1252_vm13  ;;  %v574_v8 = vld [vmem:[%s4757_s16 + $0x28] sm:$0xff]  ;;  %p4513_p0 = por %p4512_p13, %p4511_p12 }
  0x6a   : > { %4084 = vmatprep.subr.bf16.mxu1 %v4425_v48  ;;  %v984_v33 = vsel %vm4934_vm12, %v979_v25, %v983_v13  ;;  %v1257_v1 = vsel %vm4964_vm1, %v3849_v43, %v1256_v37  ;;  %v573_v3 = vld [vmem:[%s4757_s16 + $0x20] sm:$0xff]  ;;  %v4454_v9 = vld [vmem:[%s5607_s3 + $0x150] sm:$0xff]   ;;  %v823_v14 = vld [vmem:[#allocation2 + $0x18] sm:$0xf] }
  0x6b   : > { %v654_v28 = vshrl.u32 %v3817_v21, 16  ;;  %v657_v29 = vshll.u32 %v3817_v21, 16  ;;  %v662_v30 = vshrl.u32 %v3818_v22, 16  ;;  %v665_v34 = vshll.u32 %v3818_v22, 16  ;;  %v4445_v11 = vld [vmem:[%s5607_s3 + $0x180] sm:$0xff]   ;;  %v4449_v16 = vld [vmem:[%s5607_s3 + $0x1c8] sm:$0xff]   ;;  %p4514_p1 = pnand %p4513_p0, %p4507_p11 }
  0x6c   : > { %4021 = vmatpush3.bf16.msra.mxu0 %v4426_v49  ;;  %v994_v38 = vsel %vm4934_vm12, %v989_v27, %v993_v20  ;;  %v820_v49 = vld [vmem:[#allocation2 + $0x14] sm:$0x1]  ;;  %v587_v10 = vpack.c.bf16 %v574_v8, %v573_v3  ;;  %v576_v8 = vld [vmem:[%s4757_s16 + $0x38] sm:$0xff] }
  0x6d   : > { %4085 = vmatpush3.bf16.msra.mxu1 %v4427_v50  ;;  %4022 = vmatprep.subr.bf16.mxu0 %v4428_v51  ;;  %v656_v40 = vrot.slane %v654_v28, 7  ;;  %v664_v41 = vrot.slane %v662_v30, 7  ;;  %v3841_v42 = vcombine.low %v984_v33, %v994_v38  ;;  %v571_v50 = vld [vmem:[%s4757_s16 + $0x10] sm:$0xff]  ;;  %v572_v51 = vld [vmem:[%s4757_s16 + $0x18] sm:$0xff] }
  0x6e   : > { %4086 = vmatprep.subr.bf16.mxu1 %v4429_v52 }
  0x6f   : > { %v659_v45 = vor.u32 %v657_v29, %v656_v40  ;;  %v660_v46 = vrot.slane %v656_v40, 4  ;;  %v667_v47 = vor.u32 %v665_v34, %v664_v41  ;;  %v669_v48 = vrot.slane %v664_v41, 4  ;;  %2982 = vmatprep.mubr.bf16.mxu0 %v3841_v42  ;;  %v4455_v40 = vld [vmem:[%s5607_s3 + $0x1d0] sm:$0xff]  }
  0x70   : > { %4023 = vmatpush3.bf16.msra.mxu0 %v4430_v53  ;;  %v1258_v53 = vrot.slane %v1256_v37, 4 }
  0x71   : > { %4087 = vmatpush3.bf16.msra.mxu1 %v4431_v54  ;;  %4024 = vmatprep.subr.bf16.mxu0 %v4432_v55  ;;  %v1259_v54 = vrot.slane %v1205_v32, 5  ;;  %v586_v55 = vpack.c.bf16 %v572_v51, %v571_v50  ;;  %v827_v32 = vld [vmem:[#allocation2 + $0x20] sm:$0x1] }
  0x72   : > { %4088 = vmatprep.subr.bf16.mxu1 %v4433_v56  ;;  %v668_v56 = vsel %vm4953_vm15, %v660_v46, %v667_v47 }
  0x73   : > { %819 = vst [vmem:[#allocation2 + $0x10] sm:$0xf] %v668_v56  ;;  %v1260_v2 = vsel %vm4964_vm1, %v1258_v53, %v1259_v54  ;;  %v4456_v56 = vld [vmem:[%s5607_s3 + $0x110] sm:$0xff]  }
  0x74   : > { %4025 = vmatpush3.bf16.msra.mxu0 %v4434_v57  ;;  %v817_v57 = vsel %vm4945_vm14, %v659_v45, %v816_v36  ;;  %v3857_v15 = vcombine.low %v1257_v1, %v1260_v2 }
  0x75   : > { %4089 = vmatpush3.bf16.msra.mxu1 %v4435_v58  ;;  %4026 = vmatprep.subr.bf16.mxu0 %v4436_v59  ;;  %v821_v58 = vsel %vm4718_vm2, %v669_v48, %v820_v49  ;;  %v4448_v59 = vld [vmem:[%s5607_s3 + $0x148] sm:$0xff]   ;;  %818 = vst [vmem:[#allocation2 + $0xc] sm:$0xf] %v817_v57 }
  0x76   : > { %4090 = vmatprep.subr.bf16.mxu1 %v4437_v60  ;;  %822 = vst [vmem:[#allocation2 + $0x14] sm:$0x1] %v821_v58  ;;  %v598_v60 = vsel %vm593_vm7, %v586_v55, 0 }
  0x78   : > { %4027 = vmatpush3.bf16.msra.mxu0 %v4438_v61  ;;  %v3819_v61 = vcombine.low %v598_v60, %v598_v60 }
  0x79   : > { %4091 = vmatpush3.bf16.msra.mxu1 %v4439_v62  ;;  %4140 = vmatprep.subr.bf16.mxu0 %v4442_v17  ;;  %v3820_v62 = vcombine.high %v598_v60, %v598_v60  ;;  %v600_v17 = vsel %vm593_vm7, %v587_v10, 0 }
  0x7a   : > { %4204 = vmatprep.subr.bf16.mxu1 %v4443_v24  ;;  %v671_v4 = vshrl.u32 %v3819_v61, 16  ;;  %v674_v5 = vshll.u32 %v3819_v61, 16  ;;  %v948_v24 = vld [vmem:[#allocation2 + $0x10] sm:$0xf]  ;;  %v3821_v26 = vcombine.low %v600_v17, %v600_v17  ;;  %v5004_v38 = vcombine.high %v600_v17, %v600_v17  ;;  %v830_v61 = vld [vmem:[#allocation2 + $0x24] sm:$0xf] }
  0x7b   : > { %2983 = vmatmul.mubr.bf16.vlgmr.msra.gmra.mrb[0].mxu0 %v4441_v31  ;;  %v679_v6 = vshrl.u32 %v3820_v62, 16  ;;  %v682_v7 = vshll.u32 %v3820_v62, 16  ;;  %v1005_v29 = vshll.u32 %v948_v24, 16  ;;  %v1009_v30 = vshrl.u32 %v948_v24, 16  ;;  %v4451_v31 = vld [vmem:[%s5607_s3 + $0x188] sm:$0xff]  }
  0x7c   : > { %4141 = vmatpush3.bf16.msra.mxu0 %v4444_v44  ;;  %v673_v12 = vrot.slane %v671_v4, 7  ;;  %v4440_v19 = vld [vmem:[#allocation2 + $0xc] sm:$0xff]   ;;  %v688_v55 = vshrl.u32 %v3821_v26, 16  ;;  %v691_v60 = vshll.u32 %v3821_v26, 16  ;;  %v696_v3 = vshrl.u32 %v5004_v38, 16 }
  0x7d   : > { %4142 = vmatprep.subr.bf16.mxu0 %v4448_v59  ;;  %v681_v13 = vrot.slane %v679_v6, 7  ;;  %v947_v23 = vld [vmem:[#allocation2 + $0xc] sm:$0xf]  ;;  %v949_v25 = vld [vmem:[#allocation2 + $0x14] sm:$0x1]  ;;  %3079 = vmatprep.mubr.bf16.mxu1 %v4440_v19  ;;  %v1007_v43 = vrot.slane %v1005_v29, 5 }
  0x7e   : > { %v676_v20 = vor.u32 %v674_v5, %v673_v12  ;;  %v677_v21 = vrot.slane %v673_v12, 4  ;;  %v996_v27 = vshrl.u32 %v947_v23, 16  ;;  %v999_v28 = vshll.u32 %v947_v23, 16  ;;  %3080 = vmatmul.mubr.bf16.vlgmr.msra.gmra.mrb[0].mxu1 %v3857_v15  ;;  %v1206_v37 = vld [vmem:[#allocation2 + $0xc] sm:$0xe]  ;;  %v4457_v4 = vld [vmem:[%s5607_s3 + $0x190] sm:$0xff]  }
  0x7f   : > { %v684_v22 = vor.u32 %v682_v7, %v681_v13  ;;  %v1015_v33 = vshll.u32 %v949_v25, 16  ;;  %4205 = vmatpush3.bf16.msra.mxu1 %v4445_v11  ;;  %v1011_v44 = vrot.slane %v1009_v30, 4  ;;  %v1207_v45 = vld [vmem:[#allocation2 + $0x10] sm:$0xf]  ;;  %v1208_v47 = vld [vmem:[#allocation2 + $0x14] sm:$0x1] }
  0x80   : > { %4143 = vmatpush3.bf16.msra.mxu0 %v4450_v63  ;;  %v824_v36 = vsel %vm4945_vm14, %v676_v20, %v823_v14  ;;  %v998_v41 = vrot.slane %v996_v27, 4  ;;  %v1001_v42 = vrot.slane %v999_v28, 5  ;;  %v3850_v48 = vrot.slane %v1206_v37, 9  ;;  %4206 = vmatprep.subr.bf16.mxu1 %v4449_v16  ;;  %v4447_v1 = vld [vmem:[#allocation2 + $0xc] sm:$0xff]  }
  0x81   : > { %4144 = vmatprep.subr.bf16.mxu0 %v4454_v9  ;;  %v685_v34 = vsel %vm4953_vm15, %v677_v21, %v684_v22  ;;  %825 = vst [vmem:[#allocation2 + $0x18] sm:$0xf] %v824_v36  ;;  %v1017_v46 = vrot.slane %v1015_v33, 5  ;;  %v1263_v49 = vrot.slane %v1207_v45, 5  ;;  %v686_v50 = vrot.slane %v681_v13, 4  ;;  %v575_v7 = vld [vmem:[%s4757_s16 + $0x30] sm:$0xff] }
  0x82   : > { %826 = vst [vmem:[#allocation2 + $0x1c] sm:$0xf] %v685_v34  ;;  %v1002_v51 = vor.u32 %v1001_v42, %v998_v41  ;;  %v1012_v53 = vor.u32 %v1011_v44, %v1007_v43  ;;  %v1266_v54 = vrot.slane %v1208_v47, 5  ;;  %v690_v2 = vrot.slane %v688_v55, 7  ;;  %v4460_v9 = vld [vmem:[%s5607_s3 + $0x158] sm:$0xff]  }
  0x83   : > { %v1264_v57 = vsel %vm4964_vm1, %v3850_v48, %v1263_v49  ;;  %v1265_v58 = vrot.slane %v1263_v49, 4  ;;  %v828_v59 = vsel %vm4718_vm2, %v686_v50, %v827_v32  ;;  %4207 = vmatpush3.bf16.msra.mxu1 %v4451_v31  ;;  %v699_v6 = vshll.u32 %v5004_v38, 16  ;;  %v834_v29 = vld [vmem:[#allocation2 + $0x2c] sm:$0x1] }
  0x84   : > { %v1003_v62 = vrot.slane %v1002_v51, 4  ;;  %v1013_v63 = vrot.slane %v1012_v53, 4  ;;  %829 = vst [vmem:[#allocation2 + $0x20] sm:$0x1] %v828_v59  ;;  %4145 = vmatpush3.bf16.msra.mxu0 %v4456_v56  ;;  %4208 = vmatprep.subr.bf16.mxu1 %v4455_v40  ;;  %v693_v13 = vor.u32 %v691_v60, %v690_v2  ;;  %v694_v19 = vrot.slane %v690_v2, 4  ;;  %v4462_v53 = vld [vmem:[%s5607_s3 + $0x118] sm:$0xff]  }
  0x85   : > { %v1267_v5 = vsel %vm4964_vm1, %v1265_v58, %v1266_v54  ;;  %4146 = vmatprep.subr.bf16.mxu0 %v4460_v9  ;;  %v698_v20 = vrot.slane %v696_v3, 7  ;;  %v588_v30 = vpack.c.bf16 %v576_v8, %v575_v7  ;;  %v4463_v58 = vld [vmem:[%s5607_s3 + $0x198] sm:$0xff]   ;;  %v577_v3 = vld [vmem:[%s4757_s16 + $0x40] sm:$0xff] }
  0x86   : > { %v1008_v10 = vsel %vm4934_vm12, %v1003_v62, %v1007_v43  ;;  %v1018_v11 = vsel %vm4934_vm12, %v1013_v63, %v1017_v46  ;;  %v3858_v12 = vcombine.low %v1264_v57, %v1267_v5  ;;  %v831_v21 = vsel %vm4945_vm14, %v693_v13, %v830_v61  ;;  %v4461_v43 = vld [vmem:[%s5607_s3 + $0x1d8] sm:$0xff]  }
  0x87   : > { %v3842_v14 = vcombine.low %v1008_v10, %v1018_v11  ;;  %4209 = vmatpush3.bf16.msra.mxu1 %v4457_v4  ;;  %832 = vst [vmem:[#allocation2 + $0x24] sm:$0xf] %v831_v21  ;;  %v701_v26 = vor.u32 %v699_v6, %v698_v20  ;;  %v703_v47 = vrot.slane %v698_v20, 4  ;;  %v602_v51 = vsel %vm593_vm7, %v588_v30, 0  ;;  %v578_v4 = vld [vmem:[%s4757_s16 + $0x48] sm:$0xff]  ;;  %v4466_v10 = vld [vmem:[%s5607_s3 + $0x160] sm:$0xff]  }
  0x88   : > { %v950_v16 = vld [vmem:[#allocation2 + $0x18] sm:$0xf]  ;;  %4210 = vmatprep.subr.bf16.mxu1 %v4461_v43  ;;  %v3823_v57 = vcombine.low %v602_v51, %v602_v51  ;;  %v3824_v61 = vcombine.high %v602_v51, %v602_v51  ;;  %4147 = vmatpush3.bf16.msra.mxu0 %v4462_v53  ;;  %v589_v20 = vpack.c.bf16 %v578_v4, %v577_v3  ;;  %v4468_v43 = vld [vmem:[%s5607_s3 + $0x120] sm:$0xff]  }
  0x89   : > { %v4446_v15 = vld [vmem:[#allocation2 + $0x18] sm:$0xff]   ;;  %2990 = vmatprep.mubr.bf16.mxu0 %v3842_v14  ;;  %v1020_v22 = vshrl.u32 %v950_v16, 16  ;;  %v1023_v23 = vshll.u32 %v950_v16, 16  ;;  %v702_v38 = vsel %vm4953_vm15, %v694_v19, %v701_v26  ;;  %v835_v56 = vsel %vm4718_vm2, %v703_v47, %v834_v29  ;;  %v837_v19 = vld [vmem:[#allocation2 + $0x30] sm:$0xf]  ;;  %4148 = vmatprep.subr.bf16.mxu0 %v4466_v10  ;;  %v4469_v51 = vld [vmem:[%s5607_s3 + $0x1a0] sm:$0xff]  }
  0x8a   : > { %v951_v17 = vld [vmem:[#allocation2 + $0x1c] sm:$0xf]  ;;  %3087 = vmatprep.mubr.bf16.mxu1 %v4446_v15  ;;  %2991 = vmatmul.mubr.bf16.gmra.mrb[4].mxu0 %v4447_v1  ;;  %v1209_v27 = vld [vmem:[#allocation2 + $0x18] sm:$0xe]  ;;  %833 = vst [vmem:[#allocation2 + $0x28] sm:$0xf] %v702_v38 }
  0x8b   : > { %v1029_v24 = vshll.u32 %v951_v17, 16  ;;  %v1033_v25 = vshrl.u32 %v951_v17, 16  ;;  %3088 = vmatmul.mubr.bf16.gmra.mrb[4].mxu1 %v3858_v12  ;;  %v1210_v28 = vld [vmem:[#allocation2 + $0x1c] sm:$0xf]  ;;  %v952_v31 = vld [vmem:[#allocation2 + $0x20] sm:$0x1] }
  0x8c   : > { %v1022_v32 = vrot.slane %v1020_v22, 4  ;;  %v1025_v33 = vrot.slane %v1023_v23, 5  ;;  %v1039_v37 = vshll.u32 %v952_v31, 16  ;;  %v1211_v40 = vld [vmem:[#allocation2 + $0x20] sm:$0x1]  ;;  %v3851_v41 = vrot.slane %v1209_v27, 9  ;;  %4211 = vmatpush3.bf16.msra.mxu1 %v4463_v58  ;;  %4149 = vmatpush3.bf16.msra.mxu0 %v4468_v43 }
  0x8d   : > { %v1031_v34 = vrot.slane %v1029_v24, 5  ;;  %v1035_v36 = vrot.slane %v1033_v25, 4  ;;  %v1270_v42 = vrot.slane %v1210_v28, 5  ;;  %v1273_v46 = vrot.slane %v1211_v40, 5  ;;  %836 = vst [vmem:[#allocation2 + $0x2c] sm:$0x1] %v835_v56 }
  0x8e   : > { %v1026_v44 = vor.u32 %v1025_v33, %v1022_v32  ;;  %v1041_v48 = vrot.slane %v1039_v37, 5  ;;  %v953_v60 = vld [vmem:[#allocation2 + $0x24] sm:$0xf]  ;;  %v4453_v1 = vld [vmem:[#allocation2 + $0x18] sm:$0xff]   ;;  %v705_v8 = vshrl.u32 %v3823_v57, 16  ;;  %v708_v12 = vshll.u32 %v3823_v57, 16 }
  0x8f   : > { %v1036_v45 = vor.u32 %v1035_v36, %v1031_v34  ;;  %v1271_v49 = vsel %vm4964_vm1, %v3851_v41, %v1270_v42  ;;  %v1272_v50 = vrot.slane %v1270_v42, 4  ;;  %v1044_v2 = vshrl.u32 %v953_v60, 16  ;;  %v1212_v9 = vld [vmem:[#allocation2 + $0x24] sm:$0xe]  ;;  %v841_v28 = vld [vmem:[#allocation2 + $0x38] sm:$0x1] }
  0x90   : > { %v1027_v54 = vrot.slane %v1026_v44, 4  ;;  %v1047_v7 = vshll.u32 %v953_v60, 16  ;;  %v713_v13 = vshrl.u32 %v3824_v61, 16  ;;  %v716_v14 = vshll.u32 %v3824_v61, 16  ;;  %v4467_v36 = vld [vmem:[%s5607_s3 + $0x1e0] sm:$0xff]   ;;  %v579_v58 = vld [vmem:[%s4757_s16 + $0x50] sm:$0xff] }
  0x91   : > { %v1037_v55 = vrot.slane %v1036_v45, 4  ;;  %v1274_v59 = vsel %vm4964_vm1, %v1272_v50, %v1273_v46  ;;  %v1046_v11 = vrot.slane %v1044_v2, 4  ;;  %v4452_v15 = vld [vmem:[#allocation2 + $0x24] sm:$0xff]   ;;  %v707_v23 = vrot.slane %v705_v8, 7  ;;  %4212 = vmatprep.subr.bf16.mxu1 %v4467_v36 }
  0x92   : > { %v1032_v62 = vsel %vm4934_vm12, %v1027_v54, %v1031_v34  ;;  %v3859_v6 = vcombine.low %v1271_v49, %v1274_v59  ;;  %v954_v16 = vld [vmem:[#allocation2 + $0x28] sm:$0xf]  ;;  %v1049_v17 = vrot.slane %v1047_v7, 5  ;;  %v715_v24 = vrot.slane %v713_v13, 7  ;;  %3095 = vmatprep.mubr.bf16.mxu1 %v4452_v15  ;;  %4213 = vmatpush3.bf16.msra.mxu1 %v4469_v51  ;;  %v580_v59 = vld [vmem:[%s4757_s16 + $0x58] sm:$0xff] }
  0x93   : > { %v1042_v63 = vsel %vm4934_vm12, %v1037_v55, %v1041_v48  ;;  %v1053_v21 = vshll.u32 %v954_v16, 16  ;;  %v1057_v22 = vshrl.u32 %v954_v16, 16  ;;  %v1213_v26 = vld [vmem:[#allocation2 + $0x28] sm:$0xf]  ;;  %v3852_v27 = vrot.slane %v1212_v9, 9 }
  0x94   : > { %v3843_v5 = vcombine.low %v1032_v62, %v1042_v63  ;;  %v1050_v25 = vor.u32 %v1049_v17, %v1046_v11  ;;  %v604_v29 = vsel %vm593_vm7, %v589_v20, 0  ;;  %3096 = vmatmul.mubr.bf16.gmra.mrb[8].mxu1 %v3859_v6  ;;  %v955_v30 = vld [vmem:[#allocation2 + $0x2c] sm:$0x1]  ;;  %v710_v33 = vor.u32 %v708_v12, %v707_v23  ;;  %v4459_v61 = vld [vmem:[#allocation2 + $0x24] sm:$0xff]   ;;  %v844_v6 = vld [vmem:[#allocation2 + $0x3c] sm:$0xf] }
  0x95   : > { %v1055_v31 = vrot.slane %v1053_v21, 5  ;;  %v1059_v32 = vrot.slane %v1057_v22, 4  ;;  %v711_v34 = vrot.slane %v707_v23, 4  ;;  %v1063_v38 = vshll.u32 %v955_v30, 16  ;;  %v1214_v41 = vld [vmem:[#allocation2 + $0x2c] sm:$0x1] }
  0x96   : > { %2998 = vmatprep.mubr.bf16.mxu0 %v3843_v5  ;;  %v1051_v37 = vrot.slane %v1050_v25, 4  ;;  %v718_v40 = vor.u32 %v716_v14, %v715_v24  ;;  %v1277_v42 = vrot.slane %v1213_v26, 5  ;;  %v838_v45 = vsel %vm4945_vm14, %v710_v33, %v837_v19  ;;  %v4472_v7 = vld [vmem:[%s5607_s3 + $0x168] sm:$0xff]   ;;  %v848_v30 = vld [vmem:[#allocation2 + $0x44] sm:$0x1] }
  0x97   : > { %2999 = vmatmul.mubr.bf16.gmra.mrb[8].mxu0 %v4453_v1  ;;  %v1060_v44 = vor.u32 %v1059_v32, %v1055_v31  ;;  %v1280_v46 = vrot.slane %v1214_v41, 5  ;;  %v720_v47 = vrot.slane %v715_v24, 4  ;;  %v1065_v49 = vrot.slane %v1063_v38, 5  ;;  %839 = vst [vmem:[#allocation2 + $0x30] sm:$0xf] %v838_v45  ;;  %v4473_v8 = vld [vmem:[%s5607_s3 + $0x1e8] sm:$0xff]   ;;  %4150 = vmatprep.subr.bf16.mxu0 %v4472_v7 }
  0x98   : > { %v1056_v48 = vsel %vm4934_vm12, %v1051_v37, %v1055_v31  ;;  %v719_v50 = vsel %vm4953_vm15, %v711_v34, %v718_v40  ;;  %v1279_v54 = vrot.slane %v1277_v42, 4  ;;  %v3825_v56 = vcombine.low %v604_v29, %v604_v29  ;;  %v4474_v11 = vld [vmem:[%s5607_s3 + $0x128] sm:$0xff]   ;;  %4214 = vmatprep.subr.bf16.mxu1 %v4473_v8 }
  0x99   : > { %v1061_v53 = vrot.slane %v1060_v44, 4  ;;  %840 = vst [vmem:[#allocation2 + $0x34] sm:$0xf] %v719_v50  ;;  %v842_v55 = vsel %vm4718_vm2, %v720_v47, %v841_v28  ;;  %v3826_v57 = vcombine.high %v604_v29, %v604_v29  ;;  %v1278_v62 = vsel %vm4964_vm1, %v3852_v27, %v1277_v42  ;;  %v4475_v13 = vld [vmem:[%s5607_s3 + $0x1a8] sm:$0xff]   ;;  %4151 = vmatpush3.bf16.msra.mxu0 %v4474_v11 }
  0x9a   : > { %843 = vst [vmem:[#allocation2 + $0x38] sm:$0x1] %v842_v55  ;;  %v722_v63 = vshrl.u32 %v3825_v56, 16  ;;  %v725_v1 = vshll.u32 %v3825_v56, 16  ;;  %v1281_v3 = vsel %vm4964_vm1, %v1279_v54, %v1280_v46  ;;  %v590_v10 = vpack.c.bf16 %v580_v59, %v579_v58  ;;  %4215 = vmatpush3.bf16.msra.mxu1 %v4475_v13 }
  0x9b   : > { %v1066_v60 = vsel %vm4934_vm12, %v1061_v53, %v1065_v49  ;;  %v730_v4 = vshrl.u32 %v3826_v57, 16  ;;  %v733_v5 = vshll.u32 %v3826_v57, 16  ;;  %v3860_v14 = vcombine.low %v1278_v62, %v1281_v3  ;;  %v582_v62 = vld [vmem:[%s4757_s16 + $0x68] sm:$0xff]  ;;  %v4478_v3 = vld [vmem:[%s5607_s3 + $0x170] sm:$0xff]  }
  0x9c   : > { %v3844_v2 = vcombine.low %v1056_v48, %v1066_v60  ;;  %v724_v9 = vrot.slane %v722_v63, 7  ;;  %v606_v19 = vsel %vm593_vm7, %v590_v10, 0  ;;  %v851_v60 = vld [vmem:[#allocation2 + $0x48] sm:$0xf]  ;;  %4152 = vmatprep.subr.bf16.mxu0 %v4478_v3 }
  0x9d   : > { %v732_v12 = vrot.slane %v730_v4, 7  ;;  %v3827_v24 = vcombine.low %v606_v19, %v606_v19  ;;  %v3828_v34 = vcombine.high %v606_v19, %v606_v19  ;;  %v855_v19 = vld [vmem:[#allocation2 + $0x50] sm:$0x1] }
  0x9e   : > { %3006 = vmatprep.mubr.bf16.mxu0 %v3844_v2  ;;  %v956_v15 = vld [vmem:[#allocation2 + $0x30] sm:$0xf]  ;;  %v727_v16 = vor.u32 %v725_v1, %v724_v9  ;;  %v728_v17 = vrot.slane %v724_v9, 4 }
  0x9f   : > { %3007 = vmatmul.mubr.bf16.gmra.mrb[12].mxu0 %v4459_v61  ;;  %v1068_v22 = vshrl.u32 %v956_v15, 16  ;;  %v735_v23 = vor.u32 %v733_v5, %v732_v12  ;;  %v1071_v26 = vshll.u32 %v956_v15, 16  ;;  %v1215_v40 = vld [vmem:[#allocation2 + $0x30] sm:$0xe]  ;;  %v737_v41 = vrot.slane %v732_v12, 4  ;;  %v581_v61 = vld [vmem:[%s4757_s16 + $0x60] sm:$0xff] }
  0xa0   : > { %v4458_v20 = vld [vmem:[#allocation2 + $0x30] sm:$0xff]   ;;  %v845_v29 = vsel %vm4945_vm14, %v727_v16, %v844_v6  ;;  %v3853_v45 = vrot.slane %v1215_v40, 9  ;;  %v739_v51 = vshrl.u32 %v3827_v24, 16  ;;  %v742_v53 = vshll.u32 %v3827_v24, 16 }
  0xa1   : > { %v957_v21 = vld [vmem:[#allocation2 + $0x34] sm:$0xf]  ;;  %v958_v25 = vld [vmem:[#allocation2 + $0x38] sm:$0x1]  ;;  %3103 = vmatprep.mubr.bf16.mxu1 %v4458_v20  ;;  %v1070_v31 = vrot.slane %v1068_v22, 4  ;;  %v736_v33 = vsel %vm4953_vm15, %v728_v17, %v735_v23  ;;  %v1073_v36 = vrot.slane %v1071_v26, 5  ;;  %v849_v50 = vsel %vm4718_vm2, %v737_v41, %v848_v30 }
  0xa2   : > { %v1077_v27 = vshll.u32 %v957_v21, 16  ;;  %v1081_v28 = vshrl.u32 %v957_v21, 16  ;;  %v1087_v32 = vshll.u32 %v958_v25, 16  ;;  %846 = vst [vmem:[#allocation2 + $0x3c] sm:$0xf] %v845_v29  ;;  %3104 = vmatmul.mubr.bf16.gmra.mrb[12].mxu1 %v3860_v14  ;;  %v747_v54 = vshrl.u32 %v3828_v34, 16 }
  0xa3   : > { %847 = vst [vmem:[#allocation2 + $0x40] sm:$0xf] %v736_v33  ;;  %v1216_v43 = vld [vmem:[#allocation2 + $0x34] sm:$0xf]  ;;  %v1217_v44 = vld [vmem:[#allocation2 + $0x38] sm:$0x1]  ;;  %v1074_v46 = vor.u32 %v1073_v36, %v1070_v31  ;;  %v591_v25 = vpack.c.bf16 %v582_v62, %v581_v61 }
  0xa4   : > { %v1079_v37 = vrot.slane %v1077_v27, 5  ;;  %v1083_v38 = vrot.slane %v1081_v28, 4  ;;  %v1089_v42 = vrot.slane %v1087_v32, 5  ;;  %v1284_v48 = vrot.slane %v1216_v43, 5  ;;  %v4465_v57 = vld [vmem:[#allocation2 + $0x30] sm:$0xff]  }
  0xa5   : > { %v1287_v49 = vrot.slane %v1217_v44, 5  ;;  %v1075_v55 = vrot.slane %v1074_v46, 4  ;;  %850 = vst [vmem:[#allocation2 + $0x44] sm:$0x1] %v849_v50  ;;  %v741_v63 = vrot.slane %v739_v51, 7  ;;  %v749_v1 = vrot.slane %v747_v54, 7 }
  0xa6   : > { %v1084_v47 = vor.u32 %v1083_v38, %v1079_v37  ;;  %v1285_v58 = vsel %vm4964_vm1, %v3853_v45, %v1284_v48  ;;  %v1286_v59 = vrot.slane %v1284_v48, 4  ;;  %v750_v2 = vshll.u32 %v3828_v34, 16  ;;  %v4479_v45 = vld [vmem:[%s5607_s3 + $0x1f0] sm:$0xff]  }
  0xa7   : > { %v1080_v4 = vsel %vm4934_vm12, %v1075_v55, %v1079_v37  ;;  %v744_v13 = vor.u32 %v742_v53, %v741_v63  ;;  %v745_v17 = vrot.slane %v741_v63, 4  ;;  %v754_v34 = vrot.slane %v749_v1, 4  ;;  %v4480_v46 = vld [vmem:[%s5607_s3 + $0x130] sm:$0xff]   ;;  %4216 = vmatprep.subr.bf16.mxu1 %v4479_v45  ;;  %v4486_v45 = vld [vmem:[%s5607_s3 + $0x138] sm:$0xff]  }
  0xa8   : > { %v1085_v56 = vrot.slane %v1084_v47, 4  ;;  %v1288_v6 = vsel %vm4964_vm1, %v1286_v59, %v1287_v49  ;;  %v752_v21 = vor.u32 %v750_v2, %v749_v1  ;;  %v608_v44 = vsel %vm593_vm7, %v591_v25, 0  ;;  %v4481_v51 = vld [vmem:[%s5607_s3 + $0x1b0] sm:$0xff]   ;;  %4153 = vmatpush3.bf16.msra.mxu0 %v4480_v46 }
  0xa9   : > { %v959_v7 = vld [vmem:[#allocation2 + $0x3c] sm:$0xf]  ;;  %v3861_v10 = vcombine.low %v1285_v58, %v1288_v6  ;;  %v852_v22 = vsel %vm4945_vm14, %v744_v13, %v851_v60  ;;  %v856_v43 = vsel %vm4718_vm2, %v754_v34, %v855_v19  ;;  %v3829_v50 = vcombine.low %v608_v44, %v608_v44  ;;  %4217 = vmatpush3.bf16.msra.mxu1 %v4481_v51  ;;  %v583_v59 = vld [vmem:[%s4757_s16 + $0x70] sm:$0xff] }
  0xaa   : > { %v1090_v5 = vsel %vm4934_vm12, %v1085_v56, %v1089_v42  ;;  %v4464_v9 = vld [vmem:[#allocation2 + $0x3c] sm:$0xff]   ;;  %v1092_v12 = vshrl.u32 %v959_v7, 16  ;;  %v1095_v14 = vshll.u32 %v959_v7, 16  ;;  %853 = vst [vmem:[#allocation2 + $0x48] sm:$0xf] %v852_v22  ;;  %v753_v31 = vsel %vm4953_vm15, %v745_v17, %v752_v21 }
  0xab   : > { %v3845_v8 = vcombine.low %v1080_v4, %v1090_v5  ;;  %v960_v11 = vld [vmem:[#allocation2 + $0x40] sm:$0xf]  ;;  %3111 = vmatprep.mubr.bf16.mxu1 %v4464_v9  ;;  %v1218_v23 = vld [vmem:[#allocation2 + $0x3c] sm:$0xe]  ;;  %854 = vst [vmem:[#allocation2 + $0x4c] sm:$0xf] %v753_v31  ;;  %v3830_v54 = vcombine.high %v608_v44, %v608_v44 }
  0xac   : > { %v1101_v15 = vshll.u32 %v960_v11, 16  ;;  %v1105_v16 = vshrl.u32 %v960_v11, 16  ;;  %v1094_v20 = vrot.slane %v1092_v12, 4  ;;  %v1219_v24 = vld [vmem:[#allocation2 + $0x40] sm:$0xf]  ;;  %3112 = vmatmul.mubr.bf16.gmra.mrb[16].mxu1 %v3861_v10  ;;  %v1097_v26 = vrot.slane %v1095_v14, 5 }
  0xad   : > { %3014 = vmatprep.mubr.bf16.mxu0 %v3845_v8  ;;  %v3854_v29 = vrot.slane %v1218_v23, 9  ;;  %v961_v30 = vld [vmem:[#allocation2 + $0x44] sm:$0x1]  ;;  %v1291_v33 = vrot.slane %v1219_v24, 5  ;;  %857 = vst [vmem:[#allocation2 + $0x50] sm:$0x1] %v856_v43 }
  0xae   : > { %3015 = vmatmul.mubr.bf16.gmra.mrb[16].mxu0 %v4465_v57  ;;  %v1103_v27 = vrot.slane %v1101_v15, 5  ;;  %v1107_v28 = vrot.slane %v1105_v16, 4  ;;  %v1220_v32 = vld [vmem:[#allocation2 + $0x44] sm:$0x1]  ;;  %v1098_v36 = vor.u32 %v1097_v26, %v1094_v20  ;;  %v1111_v38 = vshll.u32 %v961_v30, 16  ;;  %v4471_v57 = vld [vmem:[#allocation2 + $0x3c] sm:$0xff]  }
  0xaf   : > { %v1294_v40 = vrot.slane %v1220_v32, 5  ;;  %v1292_v41 = vsel %vm4964_vm1, %v3854_v29, %v1291_v33  ;;  %v1293_v42 = vrot.slane %v1291_v33, 4  ;;  %v756_v58 = vshrl.u32 %v3829_v50, 16  ;;  %v584_v60 = vld [vmem:[%s4757_s16 + $0x78] sm:$0xff]  ;;  %v858_v7 = vld [vmem:[#allocation2 + $0x54] sm:$0xf] }
  0xb0   : > { %v1108_v37 = vor.u32 %v1107_v28, %v1103_v27  ;;  %v1099_v47 = vrot.slane %v1098_v36, 4  ;;  %v1113_v49 = vrot.slane %v1111_v38, 5  ;;  %v759_v1 = vshll.u32 %v3829_v50, 16  ;;  %v4484_v28 = vld [vmem:[%s5607_s3 + $0x178] sm:$0xff]  }
  0xb1   : > { %v1295_v53 = vsel %vm4964_vm1, %v1293_v42, %v1294_v40  ;;  %v962_v63 = vld [vmem:[#allocation2 + $0x48] sm:$0xf]  ;;  %v764_v2 = vshrl.u32 %v3830_v54, 16  ;;  %v758_v5 = vrot.slane %v756_v58, 7  ;;  %v767_v6 = vshll.u32 %v3830_v54, 16  ;;  %4154 = vmatprep.subr.bf16.mxu0 %v4484_v28  ;;  %v4485_v40 = vld [vmem:[%s5607_s3 + $0x1f8] sm:$0xff]  }
  0xb2   : > { %v1109_v48 = vrot.slane %v1108_v37, 4  ;;  %v1104_v55 = vsel %vm4934_vm12, %v1099_v47, %v1103_v27  ;;  %v3862_v62 = vcombine.low %v1292_v41, %v1295_v53  ;;  %v1116_v3 = vshrl.u32 %v962_v63, 16  ;;  %v4470_v8 = vld [vmem:[#allocation2 + $0x48] sm:$0xff]   ;;  %v862_v27 = vld [vmem:[#allocation2 + $0x5c] sm:$0x1]  ;;  %4218 = vmatprep.subr.bf16.mxu1 %v4485_v40  ;;  %4155 = vmatpush3.bf16.msra.mxu0 %v4486_v45 }
  0xb3   : > { %v1119_v4 = vshll.u32 %v962_v63, 16  ;;  %v963_v9 = vld [vmem:[#allocation2 + $0x4c] sm:$0xf]  ;;  %v766_v10 = vrot.slane %v764_v2, 7  ;;  %3119 = vmatprep.mubr.bf16.mxu1 %v4470_v8  ;;  %v761_v16 = vor.u32 %v759_v1, %v758_v5  ;;  %v762_v17 = vrot.slane %v758_v5, 4  ;;  %v4487_v51 = vld [vmem:[%s5607_s3 + $0x1b8] sm:$0xff]  }
  0xb4   : > { %v1114_v56 = vsel %vm4934_vm12, %v1109_v48, %v1113_v49  ;;  %v1118_v11 = vrot.slane %v1116_v3, 4  ;;  %v1125_v13 = vshll.u32 %v963_v9, 16  ;;  %v1129_v14 = vshrl.u32 %v963_v9, 16  ;;  %v964_v15 = vld [vmem:[#allocation2 + $0x50] sm:$0x1]  ;;  %3120 = vmatmul.mubr.bf16.gmra.mrb[20].mxu1 %v3862_v62  ;;  %v4477_v48 = vld [vmem:[#allocation2 + $0x48] sm:$0xff]  }
  0xb5   : > { %v3846_v61 = vcombine.low %v1104_v55, %v1114_v56  ;;  %v1121_v12 = vrot.slane %v1119_v4, 5  ;;  %v769_v19 = vor.u32 %v767_v6, %v766_v10  ;;  %v1221_v20 = vld [vmem:[#allocation2 + $0x48] sm:$0xe]  ;;  %v592_v21 = vpack.c.bf16 %v584_v60, %v583_v59  ;;  %v1222_v26 = vld [vmem:[#allocation2 + $0x4c] sm:$0xf]  ;;  %4219 = vmatpush3.bf16.msra.mxu1 %v4487_v51  ;;  %v5175_v6 = vld [vmem:[%s5607_s3 + $0x200] sm:$0xff]  }
  0xb6   : > { %v1127_v23 = vrot.slane %v1125_v13, 5  ;;  %v1131_v24 = vrot.slane %v1129_v14, 4  ;;  %v1135_v25 = vshll.u32 %v964_v15, 16  ;;  %v859_v30 = vsel %vm4945_vm14, %v761_v16, %v858_v7  ;;  %v1223_v31 = vld [vmem:[#allocation2 + $0x50] sm:$0x1]  ;;  %4284 = vmatprep.subr.bf16.mxu0 %v5175_v6  ;;  %4316 = vmatprep.subr.bf16.mxu1 %v5175_v6 }
  0xb7   : > { %3022 = vmatprep.mubr.bf16.mxu0 %v3846_v61  ;;  %v1122_v22 = vor.u32 %v1121_v12, %v1118_v11  ;;  %v770_v29 = vsel %vm4953_vm15, %v762_v17, %v769_v19  ;;  %v3855_v32 = vrot.slane %v1221_v20, 9  ;;  %v1298_v33 = vrot.slane %v1222_v26, 5  ;;  %860 = vst [vmem:[#allocation2 + $0x54] sm:$0xf] %v859_v30  ;;  %v1678_v58 = vld [vmem:[#allocation2 + $0xc] sm:$0xe] }
  0xb8   : > { %3023 = vmatmul.mubr.bf16.gmra.mrb[20].mxu0 %v4471_v57  ;;  %v1132_v36 = vor.u32 %v1131_v24, %v1127_v23  ;;  %v1137_v37 = vrot.slane %v1135_v25, 5  ;;  %861 = vst [vmem:[#allocation2 + $0x58] sm:$0xf] %v770_v29  ;;  %v1301_v38 = vrot.slane %v1223_v31, 5  ;;  %v771_v43 = vrot.slane %v766_v10, 4 }
  0xb9   : > { %v1123_v34 = vrot.slane %v1122_v22, 4  ;;  %v1299_v41 = vsel %vm4964_vm1, %v3855_v32, %v1298_v33  ;;  %v1300_v42 = vrot.slane %v1298_v33, 4  ;;  %v610_v44 = vsel %vm593_vm7, %v592_v21, 0  ;;  %v1679_v59 = vld [vmem:[#allocation2 + $0x10] sm:$0xf] }
  0xba   : > { %v1133_v47 = vrot.slane %v1132_v36, 4  ;;  %v3831_v49 = vcombine.low %v610_v44, %v610_v44  ;;  %v3832_v50 = vcombine.high %v610_v44, %v610_v44  ;;  %v863_v54 = vsel %vm4718_vm2, %v771_v43, %v862_v27  ;;  %v865_v63 = vld [vmem:[#allocation2 + $0x60] sm:$0xf]  ;;  %v1680_v1 = vld [vmem:[#allocation2 + $0x14] sm:$0x1] }
  0xbb   : > { %v1128_v46 = vsel %vm4934_vm12, %v1123_v34, %v1127_v23  ;;  %v1302_v53 = vsel %vm4964_vm1, %v1300_v42, %v1301_v38  ;;  %864 = vst [vmem:[#allocation2 + $0x5c] sm:$0x1] %v863_v54  ;;  %v3881_v4 = vrot.slane %v1678_v58, 9  ;;  %v1728_v5 = vrot.slane %v1679_v59, 5  ;;  %v1895_v19 = vld [vmem:[#allocation2 + $0x18] sm:$0xf] }
  0xbc   : > { %v1138_v55 = vsel %vm4934_vm12, %v1133_v47, %v1137_v37  ;;  %v773_v56 = vshrl.u32 %v3831_v49, 16  ;;  %v776_v57 = vshll.u32 %v3831_v49, 16  ;;  %v3863_v61 = vcombine.low %v1299_v41, %v1302_v53  ;;  %v1896_v40 = vld [vmem:[#allocation2 + $0x1c] sm:$0xf]  ;;  %v1897_v44 = vld [vmem:[#allocation2 + $0x20] sm:$0x1] }
  0xbd   : > { %v3847_v60 = vcombine.low %v1128_v46, %v1138_v55  ;;  %v781_v62 = vshrl.u32 %v3832_v50, 16  ;;  %v784_v3 = vshll.u32 %v3832_v50, 16  ;;  %v1731_v13 = vrot.slane %v1680_v1, 5  ;;  %v1422_v49 = vld [vmem:[#allocation2 + $0xc] sm:$0xf] }
  0xbe   : > { %v775_v2 = vrot.slane %v773_v56, 7  ;;  %v965_v9 = vld [vmem:[#allocation2 + $0x54] sm:$0xf]  ;;  %v1729_v24 = vsel %vm4964_vm1, %v3881_v4, %v1728_v5  ;;  %v1730_v38 = vrot.slane %v1728_v5, 4  ;;  %v1920_v45 = vshrl.u32 %v1895_v19, 16 }
  0xbf   : > { %3030 = vmatprep.mubr.bf16.mxu0 %v3847_v60  ;;  %v4476_v7 = vld [vmem:[#allocation2 + $0x54] sm:$0xff]   ;;  %v5177_v8 = vrot.slane %v781_v62, 7  ;;  %v1140_v14 = vshrl.u32 %v965_v9, 16  ;;  %v1143_v15 = vshll.u32 %v965_v9, 16  ;;  %v1929_v54 = vshll.u32 %v1896_v40, 16 }
  0xc0   : > { %3031 = vmatmul.mubr.bf16.gmra.mrb[24].mxu0 %v4477_v48  ;;  %v966_v10 = vld [vmem:[#allocation2 + $0x58] sm:$0xf]  ;;  %v778_v11 = vor.u32 %v776_v57, %v775_v2  ;;  %v779_v12 = vrot.slane %v775_v2, 4  ;;  %3127 = vmatprep.mubr.bf16.mxu1 %v4476_v7  ;;  %v1224_v22 = vld [vmem:[#allocation2 + $0x54] sm:$0xe]  ;;  %v1732_v39 = vsel %vm4964_vm1, %v1730_v38, %v1731_v13  ;;  %v1923_v48 = vshll.u32 %v1895_v19, 16 }
  0xc1   : > { %v1149_v16 = vshll.u32 %v966_v10, 16  ;;  %v1153_v17 = vshrl.u32 %v966_v10, 16  ;;  %3128 = vmatmul.mubr.bf16.gmra.mrb[24].mxu1 %v3863_v61  ;;  %v786_v20 = vor.u32 %v784_v3, %v5177_v8  ;;  %v1225_v23 = vld [vmem:[#allocation2 + $0x58] sm:$0xf]  ;;  %v1142_v26 = vrot.slane %v1140_v14, 4 }
  0xc2   : > { %v866_v21 = vsel %vm4945_vm14, %v778_v11, %v865_v63  ;;  %v967_v25 = vld [vmem:[#allocation2 + $0x5c] sm:$0x1]  ;;  %v1145_v27 = vrot.slane %v1143_v15, 5  ;;  %v3856_v33 = vrot.slane %v1224_v22, 9  ;;  %v1305_v34 = vrot.slane %v1225_v23, 5  ;;  %v4483_v58 = vld [vmem:[#allocation2 + $0x54] sm:$0xff]  }
  0xc3   : > { %v1151_v28 = vrot.slane %v1149_v16, 5  ;;  %v1155_v29 = vrot.slane %v1153_v17, 4  ;;  %867 = vst [vmem:[#allocation2 + $0x60] sm:$0xf] %v866_v21  ;;  %v1159_v30 = vshll.u32 %v967_v25, 16  ;;  %v787_v31 = vsel %vm4953_vm15, %v779_v12, %v786_v20 }
  0xc4   : > { %v1226_v32 = vld [vmem:[#allocation2 + $0x5c] sm:$0x1]  ;;  %v1146_v35 = vor.u32 %v1145_v27, %v1142_v26  ;;  %868 = vst [vmem:[#allocation2 + $0x64] sm:$0xf] %v787_v31  ;;  %v1306_v42 = vsel %vm4964_vm1, %v3856_v33, %v1305_v34  ;;  %v1307_v43 = vrot.slane %v1305_v34, 4  ;;  %v3889_v51 = vcombine.low %v1729_v24, %v1732_v39 }
  0xc5   : > { %v1156_v36 = vor.u32 %v1155_v29, %v1151_v28  ;;  %v1308_v37 = vrot.slane %v1226_v32, 5  ;;  %v1161_v41 = vrot.slane %v1159_v30, 5  ;;  %v1922_v53 = vrot.slane %v1920_v45, 4  ;;  %v1423_v55 = vld [vmem:[#allocation2 + $0x10] sm:$0xf]  ;;  %v4488_v39 = vld [vmem:[#allocation2 + $0x18] sm:$0xff]  }
  0xc6   : > { %v1147_v46 = vrot.slane %v1146_v35, 4  ;;  %v1925_v60 = vrot.slane %v1923_v48, 5  ;;  %v1424_v61 = vld [vmem:[#allocation2 + $0x14] sm:$0x1]  ;;  %v1931_v63 = vrot.slane %v1929_v54, 5  ;;  %v1933_v1 = vshrl.u32 %v1896_v40, 16 }
  0xc7   : > { %v1157_v47 = vrot.slane %v1156_v36, 4  ;;  %v1309_v50 = vsel %vm4964_vm1, %v1307_v43, %v1308_v37  ;;  %v1939_v2 = vshll.u32 %v1897_v44, 16  ;;  %v1447_v4 = vshrl.u32 %v1422_v49, 16  ;;  %v1681_v17 = vld [vmem:[#allocation2 + $0x18] sm:$0xe] }
  0xc8   : > { %v1152_v56 = vsel %vm4934_vm12, %v1147_v46, %v1151_v28  ;;  %v3864_v59 = vcombine.low %v1306_v42, %v1309_v50  ;;  %v1926_v3 = vor.u32 %v1925_v60, %v1922_v53  ;;  %v1450_v5 = vshll.u32 %v1422_v49, 16  ;;  %v1682_v22 = vld [vmem:[#allocation2 + $0x1c] sm:$0xf]  ;;  %v1683_v23 = vld [vmem:[#allocation2 + $0x20] sm:$0x1]  ;;  %v4491_v60 = vld [vmem:[%s5607_s3 + $0x208] sm:$0xff]  }
  0xc9   : > { %v1162_v57 = vsel %vm4934_vm12, %v1157_v47, %v1161_v41  ;;  %v1456_v7 = vshll.u32 %v1423_v55, 16  ;;  %v1935_v10 = vrot.slane %v1933_v1, 4  ;;  %v1941_v11 = vrot.slane %v1939_v2, 5  ;;  %v1898_v28 = vld [vmem:[#allocation2 + $0x24] sm:$0xf] }
  0xca   : > { %v3848_v62 = vcombine.low %v1152_v56, %v1162_v57  ;;  %v1460_v12 = vshrl.u32 %v1423_v55, 16  ;;  %v1927_v13 = vrot.slane %v1926_v3, 4  ;;  %v1449_v14 = vrot.slane %v1447_v4, 4  ;;  %v1899_v29 = vld [vmem:[#allocation2 + $0x28] sm:$0xf] }
  0xcb   : > { %v4482_v9 = vld [vmem:[#allocation2 + $0x60] sm:$0xff]   ;;  %v1452_v15 = vrot.slane %v1450_v5, 5  ;;  %v1458_v16 = vrot.slane %v1456_v7, 5  ;;  %v1936_v19 = vor.u32 %v1935_v10, %v1931_v63  ;;  %v1466_v21 = vshll.u32 %v1424_v61, 16  ;;  %v1900_v34 = vld [vmem:[#allocation2 + $0x2c] sm:$0x1] }
  0xcc   : > { %3038 = vmatprep.mubr.bf16.mxu0 %v3848_v62  ;;  %3135 = vmatprep.mubr.bf16.mxu1 %v4482_v9  ;;  %v1462_v20 = vrot.slane %v1460_v12, 4  ;;  %v1932_v24 = vsel %vm4934_vm12, %v1927_v13, %v1931_v63  ;;  %v3882_v26 = vrot.slane %v1681_v17, 9  ;;  %v1735_v27 = vrot.slane %v1682_v22, 5  ;;  %v1425_v40 = vld [vmem:[#allocation2 + $0x18] sm:$0xf] }
  0xcd   : > { %3039 = vmatmul.mubr.bf16.gmra.mrb[28].mxu0 %v4483_v58  ;;  %3136 = vmatmul.mubr.bf16.gmra.mrb[28].mxu1 %v3864_v59  ;;  %v1453_v25 = vor.u32 %v1452_v15, %v1449_v14  ;;  %v1937_v30 = vrot.slane %v1936_v19, 4  ;;  %v1468_v32 = vrot.slane %v1466_v21, 5  ;;  %v1738_v33 = vrot.slane %v1683_v23, 5  ;;  %v1426_v45 = vld [vmem:[#allocation2 + $0x1c] sm:$0xf]  ;;  %v4493_v21 = vld [vmem:[%s5607_s3 + $0x210] sm:$0xff]  }
  0xce   : > { %3176 = vmatprep.mubr.bf16.mxu0 %v3889_v51  ;;  %v1463_v31 = vor.u32 %v1462_v20, %v1458_v16  ;;  %v1736_v36 = vsel %vm4964_vm1, %v3882_v26, %v1735_v27  ;;  %v1737_v37 = vrot.slane %v1735_v27, 4  ;;  %v1944_v38 = vshrl.u32 %v1898_v28, 16  ;;  %v1427_v50 = vld [vmem:[#allocation2 + $0x20] sm:$0x1]  ;;  %v1684_v2 = vld [vmem:[#allocation2 + $0x24] sm:$0xe] }
  0xcf   : > { %v1454_v35 = vrot.slane %v1453_v25, 4  ;;  %v1942_v41 = vsel %vm4934_vm12, %v1937_v30, %v1941_v11  ;;  %v1947_v43 = vshll.u32 %v1898_v28, 16  ;;  %v1953_v44 = vshll.u32 %v1899_v29, 16  ;;  %v1685_v9 = vld [vmem:[#allocation2 + $0x28] sm:$0xf] }
  0xd0   : > { %v1464_v42 = vrot.slane %v1463_v31, 4  ;;  %v3905_v46 = vcombine.low %v1932_v24, %v1942_v41  ;;  %v1739_v48 = vsel %vm4964_vm1, %v1737_v37, %v1738_v33  ;;  %v1946_v49 = vrot.slane %v1944_v38, 4  ;;  %v1686_v14 = vld [vmem:[#allocation2 + $0x2c] sm:$0x1]  ;;  %v1901_v20 = vld [vmem:[#allocation2 + $0x30] sm:$0xf] }
  0xd1   : > { %v1459_v47 = vsel %vm4934_vm12, %v1454_v35, %v1458_v16  ;;  %v3890_v53 = vcombine.low %v1736_v36, %v1739_v48  ;;  %v1949_v54 = vrot.slane %v1947_v43, 5  ;;  %v1955_v55 = vrot.slane %v1953_v44, 5  ;;  %v1902_v25 = vld [vmem:[#allocation2 + $0x34] sm:$0xf]  ;;  %v4490_v27 = vld [vmem:[#allocation2 + $0x24] sm:$0xff]  }
  0xd2   : > { %v1469_v51 = vsel %vm4934_vm12, %v1464_v42, %v1468_v32  ;;  %3273 = vmatprep.mubr.bf16.mxu1 %v3905_v46  ;;  %v1957_v57 = vshrl.u32 %v1899_v29, 16  ;;  %v1963_v58 = vshll.u32 %v1900_v34, 16  ;;  %v1471_v59 = vshrl.u32 %v1425_v40, 16  ;;  %v1903_v30 = vld [vmem:[#allocation2 + $0x38] sm:$0x1] }
  0xd3   : > { %v3873_v56 = vcombine.low %v1459_v47, %v1469_v51  ;;  %v1950_v61 = vor.u32 %v1949_v54, %v1946_v49  ;;  %v1474_v62 = vshll.u32 %v1425_v40, 16  ;;  %v1480_v63 = vshll.u32 %v1426_v45, 16  ;;  %v1428_v32 = vld [vmem:[#allocation2 + $0x24] sm:$0xf]  ;;  %v1429_v37 = vld [vmem:[#allocation2 + $0x28] sm:$0xf] }
  0xd4   : > { %v1484_v1 = vshrl.u32 %v1426_v45, 16  ;;  %v1959_v3 = vrot.slane %v1957_v57, 4  ;;  %v1965_v4 = vrot.slane %v1963_v58, 5  ;;  %v1473_v5 = vrot.slane %v1471_v59, 4  ;;  %v1430_v43 = vld [vmem:[#allocation2 + $0x2c] sm:$0x1] }
  0xd5   : > { %3177 = vmatmul.mubr.bf16.vlgmr.msra.gmra.mrb[32].mxu0 %v3873_v56  ;;  %3274 = vmatmul.mubr.bf16.vlgmr.msra.gmra.mrb[32].mxu1 %v4488_v39  ;;  %v1490_v7 = vshll.u32 %v1427_v50, 16  ;;  %v1951_v10 = vrot.slane %v1950_v61, 4  ;;  %v1476_v11 = vrot.slane %v1474_v62, 5  ;;  %v1482_v12 = vrot.slane %v1480_v63, 5  ;;  %v4495_v51 = vld [vmem:[%s5607_s3 + $0x218] sm:$0xff]  }
  0xd6   : > { %4285 = vmatpush3.bf16.msra.mxu0 %v5175_v6  ;;  %4324 = vmatpush3.bf16.msra.mxu1 %v5175_v6  ;;  %v1486_v13 = vrot.slane %v1484_v1, 4  ;;  %v1960_v15 = vor.u32 %v1959_v3, %v1955_v55  ;;  %v3883_v17 = vrot.slane %v1684_v2, 9  ;;  %v1742_v19 = vrot.slane %v1685_v9, 5  ;;  %v1687_v58 = vld [vmem:[#allocation2 + $0x30] sm:$0xe] }
  0xd7   : > { %3184 = vmatprep.mubr.bf16.mxu0 %v3890_v53  ;;  %v1492_v16 = vrot.slane %v1490_v7, 5  ;;  %4286 = vmatprep.subr.bf16.mxu0 %v4491_v60  ;;  %v1956_v22 = vsel %vm4934_vm12, %v1951_v10, %v1955_v55  ;;  %v1477_v6 = vor.u32 %v1476_v11, %v1473_v5  ;;  %v1745_v24 = vrot.slane %v1686_v14, 5  ;;  %v5236_v53 = vld [vmem:[%s5607_s3 + $0x220] sm:$0xff]   ;;  %v1688_v63 = vld [vmem:[#allocation2 + $0x34] sm:$0xf] }
  0xd8   : > { %v1487_v23 = vor.u32 %v1486_v13, %v1482_v12  ;;  %4317 = vmatprep.subr.bf16.mxu1 %v4491_v60  ;;  %v1961_v26 = vrot.slane %v1960_v15, 4  ;;  %v1743_v28 = vsel %vm4964_vm1, %v3883_v17, %v1742_v19  ;;  %v1744_v29 = vrot.slane %v1742_v19, 4  ;;  %v1689_v1 = vld [vmem:[#allocation2 + $0x38] sm:$0x1]  ;;  %v1904_v7 = vld [vmem:[#allocation2 + $0x3c] sm:$0xf] }
  0xd9   : > { %v1968_v31 = vshrl.u32 %v1901_v20, 16  ;;  %v1478_v33 = vrot.slane %v1477_v6, 4  ;;  %v1971_v35 = vshll.u32 %v1901_v20, 16  ;;  %v1977_v36 = vshll.u32 %v1902_v25, 16  ;;  %v4492_v14 = vld [vmem:[#allocation2 + $0x30] sm:$0xff]  }
  0xda   : > { %v1488_v34 = vrot.slane %v1487_v23, 4  ;;  %4287 = vmatpush3.bf16.msra.mxu0 %v4491_v60  ;;  %4325 = vmatpush3.bf16.msra.mxu1 %v4491_v60  ;;  %v1966_v38 = vsel %vm4934_vm12, %v1961_v26, %v1965_v4  ;;  %v1746_v40 = vsel %vm4964_vm1, %v1744_v29, %v1745_v24  ;;  %v1981_v42 = vshrl.u32 %v1902_v25, 16  ;;  %v1905_v19 = vld [vmem:[#allocation2 + $0x40] sm:$0xf]  ;;  %v1906_v6 = vld [vmem:[#allocation2 + $0x44] sm:$0x1] }
  0xdb   : > { %v1970_v41 = vrot.slane %v1968_v31, 4  ;;  %4288 = vmatprep.subr.bf16.mxu0 %v4493_v21  ;;  %4318 = vmatprep.subr.bf16.mxu1 %v4493_v21  ;;  %v3906_v44 = vcombine.low %v1956_v22, %v1966_v38  ;;  %v1483_v45 = vsel %vm4934_vm12, %v1478_v33, %v1482_v12  ;;  %v3891_v47 = vcombine.low %v1743_v28, %v1746_v40  ;;  %v1431_v24 = vld [vmem:[#allocation2 + $0x30] sm:$0xf]  ;;  %v4499_v25 = vld [vmem:[%s5607_s3 + $0x228] sm:$0xff]   ;;  %v1432_v38 = vld [vmem:[#allocation2 + $0x34] sm:$0xf] }
  0xdc   : > { %v1493_v46 = vsel %vm4934_vm12, %v1488_v34, %v1492_v16  ;;  %v1973_v48 = vrot.slane %v1971_v35, 5  ;;  %v1979_v49 = vrot.slane %v1977_v36, 5  ;;  %v1983_v50 = vrot.slane %v1981_v42, 4 }
  0xdd   : > { %v3874_v39 = vcombine.low %v1483_v45, %v1493_v46  ;;  %3281 = vmatprep.mubr.bf16.mxu1 %v3906_v44  ;;  %v1987_v54 = vshll.u32 %v1903_v30, 16  ;;  %v1495_v55 = vshrl.u32 %v1428_v32, 16  ;;  %v1498_v56 = vshll.u32 %v1428_v32, 16  ;;  %v1433_v44 = vld [vmem:[#allocation2 + $0x38] sm:$0x1] }
  0xde   : > { %v1504_v57 = vshll.u32 %v1429_v37, 16  ;;  %4289 = vmatpush3.bf16.msra.mxu0 %v4493_v21  ;;  %3282 = vmatmul.mubr.bf16.gmra.mrb[36].mxu1 %v4490_v27  ;;  %v1974_v59 = vor.u32 %v1973_v48, %v1970_v41  ;;  %v1984_v60 = vor.u32 %v1983_v50, %v1979_v49  ;;  %v1508_v61 = vshrl.u32 %v1429_v37, 16  ;;  %v1690_v45 = vld [vmem:[#allocation2 + $0x3c] sm:$0xe]  ;;  %v4501_v50 = vld [vmem:[%s5607_s3 + $0x230] sm:$0xff]  }
  0xdf   : > { %3185 = vmatmul.mubr.bf16.gmra.mrb[36].mxu0 %v3874_v39  ;;  %v1514_v62 = vshll.u32 %v1430_v43, 16  ;;  %v1989_v2 = vrot.slane %v1987_v54, 5  ;;  %v1497_v3 = vrot.slane %v1495_v55, 4  ;;  %v1500_v4 = vrot.slane %v1498_v56, 5  ;;  %4326 = vmatpush3.bf16.msra.mxu1 %v4493_v21 }
  0xe0   : > { %3192 = vmatprep.mubr.bf16.mxu0 %v3891_v47  ;;  %v1506_v5 = vrot.slane %v1504_v57, 5  ;;  %v1975_v9 = vrot.slane %v1974_v59, 4  ;;  %v1985_v10 = vrot.slane %v1984_v60, 4  ;;  %v1510_v11 = vrot.slane %v1508_v61, 4  ;;  %4290 = vmatprep.subr.bf16.mxu0 %v4495_v51  ;;  %v1692_v57 = vld [vmem:[#allocation2 + $0x44] sm:$0x1] }
  0xe1   : > { %v1516_v12 = vrot.slane %v1514_v62, 5  ;;  %4319 = vmatprep.subr.bf16.mxu1 %v4495_v51  ;;  %v1501_v13 = vor.u32 %v1500_v4, %v1497_v3  ;;  %v3884_v15 = vrot.slane %v1687_v58, 9  ;;  %v1749_v16 = vrot.slane %v1688_v63, 5  ;;  %v1907_v62 = vld [vmem:[#allocation2 + $0x48] sm:$0xf]  ;;  %v4503_v3 = vld [vmem:[%s5607_s3 + $0x238] sm:$0xff]  }
  0xe2   : > { %v1752_v17 = vrot.slane %v1689_v1, 5  ;;  %4291 = vmatpush3.bf16.msra.mxu0 %v4495_v51  ;;  %v1980_v20 = vsel %vm4934_vm12, %v1975_v9, %v1979_v49  ;;  %v1990_v21 = vsel %vm4934_vm12, %v1985_v10, %v1989_v2  ;;  %v1511_v22 = vor.u32 %v1510_v11, %v1506_v5  ;;  %v1691_v49 = vld [vmem:[#allocation2 + $0x40] sm:$0xf]  ;;  %v1908_v10 = vld [vmem:[#allocation2 + $0x4c] sm:$0xf] }
  0xe3   : > { %v1992_v23 = vshrl.u32 %v1904_v7, 16  ;;  %4292 = vmatprep.subr.bf16.mxu0 %v5236_v53  ;;  %v3907_v26 = vcombine.low %v1980_v20, %v1990_v21  ;;  %v1502_v27 = vrot.slane %v1501_v13, 4  ;;  %v1750_v28 = vsel %vm4964_vm1, %v3884_v15, %v1749_v16  ;;  %4327 = vmatpush3.bf16.msra.mxu1 %v4495_v51  ;;  %v1909_v15 = vld [vmem:[#allocation2 + $0x50] sm:$0x1] }
  0xe4   : > { %v1751_v29 = vrot.slane %v1749_v16, 4  ;;  %v1512_v30 = vrot.slane %v1511_v22, 4  ;;  %v1995_v32 = vshll.u32 %v1904_v7, 16  ;;  %v2001_v33 = vshll.u32 %v1905_v19, 16  ;;  %4320 = vmatprep.subr.bf16.mxu1 %v5236_v53  ;;  %v1434_v22 = vld [vmem:[#allocation2 + $0x3c] sm:$0xf] }
  0xe5   : > { %v1994_v31 = vrot.slane %v1992_v23, 4  ;;  %3289 = vmatprep.mubr.bf16.mxu1 %v3907_v26  ;;  %v1507_v34 = vsel %vm4934_vm12, %v1502_v27, %v1506_v5  ;;  %v2005_v36 = vshrl.u32 %v1905_v19, 16  ;;  %v2011_v37 = vshll.u32 %v1906_v6, 16 }
  0xe6   : > { %v1753_v35 = vsel %vm4964_vm1, %v1751_v29, %v1752_v17  ;;  %4293 = vmatpush3.bf16.msra.mxu0 %v5236_v53  ;;  %v1517_v40 = vsel %vm4934_vm12, %v1512_v30, %v1516_v12  ;;  %3290 = vmatmul.mubr.bf16.gmra.mrb[40].mxu1 %v4492_v14  ;;  %v1997_v42 = vrot.slane %v1995_v32, 5  ;;  %v2003_v43 = vrot.slane %v2001_v33, 5  ;;  %v4494_v14 = vld [vmem:[#allocation2 + $0x3c] sm:$0xff]  }
  0xe7   : > { %v3892_v41 = vcombine.low %v1750_v28, %v1753_v35  ;;  %4294 = vmatprep.subr.bf16.mxu0 %v4499_v25  ;;  %v3875_v46 = vcombine.low %v1507_v34, %v1517_v40  ;;  %v2007_v47 = vrot.slane %v2005_v36, 4  ;;  %v2013_v39 = vrot.slane %v2011_v37, 5  ;;  %4328 = vmatpush3.bf16.msra.mxu1 %v5236_v53  ;;  %v1435_v30 = vld [vmem:[#allocation2 + $0x40] sm:$0xf]  ;;  %v1436_v35 = vld [vmem:[#allocation2 + $0x44] sm:$0x1] }
  0xe8   : > { %v1519_v48 = vshrl.u32 %v1431_v24, 16  ;;  %v1998_v51 = vor.u32 %v1997_v42, %v1994_v31  ;;  %v1522_v54 = vshll.u32 %v1431_v24, 16  ;;  %v1528_v55 = vshll.u32 %v1432_v38, 16  ;;  %4321 = vmatprep.subr.bf16.mxu1 %v4499_v25  ;;  %v1694_v42 = vld [vmem:[#allocation2 + $0x4c] sm:$0xf] }
  0xe9   : > { %v1532_v56 = vshrl.u32 %v1432_v38, 16  ;;  %3193 = vmatmul.mubr.bf16.gmra.mrb[40].mxu0 %v3875_v46  ;;  %v2008_v58 = vor.u32 %v2007_v47, %v2003_v43  ;;  %v1538_v60 = vshll.u32 %v1433_v44, 16  ;;  %v3885_v61 = vrot.slane %v1690_v45, 9  ;;  %v1695_v47 = vld [vmem:[#allocation2 + $0x50] sm:$0x1] }
  0xea   : > { %v1521_v59 = vrot.slane %v1519_v48, 4  ;;  %3200 = vmatprep.mubr.bf16.mxu0 %v3892_v41  ;;  %v1999_v63 = vrot.slane %v1998_v51, 4  ;;  %v1524_v1 = vrot.slane %v1522_v54, 5  ;;  %v1530_v53 = vrot.slane %v1528_v55, 5  ;;  %4295 = vmatpush3.bf16.msra.mxu0 %v4499_v25  ;;  %v1693_v41 = vld [vmem:[#allocation2 + $0x48] sm:$0xe] }
  0xeb   : > { %v1534_v2 = vrot.slane %v1532_v56, 4  ;;  %v2009_v4 = vrot.slane %v2008_v58, 4  ;;  %v1540_v5 = vrot.slane %v1538_v60, 5  ;;  %v1756_v7 = vrot.slane %v1691_v49, 5  ;;  %4329 = vmatpush3.bf16.msra.mxu1 %v4499_v25  ;;  %4296 = vmatprep.subr.bf16.mxu0 %v4501_v50  ;;  %v1910_v51 = vld [vmem:[#allocation2 + $0x54] sm:$0xf] }
  0xec   : > { %v1759_v9 = vrot.slane %v1692_v57, 5  ;;  %v2004_v11 = vsel %vm4934_vm12, %v1999_v63, %v2003_v43  ;;  %v1525_v12 = vor.u32 %v1524_v1, %v1521_v59  ;;  %v2016_v16 = vshrl.u32 %v1907_v62, 16  ;;  %4322 = vmatprep.subr.bf16.mxu1 %v4501_v50  ;;  %v1911_v58 = vld [vmem:[#allocation2 + $0x58] sm:$0xf]  ;;  %v1912_v63 = vld [vmem:[#allocation2 + $0x5c] sm:$0x1] }
  0xed   : > { %v1535_v13 = vor.u32 %v1534_v2, %v1530_v53  ;;  %v2014_v17 = vsel %vm4934_vm12, %v2009_v4, %v2013_v39  ;;  %v1757_v19 = vsel %vm4964_vm1, %v3885_v61, %v1756_v7  ;;  %v1758_v20 = vrot.slane %v1756_v7, 4 }
  0xee   : > { %v2019_v21 = vshll.u32 %v1907_v62, 16  ;;  %v3908_v6 = vcombine.low %v2004_v11, %v2014_v17  ;;  %v1526_v23 = vrot.slane %v1525_v12, 4  ;;  %v2018_v25 = vrot.slane %v2016_v16, 4  ;;  %4297 = vmatpush3.bf16.msra.mxu0 %v4501_v50 }
  0xef   : > { %v1536_v24 = vrot.slane %v1535_v13, 4  ;;  %v1760_v26 = vsel %vm4964_vm1, %v1758_v20, %v1759_v9  ;;  %v2025_v28 = vshll.u32 %v1908_v10, 16  ;;  %v2029_v29 = vshrl.u32 %v1908_v10, 16  ;;  %4330 = vmatpush3.bf16.msra.mxu1 %v4501_v50  ;;  %4298 = vmatprep.subr.bf16.mxu0 %v4503_v3 }
  0xf0   : > { %v2021_v27 = vrot.slane %v2019_v21, 5  ;;  %3297 = vmatprep.mubr.bf16.mxu1 %v3908_v6  ;;  %v1531_v31 = vsel %vm4934_vm12, %v1526_v23, %v1530_v53  ;;  %v3893_v33 = vcombine.low %v1757_v19, %v1760_v26  ;;  %v2035_v34 = vshll.u32 %v1909_v15, 16  ;;  %4323 = vmatprep.subr.bf16.mxu1 %v4503_v3  ;;  %v4496_v53 = vld [vmem:[#allocation2 + $0x48] sm:$0xff]  }
  0xf1   : > { %v1541_v32 = vsel %vm4934_vm12, %v1536_v24, %v1540_v5  ;;  %3298 = vmatmul.mubr.bf16.gmra.mrb[44].mxu1 %v4494_v14  ;;  %v2027_v38 = vrot.slane %v2025_v28, 5  ;;  %v2031_v40 = vrot.slane %v2029_v29, 4  ;;  %v1543_v44 = vshrl.u32 %v1434_v22, 16  ;;  %v1437_v15 = vld [vmem:[#allocation2 + $0x48] sm:$0xf] }
  0xf2   : > { %v3876_v36 = vcombine.low %v1531_v31, %v1541_v32  ;;  %v2022_v37 = vor.u32 %v2021_v27, %v2018_v25  ;;  %v2037_v43 = vrot.slane %v2035_v34, 5  ;;  %v1546_v45 = vshll.u32 %v1434_v22, 16  ;;  %4299 = vmatpush3.bf16.msra.mxu0 %v4503_v3  ;;  %v1438_v24 = vld [vmem:[#allocation2 + $0x4c] sm:$0xf]  ;;  %v1439_v28 = vld [vmem:[#allocation2 + $0x50] sm:$0x1] }
  0xf3   : > { %v1552_v46 = vshll.u32 %v1435_v30, 16  ;;  %v2032_v48 = vor.u32 %v2031_v40, %v2027_v38  ;;  %v1556_v49 = vshrl.u32 %v1435_v30, 16  ;;  %v1562_v50 = vshll.u32 %v1436_v35, 16  ;;  %4331 = vmatpush3.bf16.msra.mxu1 %v4503_v3  ;;  %v1696_v30 = vld [vmem:[#allocation2 + $0x54] sm:$0xe] }
  0xf4   : > { %3201 = vmatmul.mubr.bf16.gmra.mrb[44].mxu0 %v3876_v36  ;;  %v2023_v39 = vrot.slane %v2022_v37, 4  ;;  %v1545_v54 = vrot.slane %v1543_v44, 4  ;;  %v1548_v55 = vrot.slane %v1546_v45, 5  ;;  %v3886_v57 = vrot.slane %v1693_v41, 9  ;;  %v1697_v35 = vld [vmem:[#allocation2 + $0x58] sm:$0xf] }
  0xf5   : > { %3208 = vmatprep.mubr.bf16.mxu0 %v3893_v33  ;;  %v1554_v56 = vrot.slane %v1552_v46, 5  ;;  %v2033_v60 = vrot.slane %v2032_v48, 4  ;;  %v1558_v61 = vrot.slane %v1556_v49, 4  ;;  %v1564_v62 = vrot.slane %v1562_v50, 5  ;;  %v1698_v41 = vld [vmem:[#allocation2 + $0x5c] sm:$0x1] }
  0xf6   : > { %v2028_v59 = vsel %vm4934_vm12, %v2023_v39, %v2027_v38  ;;  %v1549_v1 = vor.u32 %v1548_v55, %v1545_v54  ;;  %v1763_v2 = vrot.slane %v1694_v42, 5  ;;  %v1766_v4 = vrot.slane %v1695_v47, 5  ;;  %v869_v46 = vld [vmem:[#allocation2 + $0x68] sm:$0x1]  ;;  %v1913_v47 = vld [vmem:[#allocation2 + $0x60] sm:$0xf] }
  0xf7   : > { %v2040_v5 = vshrl.u32 %v1910_v51, 16  ;;  %v2038_v3 = vsel %vm4934_vm12, %v2033_v60, %v2037_v43  ;;  %v1559_v7 = vor.u32 %v1558_v61, %v1554_v56  ;;  %v2043_v9 = vshll.u32 %v1910_v51, 16 }
  0xf8   : > { %v2049_v10 = vshll.u32 %v1911_v58, 16  ;;  %v3909_v11 = vcombine.low %v2028_v59, %v2038_v3  ;;  %v1550_v12 = vrot.slane %v1549_v1, 4  ;;  %v1764_v13 = vsel %vm4964_vm1, %v3886_v57, %v1763_v2  ;;  %v1914_v57 = vld [vmem:[#allocation2 + $0x64] sm:$0xf]  ;;  %v4498_v1 = vld [vmem:[#allocation2 + $0x54] sm:$0xff]  }
  0xf9   : > { %v1765_v14 = vrot.slane %v1763_v2, 4  ;;  %v1560_v16 = vrot.slane %v1559_v7, 4  ;;  %v2042_v17 = vrot.slane %v2040_v5, 4  ;;  %v2045_v19 = vrot.slane %v2043_v9, 5 }
  0xfa   : > { %v2051_v20 = vrot.slane %v2049_v10, 5  ;;  %3305 = vmatprep.mubr.bf16.mxu1 %v3909_v11  ;;  %v1555_v21 = vsel %vm4934_vm12, %v1550_v12, %v1554_v56  ;;  %v2053_v6 = vshrl.u32 %v1911_v58, 16  ;;  %v2059_v23 = vshll.u32 %v1912_v63, 16  ;;  %v1441_v10 = vld [vmem:[#allocation2 + $0x58] sm:$0xf] }
  0xfb   : > { %v1767_v22 = vsel %vm4964_vm1, %v1765_v14, %v1766_v4  ;;  %v1565_v25 = vsel %vm4934_vm12, %v1560_v16, %v1564_v62  ;;  %3306 = vmatmul.mubr.bf16.gmra.mrb[48].mxu1 %v4496_v53  ;;  %v2046_v27 = vor.u32 %v2045_v19, %v2042_v17  ;;  %v1567_v29 = vshrl.u32 %v1437_v15, 16  ;;  %v1440_v4 = vld [vmem:[#allocation2 + $0x54] sm:$0xf]  ;;  %v1442_v14 = vld [vmem:[#allocation2 + $0x5c] sm:$0x1] }
  0xfc   : > { %v3894_v26 = vcombine.low %v1764_v13, %v1767_v22  ;;  %v3877_v31 = vcombine.low %v1555_v21, %v1565_v25  ;;  %v2055_v32 = vrot.slane %v2053_v6, 4  ;;  %v2061_v33 = vrot.slane %v2059_v23, 5  ;;  %v1700_v21 = vld [vmem:[#allocation2 + $0x64] sm:$0xf] }
  0xfd   : > { %v1570_v34 = vshll.u32 %v1437_v15, 16  ;;  %v2047_v36 = vrot.slane %v2046_v27, 4  ;;  %v1569_v37 = vrot.slane %v1567_v29, 4  ;;  %v1576_v38 = vshll.u32 %v1438_v24, 16  ;;  %v1699_v15 = vld [vmem:[#allocation2 + $0x60] sm:$0xe] }
  0xfe   : > { %v1580_v40 = vshrl.u32 %v1438_v24, 16  ;;  %3209 = vmatmul.mubr.bf16.gmra.mrb[48].mxu0 %v3877_v31  ;;  %v2056_v42 = vor.u32 %v2055_v32, %v2051_v20  ;;  %v1586_v44 = vshll.u32 %v1439_v28, 16  ;;  %v3887_v45 = vrot.slane %v1696_v30, 9  ;;  %v1916_v24 = vld [vmem:[#allocation2 + $0x6c] sm:$0xf] }
  0xff   : > { %v1572_v43 = vrot.slane %v1570_v34, 5  ;;  %3216 = vmatprep.mubr.bf16.mxu0 %v3894_v26  ;;  %v2052_v39 = vsel %vm4934_vm12, %v2047_v36, %v2051_v20  ;;  %v1578_v48 = vrot.slane %v1576_v38, 5  ;;  %v1770_v50 = vrot.slane %v1697_v35, 5 }
 0x100   : > { %v1582_v49 = vrot.slane %v1580_v40, 4  ;;  %v2057_v51 = vrot.slane %v2056_v42, 4  ;;  %v1588_v55 = vrot.slane %v1586_v44, 5  ;;  %v1773_v56 = vrot.slane %v1698_v41, 5  ;;  %v1917_v41 = vld [vmem:[#allocation2 + $0x70] sm:$0xf] }
 0x101   : > { %v1573_v54 = vor.u32 %v1572_v43, %v1569_v37  ;;  %v1771_v59 = vsel %vm4964_vm1, %v3887_v45, %v1770_v50  ;;  %v1772_v60 = vrot.slane %v1770_v50, 4  ;;  %v788_v61 = vrot.slane %v5177_v8, 4  ;;  %v1918_v42 = vld [vmem:[#allocation2 + $0x74] sm:$0x1] }
 0x102   : > { %v1583_v58 = vor.u32 %v1582_v49, %v1578_v48  ;;  %v2062_v62 = vsel %vm4934_vm12, %v2057_v51, %v2061_v33  ;;  %v2064_v53 = vshrl.u32 %v1913_v47, 16  ;;  %v2067_v2 = vshll.u32 %v1913_v47, 16 }
 0x103   : > { %v1574_v63 = vrot.slane %v1573_v54, 4  ;;  %v3910_v5 = vcombine.low %v2052_v39, %v2062_v62  ;;  %v1774_v7 = vsel %vm4964_vm1, %v1772_v60, %v1773_v56  ;;  %v870_v9 = vsel %vm4718_vm2, %v788_v61, %v869_v46 }
 0x104   : > { %v1584_v3 = vrot.slane %v1583_v58, 4  ;;  %v3895_v11 = vcombine.low %v1771_v59, %v1774_v7  ;;  %871 = vst [vmem:[#allocation2 + $0x68] sm:$0x1] %v870_v9  ;;  %v2066_v12 = vrot.slane %v2064_v53, 4  ;;  %v2069_v13 = vrot.slane %v2067_v2, 5 }
 0x105   : > { %v1579_v8 = vsel %vm4934_vm12, %v1574_v63, %v1578_v48  ;;  %3313 = vmatprep.mubr.bf16.mxu1 %v3910_v5  ;;  %v2073_v17 = vshll.u32 %v1914_v57, 16  ;;  %v2077_v19 = vshrl.u32 %v1914_v57, 16  ;;  %v1591_v20 = vshrl.u32 %v1440_v4, 16  ;;  %v1443_v63 = vld [vmem:[#allocation2 + $0x60] sm:$0xf] }
 0x106   : > { %v1589_v16 = vsel %vm4934_vm12, %v1584_v3, %v1588_v55  ;;  %3314 = vmatmul.mubr.bf16.gmra.mrb[52].mxu1 %v4498_v1  ;;  %v2070_v22 = vor.u32 %v2069_v13, %v2066_v12  ;;  %v1594_v6 = vshll.u32 %v1440_v4, 16  ;;  %v1600_v23 = vshll.u32 %v1441_v10, 16  ;;  %v1444_v5 = vld [vmem:[#allocation2 + $0x64] sm:$0xf]  ;;  %v2151_v12 = vld [vmem:[#allocation2 + $0x18] sm:$0xe] }
 0x107   : > { %v3878_v0 = vcombine.low %v1579_v8, %v1589_v16  ;;  %v2075_v25 = vrot.slane %v2073_v17, 5  ;;  %v2079_v26 = vrot.slane %v2077_v19, 4  ;;  %v1593_v27 = vrot.slane %v1591_v20, 4  ;;  %v2152_v17 = vld [vmem:[#allocation2 + $0x1c] sm:$0xf] }
 0x108   : > { %v1604_v28 = vshrl.u32 %v1441_v10, 16  ;;  %v2071_v29 = vrot.slane %v2070_v22, 4  ;;  %v1596_v30 = vrot.slane %v1594_v6, 5  ;;  %v1602_v31 = vrot.slane %v1600_v23, 5  ;;  %v4500_v10 = vld [vmem:[#allocation2 + $0x60] sm:$0xff]  }
 0x109   : > { %3217 = vmatmul.mubr.bf16.gmra.mrb[52].mxu0 %v3878_v0  ;;  %v1610_v32 = vshll.u32 %v1442_v14, 16  ;;  %v2080_v33 = vor.u32 %v2079_v26, %v2075_v25  ;;  %v3888_v35 = vrot.slane %v1699_v15, 9  ;;  %v1777_v36 = vrot.slane %v1700_v21, 5  ;;  %v2153_v19 = vld [vmem:[#allocation2 + $0x20] sm:$0x1] }
 0x10a   : > { %3224 = vmatprep.mubr.bf16.mxu0 %v3895_v11  ;;  %v1606_v34 = vrot.slane %v1604_v28, 4  ;;  %v2076_v37 = vsel %vm4934_vm12, %v2071_v29, %v2075_v25  ;;  %v1597_v38 = vor.u32 %v1596_v30, %v1593_v27  ;;  %v2088_v43 = vshrl.u32 %v1916_v24, 16  ;;  %v2163_v6 = vld [vmem:[#allocation2 + $0x48] sm:$0xe]  ;;  %v2164_v27 = vld [vmem:[#allocation2 + $0x4c] sm:$0xf] }
 0x10b   : > { %v1612_v40 = vrot.slane %v1610_v32, 5  ;;  %v1915_v44 = vld [vmem:[#allocation2 + $0x68] sm:$0x1]  ;;  %v2081_v45 = vrot.slane %v2080_v33, 4  ;;  %v1778_v39 = vsel %vm4964_vm1, %v3888_v35, %v1777_v36  ;;  %v1779_v48 = vrot.slane %v1777_v36, 4 }
 0x10c   : > { %v1607_v46 = vor.u32 %v1606_v34, %v1602_v31  ;;  %v1701_v47 = vld [vmem:[#allocation2 + $0x68] sm:$0x1]  ;;  %v2083_v49 = vshll.u32 %v1915_v44, 16  ;;  %v1598_v50 = vrot.slane %v1597_v38, 4  ;;  %v2090_v54 = vrot.slane %v2088_v43, 4 }
 0x10d   : > { %v1780_v51 = vrot.slane %v1701_v47, 5  ;;  %v2091_v56 = vshll.u32 %v1916_v24, 16  ;;  %v2097_v57 = vshll.u32 %v1917_v41, 16  ;;  %v2101_v58 = vshrl.u32 %v1917_v41, 16  ;;  %v1445_v3 = vld [vmem:[#allocation2 + $0x68] sm:$0x1] }
 0x10e   : > { %v1608_v55 = vrot.slane %v1607_v46, 4  ;;  %v2085_v59 = vrot.slane %v2083_v49, 5  ;;  %v1603_v60 = vsel %vm4934_vm12, %v1598_v50, %v1602_v31  ;;  %v2107_v62 = vshll.u32 %v1918_v42, 16  ;;  %v2165_v36 = vld [vmem:[#allocation2 + $0x50] sm:$0x1] }
 0x10f   : > { %v1781_v61 = vsel %vm4964_vm1, %v1779_v48, %v1780_v51  ;;  %v2093_v2 = vrot.slane %v2091_v56, 5  ;;  %v2099_v4 = vrot.slane %v2097_v57, 5  ;;  %v2103_v8 = vrot.slane %v2101_v58, 4  ;;  %v2155_v43 = vld [vmem:[#allocation2 + $0x28] sm:$0xf]  ;;  %v4502_v51 = vld [vmem:[#allocation2 + $0x6c] sm:$0xff]  }
 0x110   : > { %v1613_v1 = vsel %vm4934_vm12, %v1608_v55, %v1612_v40  ;;  %v3896_v53 = vcombine.low %v1778_v39, %v1781_v61  ;;  %v2086_v7 = vsel %vm4934_vm12, %v2081_v45, %v2085_v59  ;;  %v2109_v11 = vrot.slane %v2107_v62, 5  ;;  %v2156_v44 = vld [vmem:[#allocation2 + $0x2c] sm:$0x1]  ;;  %v2166_v48 = vld [vmem:[#allocation2 + $0x54] sm:$0xe] }
 0x111   : > { %v3879_v9 = vcombine.low %v1603_v60, %v1613_v1  ;;  %v3911_v13 = vcombine.low %v2076_v37, %v2086_v7  ;;  %v2094_v14 = vor.u32 %v2093_v2, %v2090_v54  ;;  %v1615_v15 = vshrl.u32 %v1443_v63, 16  ;;  %v2154_v37 = vld [vmem:[#allocation2 + $0x24] sm:$0xe]  ;;  %v2167_v49 = vld [vmem:[#allocation2 + $0x58] sm:$0xf] }
 0x112   : > { %v1618_v16 = vshll.u32 %v1443_v63, 16  ;;  %v2104_v20 = vor.u32 %v2103_v8, %v2099_v4  ;;  %v1624_v21 = vshll.u32 %v1444_v5, 16  ;;  %v1628_v0 = vshrl.u32 %v1444_v5, 16  ;;  %v2168_v57 = vld [vmem:[#allocation2 + $0x5c] sm:$0x1] }
 0x113   : > { %3225 = vmatmul.mubr.bf16.gmra.mrb[56].mxu0 %v3879_v9  ;;  %v1634_v22 = vshll.u32 %v1445_v3, 16  ;;  %3321 = vmatprep.mubr.bf16.mxu1 %v3911_v13  ;;  %v2095_v23 = vrot.slane %v2094_v14, 4  ;;  %v1617_v24 = vrot.slane %v1615_v15, 4  ;;  %v3913_v26 = vrot.slane %v2151_v12, 9  ;;  %v2157_v62 = vld [vmem:[#allocation2 + $0x30] sm:$0xe] }
 0x114   : > { %3232 = vmatprep.mubr.bf16.mxu0 %v3896_v53  ;;  %v1620_v25 = vrot.slane %v1618_v16, 5  ;;  %3322 = vmatmul.mubr.bf16.gmra.mrb[56].mxu1 %v4500_v10  ;;  %v2105_v28 = vrot.slane %v2104_v20, 4  ;;  %v1626_v29 = vrot.slane %v1624_v21, 5  ;;  %v1630_v30 = vrot.slane %v1628_v0, 4  ;;  %v2158_v63 = vld [vmem:[#allocation2 + $0x34] sm:$0xf] }
 0x115   : > { %v1636_v31 = vrot.slane %v1634_v22, 5  ;;  %v2100_v32 = vsel %vm4934_vm12, %v2095_v23, %v2099_v4  ;;  %v2201_v34 = vrot.slane %v2152_v17, 5  ;;  %v2204_v35 = vrot.slane %v2153_v19, 5  ;;  %v2159_v5 = vld [vmem:[#allocation2 + $0x38] sm:$0x1] }
 0x116   : > { %v1621_v33 = vor.u32 %v1620_v25, %v1617_v24  ;;  %v2110_v38 = vsel %vm4934_vm12, %v2105_v28, %v2109_v11  ;;  %v1631_v40 = vor.u32 %v1630_v30, %v1626_v29  ;;  %v3917_v41 = vrot.slane %v2163_v6, 9  ;;  %v2169_v3 = vld [vmem:[#allocation2 + $0x60] sm:$0xe]  ;;  %v2170_v11 = vld [vmem:[#allocation2 + $0x64] sm:$0xf] }
 0x117   : > { %v2229_v42 = vrot.slane %v2164_v27, 5  ;;  %v3912_v45 = vcombine.low %v2100_v32, %v2110_v38  ;;  %v2202_v47 = vsel %vm4964_vm1, %v3913_v26, %v2201_v34  ;;  %v2203_v39 = vrot.slane %v2201_v34, 4  ;;  %v2171_v15 = vld [vmem:[#allocation2 + $0x68] sm:$0x1]  ;;  %v2161_v21 = vld [vmem:[#allocation2 + $0x40] sm:$0xf] }
 0x118   : > { %v1622_v46 = vrot.slane %v1621_v33, 4  ;;  %v1632_v50 = vrot.slane %v1631_v40, 4  ;;  %v2232_v56 = vrot.slane %v2165_v36, 5  ;;  %v3914_v60 = vrot.slane %v2154_v37, 9  ;;  %v2160_v23 = vld [vmem:[#allocation2 + $0x3c] sm:$0xe] }
 0x119   : > { %v2230_v54 = vsel %vm4964_vm1, %v3917_v41, %v2229_v42  ;;  %v2231_v55 = vrot.slane %v2229_v42, 4  ;;  %3329 = vmatprep.mubr.bf16.mxu1 %v3912_v45  ;;  %v2205_v59 = vsel %vm4964_vm1, %v2203_v39, %v2204_v35  ;;  %v2208_v61 = vrot.slane %v2155_v43, 5  ;;  %v2172_v24 = vld [vmem:[#allocation2 + $0x6c] sm:$0xe]  ;;  %v2173_v34 = vld [vmem:[#allocation2 + $0x70] sm:$0xf] }
 0x11a   : > { %v1627_v58 = vsel %vm4934_vm12, %v1622_v46, %v1626_v29  ;;  %v1637_v1 = vsel %vm4934_vm12, %v1632_v50, %v1636_v31  ;;  %v3921_v53 = vcombine.low %v2202_v47, %v2205_v59  ;;  %v2211_v4 = vrot.slane %v2156_v44, 5  ;;  %v2162_v29 = vld [vmem:[#allocation2 + $0x44] sm:$0x1]  ;;  %v2174_v35 = vld [vmem:[#allocation2 + $0x74] sm:$0x1] }
 0x11b   : > { %v2233_v2 = vsel %vm4964_vm1, %v2231_v55, %v2232_v56  ;;  %v3880_v7 = vcombine.low %v1627_v58, %v1637_v1  ;;  %v2209_v10 = vsel %vm4964_vm1, %v3914_v60, %v2208_v61  ;;  %v2210_v8 = vrot.slane %v2208_v61, 4 }
 0x11c   : > { %v3925_v9 = vcombine.low %v2230_v54, %v2233_v2  ;;  %3330 = vmatmul.mubr.bf16.gmra.mrb[60].mxu1 %v4502_v51  ;;  %v3918_v12 = vrot.slane %v2166_v48, 9  ;;  %v2236_v13 = vrot.slane %v2167_v49, 5  ;;  %v2239_v14 = vrot.slane %v2168_v57, 5 }
 0x11d   : > { %v3915_v18 = vrot.slane %v2157_v62, 9  ;;  %3233 = vmatmul.mubr.bf16.gmra.mrb[60].mxu0 %v3880_v7  ;;  %v2212_v16 = vsel %vm4964_vm1, %v2210_v8, %v2211_v4  ;;  %v2215_v17 = vrot.slane %v2158_v63, 5  ;;  %v2218_v19 = vrot.slane %v2159_v5, 5  ;;  %v5357_v62 = vld [vmem:[%s5608_s4] ss:$0 sm:$0xff] }
 0x11e   : > { %4308 = vmatprep.mubr.bf16.mxu1 %v3925_v9  ;;  %v3919_v20 = vrot.slane %v2169_v3, 9  ;;  %4300 = vmatprep.mubr.bf16.mxu0 %v3921_v53  ;;  %v2237_v0 = vsel %vm4964_vm1, %v3918_v12, %v2236_v13  ;;  %v2238_v22 = vrot.slane %v2236_v13, 4  ;;  %v2243_v6 = vrot.slane %v2170_v11, 5 }
 0x11f   : > { %v3922_v25 = vcombine.low %v2209_v10, %v2212_v16  ;;  %v2216_v26 = vsel %vm4964_vm1, %v3915_v18, %v2215_v17  ;;  %v2217_v27 = vrot.slane %v2215_v17, 4  ;;  %v2246_v28 = vrot.slane %v2171_v15, 5 }
 0x120   : > { %v2240_v30 = vsel %vm4964_vm1, %v2238_v22, %v2239_v14  ;;  %v2244_v31 = vsel %vm4964_vm1, %v3919_v20, %v2243_v6  ;;  %v2245_v32 = vrot.slane %v2243_v6, 4  ;;  %v2222_v33 = vrot.slane %v2161_v21, 5 }
 0x121   : > { %v3926_v36 = vcombine.low %v2237_v0, %v2240_v30  ;;  %v2219_v37 = vsel %vm4964_vm1, %v2217_v27, %v2218_v19  ;;  %v3916_v38 = vrot.slane %v2160_v23, 9  ;;  %v3920_v40 = vrot.slane %v2172_v24, 9 }
 0x122   : > { %v3923_v41 = vcombine.low %v2216_v26, %v2219_v37  ;;  %v2247_v42 = vsel %vm4964_vm1, %v2245_v32, %v2246_v28  ;;  %v2224_v43 = vrot.slane %v2222_v33, 4  ;;  %v2225_v44 = vrot.slane %v2162_v29, 5 }
 0x123   : > { %v3927_v45 = vcombine.low %v2244_v31, %v2247_v42  ;;  %v2250_v46 = vrot.slane %v2173_v34, 5  ;;  %v2253_v47 = vrot.slane %v2174_v35, 5  ;;  %v2223_v49 = vsel %vm4964_vm1, %v3916_v38, %v2222_v33 }
 0x124   : > { %4309 = vmatmul.mubr.bf16.vlgmr.msra.gmra.mrb[64].mxu1 %v3926_v36  ;;  %v2226_v50 = vsel %vm4964_vm1, %v2224_v43, %v2225_v44  ;;  %vm3483_vm2 = vcmask 261120  }
 0x125   : > { %4301 = vmatmul.mubr.bf16.vlgmr.msra.gmra.mrb[64].mxu0 %v3922_v25  ;;  %4312 = vmatprep.mubr.bf16.mxu1 %v3927_v45  ;;  %v2251_v39 = vsel %vm4964_vm1, %v3920_v40, %v2250_v46  ;;  %v2252_v48 = vrot.slane %v2250_v46, 4  ;;  %v3924_v55 = vcombine.low %v2223_v49, %v2226_v50 }
 0x126   : > { %4304 = vmatprep.mubr.bf16.mxu0 %v3923_v41 }
 0x127   : > { %v2254_v51 = vsel %vm4964_vm1, %v2252_v48, %v2253_v47 }
 0x128   : > { %v3928_v54 = vcombine.low %v2251_v39, %v2254_v51 }
 0x12c   : > { %4313 = vmatmul.mubr.bf16.gmra.mrb[68].mxu1 %v3928_v54 }
 0x12d   : > { %4305 = vmatmul.mubr.bf16.gmra.mrb[68].mxu0 %v3924_v55 }
 0x14e   : > { %v4028_v56 = vpop.f32.mrb[0].mxu0 }
 0x14f   : > { %v4029_v57 = vpop.f32.mrb[1].mxu0 }
 0x150   : > { %v4030_v58 = vadd.f32 %v4029_v57, %v4028_v56  ;;  %v4031_v59 = vpop.f32.mrb[2].mxu0 }
 0x151   : > { %v4032_v60 = vpop.f32.mrb[3].mxu0  ;;  %v4092_v63 = vpop.f32.mrb[0].mxu1 }
 0x152   : > { %v4033_v61 = vadd.f32 %v4032_v60, %v4031_v59  ;;  %v2985_v1 = vadd.f32 %v4030_v58, %v5357_v62  ;;  %v4093_v52 = vpop.f32.mrb[1].mxu1 }
 0x153   : > { %v4094_v53 = vadd.f32 %v4093_v52, %v4092_v63  ;;  %v4095_v2 = vpop.f32.mrb[2].mxu1 }
 0x154   : > { %v2988_v4 = vadd.f32 %v4033_v61, %v5357_v62  ;;  %v4096_v5 = vpop.f32.mrb[3].mxu1 }
 0x155   : > { %v5361_v3 = vadd.f32 %v4094_v53, %v2985_v1  ;;  %v4097_v7 = vadd.f32 %v4096_v5, %v4095_v2 }
 0x157   : > { %v5363_v9 = vadd.f32 %v4097_v7, %v2988_v4 }
 0x15d   : > { %v4034_v10 = vpop.f32.mrb[4].mxu0 }
 0x15e   : > { %v4098_v8 = vpop.f32.mrb[4].mxu1  ;;  %v4035_v11 = vpop.f32.mrb[5].mxu0 }
 0x15f   : > { %v4099_v12 = vpop.f32.mrb[5].mxu1  ;;  %v4036_v13 = vadd.f32 %v4035_v11, %v4034_v10  ;;  %v4037_v18 = vpop.f32.mrb[6].mxu0 }
 0x160   : > { %v4100_v14 = vadd.f32 %v4099_v12, %v4098_v8  ;;  %v4101_v15 = vpop.f32.mrb[6].mxu1  ;;  %v4038_v16 = vpop.f32.mrb[7].mxu0 }
 0x161   : > { %v4102_v17 = vpop.f32.mrb[7].mxu1  ;;  %v2993_v19 = vadd.f32 %v4036_v13, %v5357_v62  ;;  %v4039_v20 = vadd.f32 %v4038_v16, %v4037_v18 }
 0x162   : > { %v4103_v21 = vadd.f32 %v4102_v17, %v4101_v15 }
 0x163   : > { %v5366_v0 = vadd.f32 %v4100_v14, %v2993_v19  ;;  %v2996_v22 = vadd.f32 %v4039_v20, %v5357_v62 }
 0x165   : > { %v5369_v6 = vadd.f32 %v4103_v21, %v2996_v22 }
 0x167   : > { %v4104_v25 = vpop.f32.mrb[8].mxu1 }
 0x168   : > { %v4105_v28 = vpop.f32.mrb[9].mxu1 }
 0x169   : > { %v4106_v31 = vadd.f32 %v4105_v28, %v4104_v25  ;;  %v4107_v32 = vpop.f32.mrb[10].mxu1 }
 0x16a   : > { %v4040_v23 = vpop.f32.mrb[8].mxu0  ;;  %v4108_v34 = vpop.f32.mrb[11].mxu1 }
 0x16b   : > { %v4041_v24 = vpop.f32.mrb[9].mxu0  ;;  %v4109_v37 = vadd.f32 %v4108_v34, %v4107_v32 }
 0x16c   : > { %v4042_v26 = vadd.f32 %v4041_v24, %v4040_v23  ;;  %v4043_v27 = vpop.f32.mrb[10].mxu0 }
 0x16d   : > { %v4044_v29 = vpop.f32.mrb[11].mxu0 }
 0x16e   : > { %v3001_v30 = vadd.f32 %v4042_v26, %v5357_v62  ;;  %v4045_v33 = vadd.f32 %v4044_v29, %v4043_v27 }
 0x170   : > { %v5372_v35 = vadd.f32 %v4106_v31, %v3001_v30  ;;  %v3004_v36 = vadd.f32 %v4045_v33, %v5357_v62 }
 0x172   : > { %v5375_v38 = vadd.f32 %v4109_v37, %v3004_v36  ;;  %v4046_v40 = vpop.f32.mrb[12].mxu0 }
 0x173   : > { %v4047_v41 = vpop.f32.mrb[13].mxu0 }
 0x174   : > { %v4048_v42 = vadd.f32 %v4047_v41, %v4046_v40  ;;  %v4049_v43 = vpop.f32.mrb[14].mxu0 }
 0x175   : > { %v4050_v44 = vpop.f32.mrb[15].mxu0  ;;  %v4110_v45 = vpop.f32.mrb[12].mxu1 }
 0x176   : > { %v3009_v46 = vadd.f32 %v4048_v42, %v5357_v62  ;;  %v4051_v47 = vadd.f32 %v4050_v44, %v4049_v43  ;;  %v4111_v39 = vpop.f32.mrb[13].mxu1 }
 0x177   : > { %v4112_v48 = vadd.f32 %v4111_v39, %v4110_v45  ;;  %v4113_v49 = vpop.f32.mrb[14].mxu1 }
 0x178   : > { %v3012_v50 = vadd.f32 %v4051_v47, %v5357_v62  ;;  %v4114_v51 = vpop.f32.mrb[15].mxu1 }
 0x179   : > { %v5379_v54 = vadd.f32 %v4112_v48, %v3009_v46  ;;  %v4115_v55 = vadd.f32 %v4114_v51, %v4113_v49 }
 0x17b   : > { %v5381_v56 = vadd.f32 %v4115_v55, %v3012_v50 }
 0x17f   : > { %v4116_v58 = vpop.f32.mrb[16].mxu1 }
 0x180   : > { %v4117_v60 = vpop.f32.mrb[17].mxu1 }
 0x181   : > { %v4052_v57 = vpop.f32.mrb[16].mxu0  ;;  %v4118_v63 = vadd.f32 %v4117_v60, %v4116_v58  ;;  %v4119_v52 = vpop.f32.mrb[18].mxu1 }
 0x182   : > { %v4053_v59 = vpop.f32.mrb[17].mxu0  ;;  %v4120_v2 = vpop.f32.mrb[19].mxu1 }
 0x183   : > { %v4054_v61 = vadd.f32 %v4053_v59, %v4052_v57  ;;  %v4055_v1 = vpop.f32.mrb[18].mxu0  ;;  %v4121_v7 = vadd.f32 %v4120_v2, %v4119_v52 }
 0x184   : > { %v4056_v53 = vpop.f32.mrb[19].mxu0 }
 0x185   : > { %v3017_v4 = vadd.f32 %v4054_v61, %v5357_v62  ;;  %v4057_v5 = vadd.f32 %v4056_v53, %v4055_v1 }
 0x187   : > { %v5384_v10 = vadd.f32 %v4118_v63, %v3017_v4  ;;  %v3020_v8 = vadd.f32 %v4057_v5, %v5357_v62  ;;  %v4122_v14 = vpop.f32.mrb[20].mxu1 }
 0x188   : > { %v4123_v16 = vpop.f32.mrb[21].mxu1 }
 0x189   : > { %v5387_v11 = vadd.f32 %v4121_v7, %v3020_v8  ;;  %v4124_v20 = vadd.f32 %v4123_v16, %v4122_v14  ;;  %v4125_v21 = vpop.f32.mrb[22].mxu1 }
 0x18a   : > { %v4126_v23 = vpop.f32.mrb[23].mxu1 }
 0x18b   : > { %v4058_v12 = vpop.f32.mrb[20].mxu0  ;;  %v4127_v26 = vadd.f32 %v4126_v23, %v4125_v21 }
 0x18c   : > { %v4059_v13 = vpop.f32.mrb[21].mxu0 }
 0x18d   : > { %v4060_v18 = vadd.f32 %v4059_v13, %v4058_v12  ;;  %v4061_v15 = vpop.f32.mrb[22].mxu0 }
 0x18e   : > { %v4062_v17 = vpop.f32.mrb[23].mxu0 }
 0x18f   : > { %v3025_v19 = vadd.f32 %v4060_v18, %v5357_v62  ;;  %v4063_v22 = vadd.f32 %v4062_v17, %v4061_v15 }
 0x191   : > { %v5390_v24 = vadd.f32 %v4124_v20, %v3025_v19  ;;  %v3028_v25 = vadd.f32 %v4063_v22, %v5357_v62 }
 0x193   : > { %v5393_v27 = vadd.f32 %v4127_v26, %v3028_v25  ;;  %v4064_v28 = vpop.f32.mrb[24].mxu0 }
 0x194   : > { %v4065_v29 = vpop.f32.mrb[25].mxu0  ;;  %v4128_v30 = vpop.f32.mrb[24].mxu1 }
 0x195   : > { %v4066_v31 = vadd.f32 %v4065_v29, %v4064_v28  ;;  %v4067_v32 = vpop.f32.mrb[26].mxu0  ;;  %v4129_v33 = vpop.f32.mrb[25].mxu1 }
 0x196   : > { %v4068_v34 = vpop.f32.mrb[27].mxu0  ;;  %v4130_v37 = vadd.f32 %v4129_v33, %v4128_v30  ;;  %v4131_v40 = vpop.f32.mrb[26].mxu1 }
 0x197   : > { %v3033_v36 = vadd.f32 %v4066_v31, %v5357_v62  ;;  %v4069_v41 = vadd.f32 %v4068_v34, %v4067_v32  ;;  %v4132_v42 = vpop.f32.mrb[27].mxu1 }
 0x198   : > { %v4133_v45 = vadd.f32 %v4132_v42, %v4131_v40 }
 0x199   : > { %v5396_v43 = vadd.f32 %v4130_v37, %v3033_v36  ;;  %v3036_v44 = vadd.f32 %v4069_v41, %v5357_v62 }
 0x19b   : > { %v5399_v46 = vadd.f32 %v4133_v45, %v3036_v44 }
 0x1a0   : > { %v4070_v47 = vpop.f32.mrb[28].mxu0  ;;  %v4134_v48 = vpop.f32.mrb[28].mxu1 }
 0x1a1   : > { %v4071_v39 = vpop.f32.mrb[29].mxu0  ;;  %v4135_v51 = vpop.f32.mrb[29].mxu1 }
 0x1a2   : > { %v4072_v49 = vadd.f32 %v4071_v39, %v4070_v47  ;;  %v4073_v50 = vpop.f32.mrb[30].mxu0  ;;  %v4136_v58 = vadd.f32 %v4135_v51, %v4134_v48  ;;  %v4137_v59 = vpop.f32.mrb[30].mxu1 }
 0x1a3   : > { %v4074_v55 = vpop.f32.mrb[31].mxu0  ;;  %v4138_v61 = vpop.f32.mrb[31].mxu1 }
 0x1a4   : > { %v3041_v57 = vadd.f32 %v4072_v49, %v5357_v62  ;;  %v4075_v60 = vadd.f32 %v4074_v55, %v4073_v50  ;;  %v4139_v52 = vadd.f32 %v4138_v61, %v4137_v59 }
 0x1a6   : > { %v5402_v63 = vadd.f32 %v4136_v58, %v3041_v57  ;;  %v3044_v1 = vadd.f32 %v4075_v60, %v5357_v62 }
 0x1a8   : > { %v5405_v53 = vadd.f32 %v4139_v52, %v3044_v1  ;;  %v4156_v2 = vpop.f32.mrb[32].mxu0  ;;  %v4220_v4 = vpop.f32.mrb[32].mxu1 }
 0x1a9   : > { %v4157_v5 = vpop.f32.mrb[33].mxu0  ;;  %v4221_v7 = vpop.f32.mrb[33].mxu1 }
 0x1aa   : > { %v4158_v8 = vadd.f32 %v4157_v5, %v4156_v2  ;;  %v4222_v12 = vadd.f32 %v4221_v7, %v4220_v4  ;;  %v4159_v13 = vpop.f32.mrb[34].mxu0  ;;  %v4223_v14 = vpop.f32.mrb[34].mxu1 }
 0x1ab   : > { %v4160_v18 = vpop.f32.mrb[35].mxu0  ;;  %v4224_v15 = vpop.f32.mrb[35].mxu1 }
 0x1ac   : > { %v3179_v16 = vadd.f32 %v4158_v8, %v5361_v3  ;;  %v4161_v17 = vadd.f32 %v4160_v18, %v4159_v13  ;;  %v4225_v19 = vadd.f32 %v4224_v15, %v4223_v14 }
 0x1ae   : > { %v3182_v20 = vadd.f32 %v4161_v17, %v5363_v9  ;;  %v5409_v62 = vadd.f32 %v4222_v12, %v3179_v16 }
 0x1b0   : > { %v5411_v21 = vadd.f32 %v4225_v19, %v3182_v20 }
 0x1b1   : > { %v4226_v23 = vpop.f32.mrb[36].mxu1 }
 0x1b2   : > { %v4162_v22 = vpop.f32.mrb[36].mxu0  ;;  %v4227_v26 = vpop.f32.mrb[37].mxu1 }
 0x1b3   : > { %v4163_v25 = vpop.f32.mrb[37].mxu0  ;;  %v4228_v29 = vadd.f32 %v4227_v26, %v4226_v23  ;;  %v4229_v31 = vpop.f32.mrb[38].mxu1 }
 0x1b4   : > { %v4164_v28 = vadd.f32 %v4163_v25, %v4162_v22  ;;  %v4165_v30 = vpop.f32.mrb[38].mxu0  ;;  %v4230_v33 = vpop.f32.mrb[39].mxu1 }
 0x1b5   : > { %v4166_v32 = vpop.f32.mrb[39].mxu0  ;;  %v4231_v36 = vadd.f32 %v4230_v33, %v4229_v31 }
 0x1b6   : > { %v3187_v3 = vadd.f32 %v4164_v28, %v5366_v0  ;;  %v4167_v34 = vadd.f32 %v4166_v32, %v4165_v30 }
 0x1b8   : > { %v3190_v9 = vadd.f32 %v4167_v34, %v5369_v6  ;;  %v5415_v37 = vadd.f32 %v4228_v29, %v3187_v3 }
 0x1b9   : > { %v4232_v40 = vpop.f32.mrb[40].mxu1 }
 0x1ba   : > { %v5417_v41 = vadd.f32 %v4231_v36, %v3190_v9  ;;  %v4233_v42 = vpop.f32.mrb[41].mxu1 }
 0x1bb   : > { %v4234_v44 = vadd.f32 %v4233_v42, %v4232_v40  ;;  %v4235_v45 = vpop.f32.mrb[42].mxu1 }
 0x1bc   : > { %v4168_v47 = vpop.f32.mrb[40].mxu0  ;;  %v4236_v39 = vpop.f32.mrb[43].mxu1 }
 0x1bd   : > { %v4169_v48 = vpop.f32.mrb[41].mxu0  ;;  %v4237_v49 = vadd.f32 %v4236_v39, %v4235_v45 }
 0x1be   : > { %v4170_v50 = vadd.f32 %v4169_v48, %v4168_v47  ;;  %v4171_v51 = vpop.f32.mrb[42].mxu0 }
 0x1bf   : > { %v4172_v55 = vpop.f32.mrb[43].mxu0 }
 0x1c0   : > { %v3195_v0 = vadd.f32 %v4170_v50, %v5372_v35  ;;  %v4173_v57 = vadd.f32 %v4172_v55, %v4171_v51 }
 0x1c2   : > { %v3198_v6 = vadd.f32 %v4173_v57, %v5375_v38  ;;  %v5421_v58 = vadd.f32 %v4234_v44, %v3195_v0 }
 0x1c4   : > { %v4238_v59 = vpop.f32.mrb[44].mxu1  ;;  %v5423_v60 = vadd.f32 %v4237_v49, %v3198_v6 }
 0x1c5   : > { %v4239_v61 = vpop.f32.mrb[45].mxu1 }
 0x1c6   : > { %v4240_v52 = vadd.f32 %v4239_v61, %v4238_v59  ;;  %v4241_v2 = vpop.f32.mrb[46].mxu1 }
 0x1c7   : > { %v4174_v1 = vpop.f32.mrb[44].mxu0  ;;  %v4242_v5 = vpop.f32.mrb[47].mxu1 }
 0x1c8   : > { %v4175_v4 = vpop.f32.mrb[45].mxu0  ;;  %v4243_v12 = vadd.f32 %v4242_v5, %v4241_v2 }
 0x1c9   : > { %v4176_v7 = vadd.f32 %v4175_v4, %v4174_v1  ;;  %v4177_v8 = vpop.f32.mrb[46].mxu0 }
 0x1ca   : > { %v4178_v13 = vpop.f32.mrb[47].mxu0 }
 0x1cb   : > { %v3203_v35 = vadd.f32 %v4176_v7, %v5379_v54  ;;  %v4179_v14 = vadd.f32 %v4178_v13, %v4177_v8 }
 0x1cd   : > { %v3206_v38 = vadd.f32 %v4179_v14, %v5381_v56  ;;  %v5427_v18 = vadd.f32 %v4240_v52, %v3203_v35 }
 0x1ce   : > { %v4244_v15 = vpop.f32.mrb[48].mxu1 }
 0x1cf   : > { %v5429_v16 = vadd.f32 %v4243_v12, %v3206_v38  ;;  %v4245_v17 = vpop.f32.mrb[49].mxu1 }
 0x1d0   : > { %v4246_v19 = vadd.f32 %v4245_v17, %v4244_v15  ;;  %v4247_v20 = vpop.f32.mrb[50].mxu1 }
 0x1d1   : > { %v4180_v22 = vpop.f32.mrb[48].mxu0  ;;  %v4248_v23 = vpop.f32.mrb[51].mxu1 }
 0x1d2   : > { %v4181_v25 = vpop.f32.mrb[49].mxu0  ;;  %v4249_v26 = vadd.f32 %v4248_v23, %v4247_v20 }
 0x1d3   : > { %v4182_v28 = vadd.f32 %v4181_v25, %v4180_v22  ;;  %v4183_v29 = vpop.f32.mrb[50].mxu0 }
 0x1d4   : > { %v4184_v30 = vpop.f32.mrb[51].mxu0 }
 0x1d5   : > { %v3211_v54 = vadd.f32 %v4182_v28, %v5384_v10  ;;  %v4185_v31 = vadd.f32 %v4184_v30, %v4183_v29 }
 0x1d7   : > { %v3214_v56 = vadd.f32 %v4185_v31, %v5387_v11  ;;  %v3308_v32 = vadd.f32 %v4246_v19, %v3211_v54 }
 0x1d9   : > { %v4250_v33 = vpop.f32.mrb[52].mxu1  ;;  %v5433_v3 = vadd.f32 %v4249_v26, %v3214_v56 }
 0x1da   : > { %v4251_v34 = vpop.f32.mrb[53].mxu1 }
 0x1db   : > { %v4252_v9 = vadd.f32 %v4251_v34, %v4250_v33  ;;  %v4253_v40 = vpop.f32.mrb[54].mxu1 }
 0x1dc   : > { %v4186_v36 = vpop.f32.mrb[52].mxu0  ;;  %v4254_v44 = vpop.f32.mrb[55].mxu1 }
 0x1dd   : > { %v4187_v42 = vpop.f32.mrb[53].mxu0  ;;  %v4255_v39 = vadd.f32 %v4254_v44, %v4253_v40 }
 0x1de   : > { %v4188_v45 = vadd.f32 %v4187_v42, %v4186_v36  ;;  %v4189_v47 = vpop.f32.mrb[54].mxu0 }
 0x1df   : > { %v4190_v48 = vpop.f32.mrb[55].mxu0 }
 0x1e0   : > { %v3219_v49 = vadd.f32 %v4188_v45, %v5390_v24  ;;  %v4191_v10 = vadd.f32 %v4190_v48, %v4189_v47 }
 0x1e2   : > { %v3222_v50 = vadd.f32 %v4191_v10, %v5393_v27  ;;  %v3316_v11 = vadd.f32 %v4252_v9, %v3219_v49 }
 0x1e4   : > { %v3319_v51 = vadd.f32 %v4255_v39, %v3222_v50 }
 0x1e6   : > { %v4192_v55 = vpop.f32.mrb[56].mxu0 }
 0x1e7   : > { %v4193_v0 = vpop.f32.mrb[57].mxu0  ;;  %v4256_v57 = vpop.f32.mrb[56].mxu1 }
 0x1e8   : > { %v4194_v6 = vadd.f32 %v4193_v0, %v4192_v55  ;;  %v4195_v59 = vpop.f32.mrb[58].mxu0  ;;  %v4257_v61 = vpop.f32.mrb[57].mxu1 }
 0x1e9   : > { %v4196_v1 = vpop.f32.mrb[59].mxu0  ;;  %v4258_v2 = vadd.f32 %v4257_v61, %v4256_v57  ;;  %v4259_v4 = vpop.f32.mrb[58].mxu1 }
 0x1ea   : > { %v3227_v52 = vadd.f32 %v4194_v6, %v5396_v43  ;;  %v4197_v5 = vadd.f32 %v4196_v1, %v4195_v59  ;;  %v4260_v7 = vpop.f32.mrb[59].mxu1 }
 0x1eb   : > { %v4261_v8 = vadd.f32 %v4260_v7, %v4259_v4 }
 0x1ec   : > { %v3230_v24 = vadd.f32 %v4197_v5, %v5399_v46  ;;  %v5439_v12 = vadd.f32 %v4258_v2, %v3227_v52 }
 0x1ee   : > { %v5441_v27 = vadd.f32 %v4261_v8, %v3230_v24 }
 0x1ef   : > { %v4262_v13 = vpop.f32.mrb[60].mxu1 }
 0x1f0   : > { %v4198_v35 = vpop.f32.mrb[60].mxu0  ;;  %v4263_v14 = vpop.f32.mrb[61].mxu1 }
 0x1f1   : > { %v4199_v38 = vpop.f32.mrb[61].mxu0  ;;  %v4264_v15 = vadd.f32 %v4263_v14, %v4262_v13  ;;  %v4265_v17 = vpop.f32.mrb[62].mxu1 }
 0x1f2   : > { %v4200_v19 = vadd.f32 %v4199_v38, %v4198_v35  ;;  %v4201_v20 = vpop.f32.mrb[62].mxu0  ;;  %v4266_v43 = vpop.f32.mrb[63].mxu1 }
 0x1f3   : > { %v4202_v22 = vpop.f32.mrb[63].mxu0  ;;  %v4267_v23 = vadd.f32 %v4266_v43, %v4265_v17 }
 0x1f4   : > { %v3235_v25 = vadd.f32 %v4200_v19, %v5402_v63  ;;  %v4203_v26 = vadd.f32 %v4202_v22, %v4201_v20 }
 0x1f6   : > { %v3238_v46 = vadd.f32 %v4203_v26, %v5405_v53  ;;  %v3332_v28 = vadd.f32 %v4264_v15, %v3235_v25 }
 0x1f7   : > { %v4310_v29 = vpop.f32.mrb[64].mxu1 }
 0x1f8   : > { %v4302_v30 = vpop.f32.mrb[64].mxu0  ;;  %v3413_v54 = vadd.f32 %v4310_v29, %v3316_v11  ;;  %v3404_v31 = vpop.f32.mrb[65].mxu1  ;;  %v5445_v56 = vadd.f32 %v4267_v23, %v3238_v46 }
 0x1f9   : > { %v3381_v33 = vadd.f32 %v4302_v30, %v5415_v37  ;;  %v3372_v34 = vpop.f32.mrb[65].mxu0  ;;  %v3405_v36 = vadd.f32 %v3404_v31, %v3308_v32  ;;  %v4311_v9 = vpop.f32.mrb[66].mxu1 }
 0x1fa   : > { %vm3445_vm3 = vcmp.ge.f32.partialorder %v3413_v54, 0.0  ;;  %v3461_v40 = vmul.f32 0.1, %v3413_v54  ;;  %v3373_v63 = vadd.f32 %v3372_v34, %v5409_v62  ;;  %v4303_v42 = vpop.f32.mrb[66].mxu0  ;;  %v3416_v44 = vadd.f32 %v4311_v9, %v3319_v51  ;;  %v3407_v53 = vpop.f32.mrb[67].mxu1 }
 0x1fb   : > { %vm3437_vm0 = vcmp.ge.f32.partialorder %v3381_v33, 0.0  ;;  %v3453_v45 = vmul.f32 0.1, %v3381_v33  ;;  %vm3443_vm4 = vcmp.ge.f32.partialorder %v3405_v36, 0.0  ;;  %v3459_v47 = vmul.f32 0.1, %v3405_v36 }
 0x1fc   : > { %v3477_v39 = vsel %vm3445_vm3, %v3413_v54, %v3461_v40  ;;  %vm3435_vm5 = vcmp.ge.f32.partialorder %v3373_v63, 0.0  ;;  %v3451_v48 = vmul.f32 0.1, %v3373_v63  ;;  %v3384_v37 = vadd.f32 %v4303_v42, %v5417_v41  ;;  %v3375_v49 = vpop.f32.mrb[67].mxu0 }
 0x1fd   : > { %v3469_v10 = vsel %vm3437_vm0, %v3381_v33, %v3453_v45  ;;  %3494 = vst.msk [vmem:[#allocation4 + $0x50] sm:$0xff] %vm3483_vm2, %v3477_v39  ;;  %v3475_v32 = vsel %vm3443_vm4, %v3405_v36, %v3459_v47  ;;  %vm3446_vm6 = vcmp.ge.f32.partialorder %v3416_v44, 0.0  ;;  %v3462_v50 = vmul.f32 0.1, %v3416_v44 }
 0x1fe   : > { %3486 = vst.msk [vmem:[#allocation4 + $0x10] sm:$0xff] %vm3483_vm2, %v3469_v10  ;;  %v3467_v62 = vsel %vm3435_vm5, %v3373_v63, %v3451_v48  ;;  %3492 = vst.msk [vmem:[#allocation4 + $0x40] sm:$0xff] %vm3483_vm2, %v3475_v32  ;;  %vm3438_vm8 = vcmp.ge.f32.partialorder %v3384_v37, 0.0  ;;  %v3454_v11 = vmul.f32 0.1, %v3384_v37  ;;  %v3376_v51 = vadd.f32 %v3375_v49, %v5411_v21  ;;  %v3512_v48 = vld [vmem:[%s4757_s16 + $0x50] sm:$0xff] }
 0x1ff   : > { %3484 = vst.msk [vmem:[#allocation4] sm:$0xff] %vm3483_vm2, %v3467_v62  ;;  %v3478_v55 = vsel %vm3446_vm6, %v3416_v44, %v3462_v50  ;;  %v3408_v41 = vadd.f32 %v3407_v53, %v5433_v3  ;;  %v4314_v0 = vpop.f32.mrb[68].mxu1  ;;  %v3502_v62 = vld [vmem:[%s4757_s16] sm:$0xff] }
 0x200   : > { %v3470_v57 = vsel %vm3438_vm8, %v3384_v37, %v3454_v11  ;;  %3495 = vst.msk [vmem:[#allocation4 + $0x58] sm:$0xff] %vm3483_vm2, %v3478_v55  ;;  %vm3436_vm9 = vcmp.ge.f32.partialorder %v3376_v51, 0.0  ;;  %v3452_v6 = vmul.f32 0.1, %v3376_v51  ;;  %v4306_v59 = vpop.f32.mrb[68].mxu0  ;;  %v3429_v61 = vadd.f32 %v4314_v0, %v3332_v28  ;;  %v3420_v1 = vpop.f32.mrb[69].mxu1 }
 0x201   : > { %3487 = vst.msk [vmem:[#allocation4 + $0x18] sm:$0xff] %vm3483_vm2, %v3470_v57  ;;  %vm3444_vm10 = vcmp.ge.f32.partialorder %v3408_v41, 0.0  ;;  %v3460_v52 = vmul.f32 0.1, %v3408_v41  ;;  %v3397_v21 = vadd.f32 %v4306_v59, %v5427_v18  ;;  %v3388_v2 = vpop.f32.mrb[69].mxu0  ;;  %v3421_v4 = vadd.f32 %v3420_v1, %v5439_v12  ;;  %v4315_v5 = vpop.f32.mrb[70].mxu1 }
 0x202   : > { %v3468_v3 = vsel %vm3436_vm9, %v3376_v51, %v3452_v6  ;;  %vm3449_vm11 = vcmp.ge.f32.partialorder %v3429_v61, 0.0  ;;  %v3465_v7 = vmul.f32 0.1, %v3429_v61  ;;  %v3389_v24 = vadd.f32 %v3388_v2, %v5421_v58  ;;  %v4307_v8 = vpop.f32.mrb[70].mxu0  ;;  %v3423_v13 = vpop.f32.mrb[71].mxu1  ;;  %v3504_v37 = vld [vmem:[%s4757_s16 + $0x10] sm:$0xff] }
 0x203   : > { %3485 = vst.msk [vmem:[#allocation4 + $0x8] sm:$0xff] %vm3483_vm2, %v3468_v3  ;;  %v3476_v35 = vsel %vm3444_vm10, %v3408_v41, %v3460_v52  ;;  %vm3441_vm12 = vcmp.ge.f32.partialorder %v3397_v21, 0.0  ;;  %v3457_v14 = vmul.f32 0.1, %v3397_v21  ;;  %vm3447_vm13 = vcmp.ge.f32.partialorder %v3421_v4, 0.0  ;;  %v3391_v38 = vpop.f32.mrb[71].mxu0 }
 0x204   : > { %3493 = vst.msk [vmem:[#allocation4 + $0x48] sm:$0xff] %vm3483_vm2, %v3476_v35  ;;  %v3481_v18 = vsel %vm3449_vm11, %v3429_v61, %v3465_v7  ;;  %vm3439_vm14 = vcmp.ge.f32.partialorder %v3389_v24, 0.0  ;;  %v3455_v12 = vmul.f32 0.1, %v3389_v24  ;;  %v3463_v15 = vmul.f32 0.1, %v3421_v4 }
 0x205   : > { %v3529_v17 = vld [vmem:[#allocation4 + $0x50] sm:$0xff]  ;;  %v3473_v19 = vsel %vm3441_vm12, %v3397_v21, %v3457_v14  ;;  %3498 = vst.msk [vmem:[#allocation4 + $0x70] sm:$0xff] %vm3483_vm2, %v3481_v18  ;;  %v3400_v58 = vadd.f32 %v4307_v8, %v5429_v16  ;;  %v3432_v20 = vadd.f32 %v4315_v5, %v5445_v56  ;;  %v3392_v43 = vadd.f32 %v3391_v38, %v5423_v60  ;;  %v3527_v33 = vld [vmem:[#allocation4 + $0x40] sm:$0xff]  ;;  %v3510_v57 = vld [vmem:[%s4757_s16 + $0x40] sm:$0xff] }
 0x206   : > { %3571 = vrot.lane.b32.xlu0 %v3529_v17, %s4602_s14  ;;  %v3521_v22 = vld [vmem:[#allocation4 + $0x10] sm:$0xff]  ;;  %3490 = vst.msk [vmem:[#allocation4 + $0x30] sm:$0xff] %vm3483_vm2, %v3473_v19  ;;  %v3471_v23 = vsel %vm3439_vm14, %v3389_v24, %v3455_v12  ;;  %v3479_v25 = vsel %vm3447_vm13, %v3421_v4, %v3463_v15  ;;  %v3424_v26 = vadd.f32 %v3423_v13, %v5441_v27  ;;  %v3519_v46 = vld [vmem:[#allocation4] sm:$0xff]  ;;  %v3508_v24 = vld [vmem:[%s4757_s16 + $0x30] sm:$0xff] }
 0x207   : > { %3555 = vrot.lane.b32.xlu1 %v3521_v22, %s4602_s14  ;;  %3488 = vst.msk [vmem:[#allocation4 + $0x20] sm:$0xff] %vm3483_vm2, %v3471_v23  ;;  %3496 = vst.msk [vmem:[#allocation4 + $0x60] sm:$0xff] %vm3483_vm2, %v3479_v25  ;;  %vm3442_vm15 = vcmp.ge.f32.partialorder %v3400_v58, 0.0  ;;  %v3458_v60 = vmul.f32 0.1, %v3400_v58  ;;  %vm3450_vm1 = vcmp.ge.f32.partialorder %v3432_v20, 0.0 }
 0x208   : > { %v3466_v16 = vmul.f32 0.1, %v3432_v20  ;;  %vm3440_vm3 = vcmp.ge.f32.partialorder %v3392_v43, 0.0  ;;  %v3456_v28 = vmul.f32 0.1, %v3392_v43  ;;  %vm3448_vm0 = vcmp.ge.f32.partialorder %v3424_v26, 0.0 }
 0x209   : > { %v3464_v29 = vmul.f32 0.1, %v3424_v26  ;;  %v3474_v30 = vsel %vm3442_vm15, %v3400_v58, %v3458_v60  ;;  %v3522_v27 = vld [vmem:[#allocation4 + $0x18] sm:$0xff]  ;;  %v3505_v11 = vld [vmem:[%s4757_s16 + $0x18] sm:$0xff]  ;;  %v3503_v21 = vld [vmem:[%s4757_s16 + $0x8] sm:$0xff] }
 0x20a   : > { %v3482_v54 = vsel %vm3450_vm1, %v3432_v20, %v3466_v16  ;;  %3551 = vrot.lane.b32.xlu0 %v3519_v46, %s4602_s14  ;;  %3491 = vst.msk [vmem:[#allocation4 + $0x38] sm:$0xff] %vm3483_vm2, %v3474_v30  ;;  %v3472_v31 = vsel %vm3440_vm3, %v3392_v43, %v3456_v28  ;;  %v3530_v34 = vld [vmem:[#allocation4 + $0x58] sm:$0xff]  ;;  %v3520_v36 = vld [vmem:[#allocation4 + $0x8] sm:$0xff]  ;;  %v3513_v6 = vld [vmem:[%s4757_s16 + $0x58] sm:$0xff] }
 0x20b   : > { %3499 = vst.msk [vmem:[#allocation4 + $0x78] sm:$0xff] %vm3483_vm2, %v3482_v54  ;;  %v3480_v56 = vsel %vm3448_vm0, %v3424_v26, %v3464_v29  ;;  %3557 = vrot.lane.b32.xlu1 %v3522_v27, %s4602_s14  ;;  %3489 = vst.msk [vmem:[#allocation4 + $0x28] sm:$0xff] %vm3483_vm2, %v3472_v31  ;;  %v3528_v9 = vld [vmem:[#allocation4 + $0x48] sm:$0xff]  ;;  %v3511_v2 = vld [vmem:[%s4757_s16 + $0x48] sm:$0xff] }
 0x20c   : > { %3497 = vst.msk [vmem:[#allocation4 + $0x68] sm:$0xff] %vm3483_vm2, %v3480_v56  ;;  %v3533_v47 = vld [vmem:[#allocation4 + $0x70] sm:$0xff]  ;;  %v3509_v8 = vld [vmem:[%s4757_s16 + $0x38] sm:$0xff]  ;;  %v3506_v18 = vld [vmem:[%s4757_s16 + $0x20] sm:$0xff] }
 0x20d   : > { %v3525_v40 = vld [vmem:[#allocation4 + $0x30] sm:$0xff]  ;;  %v3514_v20 = vld [vmem:[%s4757_s16 + $0x60] sm:$0xff]  ;;  %v3516_v46 = vld [vmem:[%s4757_s16 + $0x70] sm:$0xff] }
 0x20e   : > { %3567 = vrot.lane.b32.xlu0 %v3527_v33, %s4602_s14  ;;  %v3523_v42 = vld [vmem:[#allocation4 + $0x20] sm:$0xff]  ;;  %v3507_v12 = vld [vmem:[%s4757_s16 + $0x28] sm:$0xff] }
 0x20f   : > { %3573 = vrot.lane.b32.xlu1 %v3530_v34, %s4602_s14  ;;  %v3531_v53 = vld [vmem:[#allocation4 + $0x60] sm:$0xff]  ;;  %v3515_v43 = vld [vmem:[%s4757_s16 + $0x68] sm:$0xff] }
 0x210   : > { %v3517_v60 = vld [vmem:[%s4757_s16 + $0x78] sm:$0xff]  ;;  %s5552_s16 = scalar_lea.sflag [#allocation6], %s5632_s13 }
 0x211   : > { %v3526_v63 = vld [vmem:[#allocation4 + $0x38] sm:$0xff] }
 0x212   : > { %3553 = vrot.lane.b32.xlu0 %v3520_v36, %s4602_s14  ;;  %v3524_v44 = vld [vmem:[#allocation4 + $0x28] sm:$0xff]  ;;  %v3534_v39 = vld [vmem:[#allocation4 + $0x78] sm:$0xff] }
 0x213   : > { %3569 = vrot.lane.b32.xlu1 %v3528_v9, %s4602_s14  ;;  %v3532_v45 = vld [vmem:[#allocation4 + $0x68] sm:$0xff] }
 0x216   : > { %3563 = vrot.lane.b32.xlu0 %v3525_v40, %s4602_s14 }
 0x217   : > { %3565 = vrot.lane.b32.xlu1 %v3526_v63, %s4602_s14 }
 0x21a   : > { %3559 = vrot.lane.b32.xlu0 %v3523_v42, %s4602_s14 }
 0x21b   : > { %3561 = vrot.lane.b32.xlu1 %v3524_v44, %s4602_s14 }
 0x21e   : > { %3575 = vrot.lane.b32.xlu0 %v3531_v53, %s4602_s14 }
 0x21f   : > { %3577 = vrot.lane.b32.xlu1 %v3532_v45, %s4602_s14 }
 0x222   : > { %3579 = vrot.lane.b32.xlu0 %v3533_v47, %s4602_s14 }
 0x223   : > { %3581 = vrot.lane.b32.xlu1 %v3534_v39, %s4602_s14 }
 0x278   : > { %v3572_v49 = vpop.permute.xlu0 %3571 }
 0x279   : > { %v3609_v10 = vsel %vm593_vm7, %v3512_v48, %v3572_v49  ;;  %v3556_v32 = vpop.permute.xlu1 %3555 }
 0x27a   : > { %3626 = vst [vmem:[%s4809_s28 + $0x50] sm:$0xff] %v3609_v10  ;;  %v3601_v50 = vsel %vm593_vm7, %v3504_v37, %v3556_v32 }
 0x27b   : > { %3618 = vst [vmem:[%s4809_s28 + $0x10] sm:$0xff] %v3601_v50 }
 0x27c   : > { %v3552_v51 = vpop.permute.xlu0 %3551 }
 0x27d   : > { %v3599_v55 = vsel %vm593_vm7, %v3502_v62, %v3552_v51  ;;  %v3558_v41 = vpop.permute.xlu1 %3557 }
 0x27e   : > { %3616 = vst [vmem:[%s4809_s28] sm:$0xff] %v3599_v55  ;;  %v3602_v0 = vsel %vm593_vm7, %v3505_v11, %v3558_v41 }
 0x27f   : > { %3619 = vst [vmem:[%s4809_s28 + $0x18] sm:$0xff] %v3602_v0 }
 0x280   : > { %v3568_v59 = vpop.permute.xlu0 %3567 }
 0x281   : > { %v3607_v61 = vsel %vm593_vm7, %v3510_v57, %v3568_v59  ;;  %v3574_v1 = vpop.permute.xlu1 %3573 }
 0x282   : > { %3624 = vst [vmem:[%s4809_s28 + $0x40] sm:$0xff] %v3607_v61  ;;  %v3610_v52 = vsel %vm593_vm7, %v3513_v6, %v3574_v1 }
 0x283   : > { %3627 = vst [vmem:[%s4809_s28 + $0x58] sm:$0xff] %v3610_v52 }
 0x284   : > { %v3554_v4 = vpop.permute.xlu0 %3553 }
 0x285   : > { %v3600_v5 = vsel %vm593_vm7, %v3503_v21, %v3554_v4  ;;  %v3570_v3 = vpop.permute.xlu1 %3569 }
 0x286   : > { %3617 = vst [vmem:[%s4809_s28 + $0x8] sm:$0xff] %v3600_v5  ;;  %v3608_v7 = vsel %vm593_vm7, %v3511_v2, %v3570_v3 }
 0x287   : > { %3625 = vst [vmem:[%s4809_s28 + $0x48] sm:$0xff] %v3608_v7 }
 0x288   : > { %v3564_v13 = vpop.permute.xlu0 %3563 }
 0x289   : > { %v3605_v35 = vsel %vm593_vm7, %v3508_v24, %v3564_v13  ;;  %v3566_v14 = vpop.permute.xlu1 %3565 }
 0x28a   : > { %3622 = vst [vmem:[%s4809_s28 + $0x30] sm:$0xff] %v3605_v35  ;;  %v3606_v38 = vsel %vm593_vm7, %v3509_v8, %v3566_v14 }
 0x28b   : > { %3623 = vst [vmem:[%s4809_s28 + $0x38] sm:$0xff] %v3606_v38 }
 0x28c   : > { %v3560_v15 = vpop.permute.xlu0 %3559 }
 0x28d   : > { %v3603_v17 = vsel %vm593_vm7, %v3506_v18, %v3560_v15  ;;  %v3562_v19 = vpop.permute.xlu1 %3561 }
 0x28e   : > { %3620 = vst [vmem:[%s4809_s28 + $0x20] sm:$0xff] %v3603_v17  ;;  %v3604_v58 = vsel %vm593_vm7, %v3507_v12, %v3562_v19 }
 0x28f   : > { %3621 = vst [vmem:[%s4809_s28 + $0x28] sm:$0xff] %v3604_v58 }
 0x290   : > { %v3576_v22 = vpop.permute.xlu0 %3575 }
 0x291   : > { %v3611_v23 = vsel %vm593_vm7, %v3514_v20, %v3576_v22  ;;  %v3578_v25 = vpop.permute.xlu1 %3577 }
 0x292   : > { %3628 = vst [vmem:[%s4809_s28 + $0x60] sm:$0xff] %v3611_v23  ;;  %v3612_v26 = vsel %vm593_vm7, %v3515_v43, %v3578_v25 }
 0x293   : > { %3629 = vst [vmem:[%s4809_s28 + $0x68] sm:$0xff] %v3612_v26 }
 0x294   : > { %v3580_v16 = vpop.permute.xlu0 %3579 }
 0x295   : > { %v3613_v28 = vsel %vm593_vm7, %v3516_v46, %v3580_v16  ;;  %v3582_v29 = vpop.permute.xlu1 %3581 }
 0x296   : > { %3630 = vst [vmem:[%s4809_s28 + $0x70] sm:$0xff] %v3613_v28  ;;  %v3614_v30 = vsel %vm593_vm7, %v3517_v60, %v3582_v29 }
 0x297   : > { %3631 = vst [vmem:[%s4809_s28 + $0x78] sm:$0xff] %v3614_v30 }
 0x298   : > { %4517 = shalt.err (!%p4514_p1)
}
 0x299   : > { %s4518_s28 = scalar_lea.hbm %s5545_s27, 2048  ;;  %s4522_s17 = scalar_lea.hbm %s5609_s5, 8192 }
 0x29a   : > { %p4519_p2 = scmp.ne.s32.totalorder %s5545_s27, %s4518_s28  ;;  %p4523_p6 = scmp.lt.u32.totalorder %s5545_s27, %s5609_s5 }
 0x29b   : > { %p4524_p7 = scmp.lt.u32.totalorder %s4522_s17, %s4518_s28  ;;  %p4526_p10 = scmp.lt.u32.totalorder %s4518_s28, %s5545_s27 }
 0x29c   : > { %p4520_p4 = pnand %p4519_p2, %p4687_p3 }
 0x29d   : > { %p4525_p9 = por %p4524_p7, %p4523_p6 }
 0x29e   : > { %p4521_p5 = pneg %p4520_p4 }
 0x29f   : > { %p4527_p11 = por %p4526_p10, %p4525_p9 }
 0x2a1   : > { %p4528_p12 = pnand %p4527_p11, %p4521_p5 }
 0x2a3   : > { %4531 = shalt.err (!%p4528_p12)
}
 0x2a4   : > { %s4604_s22 = smov 128   ;;  %s4605_s10 = smov 8  }
 0x2a5   : > { %4332 = dma.vmem_to_hbm [thread:$0]  (%p4687_p3), %s5539_s21, 2048, %s5545_s27, %s5552_s16, %s4604_s22, %s4604_s22, %s4605_s10  }
 0x2a6 PF: > { %p4338_p13 = scmp.ge.s32.totalorder %s4598_s25, 2  ;;  %s3664_s15 = sand.u32 1, %s4570_s18  }
 0x2a7   : > { %s3665_s13 = scalar_lea.sflag [#allocation6], %s3664_s15 }
 0x2a8   : > { %p4335_p0 = pnand %p4338_p13, %p4696_p8 }
 0x2aa   : > { %4565 = dma.done.wait (!%p4335_p0), %s3665_s13, 2048  }
 0x2ab   : > { %4567 = vsyncadd (!%p4335_p0), %s3665_s13, 4294965248  ;;  %s18_s25 = sadd.s32 1, %s4598_s25   ;;  %s5633_s6 = sld [smem:[#allocation8_spill]] }
 0x2ac   : > { %p15_p1 = scmp.ge.s32.totalorder %s18_s25, 6   ;;  %s5634_s27 = sld [smem:[#allocation9_spill]] }
 0x2ad   : > { %s5635_s18 = smov %s4574_s19  ;;  %s5636_s19 = smov %s4578_s20 }
 0x2ae   : > { %s5637_s20 = smov %s4705_s11  ;;  %s5638_s21 = smov %s4590_s23 }
 0x2af   : > { %s5639_s22 = smov %s4594_s24  ;;  %17 = sbr.rel (!%p15_p1) target bundleno = 7 (0x7), region = 104 }
 0x2b1   : > { %s5640_s23 = smov %s5633_s6 }
 0x2b2   : > { %s5641_s24 = smov %s5634_s27 }
 0x2b6   :  { %3670 = vsyncpa [#allocation6], 1 }
 0x2b7   :  { %3672 = vsyncpa [#allocation6 + $0x1], 1 }

</bundles_post_ra>
